<compile_context>
chip_gen: v7x
topology: tpu7x:2x2x1
jax: 0.10.0
libtpu: 0.0.40
codegen_flags: <defaults>
</compile_context>

<pallas_src>
import functools
import math

import jax
import jax.numpy as jnp
from jax import lax
from jax.experimental import pallas as pl
from jax.experimental.pallas import tpu as pltpu


# ---------------------------------------------------------------------------
# Generation-aware VMEM budgeting
# ---------------------------------------------------------------------------
def _vmem_params():
    """Returns (working_set_budget_bytes, vmem_limit_bytes).

    v5e/v6e: 128 MiB physical VMEM -> 32 MiB working-set budget, 64 MiB limit.
    v7x:      64 MiB physical VMEM -> 24 MiB working-set budget, 48 MiB limit.
    """
    cap = 128 * 1024 * 1024
    try:
        info = pltpu.get_tpu_info()
        cap = int(getattr(info, "vmem_capacity_bytes", cap))
    except Exception:
        pass
    budget = min(32 * 1024 * 1024, (cap * 3) // 8)
    limit = min(64 * 1024 * 1024, (cap * 3) // 4)
    return budget, limit


# ---------------------------------------------------------------------------
# Pallas kernel 1: separable depthwise Gaussian blur + fused crop
# ---------------------------------------------------------------------------
def _sep_blur_body(pad_ref, out_ref, *, w1d, ksz, out_h, out_w, off):
    # pad_ref: (nc, Hp, Wp) VMEM; out_ref: (nc, out_h, out_w) VMEM.
    # The 2-D Gaussian is outer(w1d, w1d), so blur separably: ksz sublane-offset
    # MACs (vertical) + ksz lane-offset MACs (horizontal).  The (bi:-bi) crop of
    # match_colors is fused via the static offset `off`, so only the cropped
    # region is ever written back to HBM.
    # TODO(synk): at SR-scale widths the static lane slices below could move to
    # pltpu.roll (XLU slot) — noise at raw-burst widths.
    p = pad_ref[...]
    # vertical (sublane) pass -> (nc, out_h, Wp)
    v = w1d[0] * lax.slice_in_dim(p, off, off + out_h, axis=1)
    for dy in range(1, ksz):
        v = v + w1d[dy] * lax.slice_in_dim(p, off + dy, off + dy + out_h, axis=1)
    # horizontal (lane) pass -> (nc, out_h, out_w)
    h = w1d[0] * lax.slice_in_dim(v, off, off + out_w, axis=2)
    for dx in range(1, ksz):
        h = h + w1d[dx] * lax.slice_in_dim(v, off + dx, off + dx + out_w, axis=2)
    out_ref[...] = h


def gaussian_blur_crop_pallas(im, w1d, ksz, crop=0):
    """Depthwise Gaussian blur with reflect padding, then [crop:-crop] crop,
    all inside one Pallas kernel.  im: (B, C, H, W)."""
    B, C, H, W = im.shape
    pad = ksz // 2
    n = B * C
    out_h, out_w = H - 2 * crop, W - 2 * crop
    # TODO(synk): reflect padding stays as a wrapper-side jnp.pad (one extra
    # small HBM round trip) — negligible at raw-burst resolutions.
    imp = jnp.pad(
        im.reshape(n, H, W).astype(jnp.float32),
        ((0, 0), (pad, pad), (pad, pad)),
        mode="reflect",
    )
    Hp, Wp = H + 2 * pad, W + 2 * pad

    budget, vmem_limit = _vmem_params()
    per_slab_bytes = 4 * (Hp * Wp + out_h * out_w) * 2          # dbl-buffered in+out
    nc = max(1, min(n, budget // max(per_slab_bytes, 1)))
    # Harden: pad the slab axis to a multiple of nc instead of shrinking nc
    # (avoids degenerate nc=1 grids for awkward slab counts).
    npad = pl.cdiv(n, nc) * nc
    if npad != n:
        imp = jnp.pad(imp, ((0, npad - n), (0, 0), (0, 0)))

    body = functools.partial(
        _sep_blur_body,
        w1d=tuple(float(x) for x in w1d),
        ksz=ksz,
        out_h=out_h,
        out_w=out_w,
        off=crop,
    )
    out = pl.pallas_call(
        body,
        out_shape=jax.ShapeDtypeStruct((npad, out_h, out_w), jnp.float32),
        grid_spec=pltpu.PrefetchScalarGridSpec(
            num_scalar_prefetch=0,
            grid=(npad // nc,),
            in_specs=[pl.BlockSpec((nc, Hp, Wp), lambda i: (i, 0, 0))],
            out_specs=pl.BlockSpec((nc, out_h, out_w), lambda i: (i, 0, 0)),
        ),
        compiler_params=pltpu.CompilerParams(
            dimension_semantics=("parallel",),
            vmem_limit_bytes=vmem_limit,
        ),
    )(imp)
    return out[:n].reshape(B, C, out_h, out_w)


# ---------------------------------------------------------------------------
# Pallas kernel 2: batched fused color-transform (x @ c_mat) + masked L1
# ---------------------------------------------------------------------------
def _fused_l1_body(cmat_ref, pred_ref, gt_ref, valid_ref, num_ref, num_acc):
    # cmat_ref: (B,3,3) SMEM table; pred_ref/gt_ref: (1,3,th,W); valid: (1,1,th,W)
    # num_ref: (1,1,128) VMEM output block (sum broadcast across lanes)
    # num_acc: (th, W) VMEM accumulator persisting across the row-tile axis.
    b = pl.program_id(0)
    i = pl.program_id(1)

    @pl.when(i == 0)
    def _init():
        num_acc[...] = jnp.zeros_like(num_acc)

    x0 = pred_ref[0, 0].astype(jnp.float32)          # (th, W)
    x1 = pred_ref[0, 1].astype(jnp.float32)
    x2 = pred_ref[0, 2].astype(jnp.float32)
    v = valid_ref[0, 0].astype(jnp.float32)          # (th, W)

    # 3x3 color transform as scalar-broadcast VPU MACs (do NOT use the MXU).
    # Per-channel eps of the reference is added back in the wrapper as C*eps*den.
    l1_sum = jnp.zeros_like(v)
    for cp in range(3):
        m = (cmat_ref[b, 0, cp] * x0
             + cmat_ref[b, 1, cp] * x1
             + cmat_ref[b, 2, cp] * x2)
        l1_sum = l1_sum + jnp.abs(m - gt_ref[0, cp].astype(jnp.float32))

    # Elementwise accumulation only — no cross-lane reduction in the hot loop.
    num_acc[...] = num_acc[...] + l1_sum * v

    # One cross-lane reduction + one lane-aligned store at the last row tile.
    @pl.when(i == pl.num_programs(1) - 1)
    def _finalize():
        s = jnp.sum(num_acc[...])
        num_ref[...] = jnp.broadcast_to(s, num_ref.shape).astype(jnp.float32)


def _pick_row_tile(h, w, budget):
    """Largest row tile fitting the generation-aware VMEM working-set budget.
    Returns (tile_rows, padded_rows); rows are padded (and masked by valid=0)
    when h is not a multiple of the tile."""
    # double-buffered pred+gt+valid blocks (7 f32 planes x2) + f32 accumulator
    per_row = (7 * 2 + 1) * 4 * w
    max_rows = max(8, budget // max(per_row, 1))
    max_rows = (max_rows // 8) * 8
    if h <= max_rows:
        return h, h                      # full-extent block (always legal)
    th = max_rows
    hp = pl.cdiv(h, th) * th
    return th, hp


def fused_color_transform_l1(pred_warped, gt, valid, c_mat):
    """Batched. pred_warped, gt: (B,3,H,W); valid: (B,1,H,W); c_mat: (B,3,3).
    Returns num: (B,) with num[b] = sum(|pred[b] @ c_mat[b] - gt[b]| * valid[b])."""
    B, C, H, W = pred_warped.shape
    budget, vmem_limit = _vmem_params()
    th, Hp = _pick_row_tile(H, W, budget)
    if Hp != H:
        pz = ((0, 0), (0, 0), (0, Hp - H), (0, 0))
        pred_warped = jnp.pad(pred_warped, pz)
        gt = jnp.pad(gt, pz)
        valid = jnp.pad(valid, pz)       # zero mask -> padded rows contribute 0

    grid = (B, Hp // th)
    out = pl.pallas_call(
        _fused_l1_body,
        out_shape=jax.ShapeDtypeStruct((B, 1, 128), jnp.float32),
        grid_spec=pltpu.PrefetchScalarGridSpec(
            num_scalar_prefetch=0,
            grid=grid,
            in_specs=[
                pl.BlockSpec(memory_space=pltpu.MemorySpace.SMEM),       # c_mat (B,3,3)
                pl.BlockSpec((1, C, th, W), lambda b, i: (b, 0, i, 0)),  # pred_warped
                pl.BlockSpec((1, C, th, W), lambda b, i: (b, 0, i, 0)),  # gt
                pl.BlockSpec((1, 1, th, W), lambda b, i: (b, 0, i, 0)),  # valid
            ],
            out_specs=pl.BlockSpec((1, 1, 128), lambda b, i: (b, 0, 0)),
            scratch_shapes=[pltpu.VMEM((th, W), jnp.float32)],           # num accumulator
        ),
        compiler_params=pltpu.CompilerParams(
            # batch axis parallel (shards across v7x's 2 TCs), rows = reduction
            dimension_semantics=("parallel", "arbitrary"),
            vmem_limit_bytes=vmem_limit,
        ),
    )(c_mat.astype(jnp.float32), pred_warped, gt, valid)
    return out[:, 0, 0]


# ---------------------------------------------------------------------------
# JAX glue reproducing the torch utilities used by AlignedL1
# ---------------------------------------------------------------------------
def get_gaussian_kernel(sd=1.5):
    """Separable 1-D Gaussian weights (Python floats) and ksz; outer(w, w)
    equals the normalized 2-D kernel of the PyTorch reference."""
    ksz = int(4 * sd + 1)
    assert ksz % 2 == 1
    c = ksz // 2
    w = [math.exp(-((i - c) ** 2) / (2.0 * sd ** 2)) for i in range(ksz)]
    s = sum(w)
    return tuple(x / s for x in w), ksz


def _resize_1d(x, axis, out_size):
    """PyTorch F.interpolate(mode='bilinear', align_corners=False) along one axis."""
    in_size = x.shape[axis]
    scale = in_size / out_size
    dst = jnp.arange(out_size, dtype=jnp.float32)
    src = jnp.maximum(scale * (dst + 0.5) - 0.5, 0.0)
    i0 = jnp.minimum(jnp.floor(src).astype(jnp.int32), in_size - 1)
    i1 = jnp.minimum(i0 + 1, in_size - 1)
    w1 = src - i0.astype(jnp.float32)
    w0 = 1.0 - w1
    a = jnp.take(x, i0, axis=axis)
    b = jnp.take(x, i1, axis=axis)
    shp = [1] * x.ndim
    shp[axis] = out_size
    return a * w0.reshape(shp) + b * w1.reshape(shp)


def interpolate_bilinear(x, out_h, out_w):
    x = _resize_1d(x, -2, out_h)
    x = _resize_1d(x, -1, out_w)
    return x


def _grid_sample_bilinear_zeros(feat, gx, gy):
    """torch F.grid_sample(mode='bilinear', padding_mode='zeros', align_corners=False)."""
    B, C, H, W = feat.shape
    x = (gx + 1.0) * W / 2.0 - 0.5
    y = (gy + 1.0) * H / 2.0 - 0.5
    x0f = jnp.floor(x)
    y0f = jnp.floor(y)
    wx1 = x - x0f
    wy1 = y - y0f
    wx0 = 1.0 - wx1
    wy0 = 1.0 - wy1
    x0 = x0f.astype(jnp.int32)
    y0 = y0f.astype(jnp.int32)
    x1 = x0 + 1
    y1 = y0 + 1

    bidx = jnp.arange(B)[:, None, None, None]
    cidx = jnp.arange(C)[None, :, None, None]

    def sample(ix, iy, w):
        inb = ((ix >= 0) & (ix < W) & (iy >= 0) & (iy < H)).astype(feat.dtype)
        ixc = jnp.clip(ix, 0, W - 1)
        iyc = jnp.clip(iy, 0, H - 1)
        g = feat[bidx, cidx, iyc[:, None, :, :], ixc[:, None, :, :]]
        return g * (inb * w)[:, None, :, :]

    return (
        sample(x0, y0, wx0 * wy0)
        + sample(x1, y0, wx1 * wy0)
        + sample(x0, y1, wx0 * wy1)
        + sample(x1, y1, wx1 * wy1)
    )


def warp(feat, flow):
    """Warp feat (B,C,H,W) with flow (B,2,H,W) — torch utils_rbsr.warp semantics."""
    B, C, H, W = feat.shape
    row = jnp.arange(H, dtype=jnp.float32) + 0.5
    col = jnp.arange(W, dtype=jnp.float32) + 0.5
    rowv = jnp.broadcast_to(row[:, None], (H, W))
    colv = jnp.broadcast_to(col[None, :], (H, W))
    gx = colv[None] + flow[:, 0]
    gy = rowv[None] + flow[:, 1]
    gxn = 2.0 * gx / W - 1.0
    gyn = 2.0 * gy / H - 1.0
    return _grid_sample_bilinear_zeros(feat, gxn, gyn)


def match_colors(im_ref, im_q, im_test, ksz, gauss_w1d):
    """Returns (c_mat (B,3,3), valid (B,1,H,W) float) — the color transform is
    applied to im_test inside the fused Pallas loss kernel instead."""
    bi = 5
    # Blur ref and query of the whole batch in ONE pallas_call, with the
    # (bi:-bi) crop fused into the kernel.
    both = jnp.concatenate([im_ref, im_q], axis=1)                  # (B, 6, h, w)
    both_mean = gaussian_blur_crop_pallas(both, gauss_w1d, ksz, crop=bi)
    ref_mean = both_mean[:, :3]
    q_mean = both_mean[:, 3:]

    B, C, h, w = ref_mean.shape
    ref_re = ref_mean.reshape(B, C, -1)
    q_re = q_mean.reshape(B, C, -1)

    c_list = []
    for b in range(B):
        sol, _, _, _ = jnp.linalg.lstsq(q_re[b].T, ref_re[b].T)
        c_list.append(sol[:3])
    c_mat = jnp.stack(c_list, axis=0)                               # (B, 3, 3)

    q_conv = jnp.matmul(jnp.transpose(q_re, (0, 2, 1)), c_mat)      # (B, N, 3)
    q_conv = jnp.transpose(q_conv, (0, 2, 1))
    err = jnp.linalg.norm((q_conv - ref_re) * 255.0, axis=1).reshape(B, h, w)
    valid = (err < 20.0).astype(jnp.float32)

    pad = (im_q.shape[-1] - valid.shape[-1]) // 2
    valid = jnp.pad(valid, ((0, 0), (pad, pad), (pad, pad)))

    upsample_factor = im_test.shape[-1] / valid.shape[-1]
    oh = int(math.floor(valid.shape[-2] * upsample_factor))
    ow = int(math.floor(valid.shape[-1] * upsample_factor))
    valid = interpolate_bilinear(valid[:, None], oh, ow)
    valid = (valid > 0.9).astype(jnp.float32)                       # (B, 1, H, W)
    return c_mat, valid


# ---------------------------------------------------------------------------
# Alignment net stub
# ---------------------------------------------------------------------------
# TODO(synk): the real RBSR alignment_net is an externally injected PWC-Net whose
# architecture/weights are not specified by the module; replaced by a
# deterministic constant-flow stub.
def constant_flow_alignment_net(pred_n, gt_n):
    B, _, H, W = pred_n.shape
    fx = jnp.full((B, 1, H, W), 1.25, jnp.float32)
    fy = jnp.full((B, 1, H, W), -0.75, jnp.float32)
    return jnp.concatenate([fx, fy], axis=1)


# ---------------------------------------------------------------------------
# AlignedL1 / AlignedL1_loss
# ---------------------------------------------------------------------------
class AlignedL1:
    """Batched aligned-L1 metric.  Returns a (B,) vector of per-sample losses
    (the per-sample structure of the reference loop is preserved exactly:
    per-sample max normalization, per-sample c_mat, per-sample num/den)."""

    def __init__(self, alignment_net, sr_factor=4, boundary_ignore=None):
        self.sr_factor = sr_factor
        self.boundary_ignore = boundary_ignore
        self.alignment_net = alignment_net
        self.gauss_w1d, self.ksz = get_gaussian_kernel(sd=1.5)

    def __call__(self, pred, gt, burst_input):
        # Per-sample maxima (reference calls forward once per sample).
        pmax = jnp.max(pred, axis=(1, 2, 3), keepdims=True)
        gmax = jnp.max(gt, axis=(1, 2, 3), keepdims=True)
        flow = self.alignment_net(pred / (pmax + 1e-06), gt / (gmax + 1e-06))
        pred_warped = warp(pred, flow)

        ds_factor = 1.0 / float(2.0 * self.sr_factor)
        H, W = gt.shape[-2], gt.shape[-1]
        oh, ow = int(math.floor(H * ds_factor)), int(math.floor(W * ds_factor))
        flow_ds = interpolate_bilinear(flow, oh, ow) * ds_factor

        burst_0 = jnp.take(burst_input[:, 0], jnp.array([0, 1, 3]), axis=1)
        burst_0_warped = warp(burst_0, flow_ds)
        frame_gt_ds = interpolate_bilinear(gt, oh, ow)

        c_mat, valid = match_colors(
            frame_gt_ds, burst_0_warped, pred_warped, self.ksz, self.gauss_w1d
        )

        if self.boundary_ignore is not None:
            b = self.boundary_ignore
            # color transform is per-pixel, so cropping before it is equivalent
            pred_c = pred_warped[..., b:-b, b:-b]
            gt_c = gt[..., b:-b, b:-b]
            valid_c = valid[..., b:-b, b:-b]
        else:
            pred_c, gt_c, valid_c = pred_warped, gt, valid

        # Fused (pred_warped @ c_mat), |.-gt|, masked sum — one batched Pallas call.
        num = fused_color_transform_l1(pred_c, gt_c, valid_c, c_mat)    # (B,)
        # den computed in plain JAX (XLA fuses it into valid's producer).
        den = jnp.sum(valid_c, axis=(1, 2, 3))                          # (B,)

        eps = 1e-12
        C = pred_c.shape[1]                                             # 3 channels
        elem_ratio = pred_c.size / valid_c.size                         # == C
        # Reference adds eps per channel per pixel before masking: sum over
        # channels of (|.|+eps)*valid == num + C*eps*den.
        num = num + C * eps * den
        return num / (den * elem_ratio + eps)                           # (B,)


class AlignedL1Loss:
    def __init__(self, alignment_net, sr_factor=4, boundary_ignore=None, max_value=1.0):
        self.l1 = AlignedL1(
            alignment_net=alignment_net,
            sr_factor=sr_factor,
            boundary_ignore=boundary_ignore,
        )
        # Whole batch in one jit; the fused L1 / blur Pallas kernels run once
        # per batch (not once per sample).
        self._batched = jax.jit(self._forward)

    def _forward(self, pred, gt, burst_input):
        per_sample = self.l1(pred, gt, burst_input)     # (B,)
        return jnp.mean(per_sample)

    def __call__(self, pred, gt, burst_input):
        return self._batched(pred, gt, burst_input)


# ---------------------------------------------------------------------------
if __name__ == "__main__":
    key = jax.random.PRNGKey(0)
    B, N = 2, 2
    H = W = 128                     # SR resolution
    sr_factor = 4
    hb = wb = H // (2 * sr_factor)  # burst (RAW) resolution = 16

    k1, k2, k3, k4 = jax.random.split(key, 4)
    pred = jax.random.uniform(k1, (B, 3, H, W), jnp.float32)
    gt = jax.random.uniform(k2, (B, 3, H, W), jnp.float32)

    # Build burst frame 0 so its RGB channels (0,1,3) roughly match the
    # downsampled GT — mirrors real burst statistics so color matching succeeds.
    gt_ds = interpolate_bilinear(gt, hb, wb)
    noise = jax.random.uniform(k3, (B, 4, hb, wb), jnp.float32)
    frame0 = jnp.stack(
        [
            gt_ds[:, 0] + 0.01 * noise[:, 0],
            gt_ds[:, 1] + 0.01 * noise[:, 1],
            noise[:, 2],
            gt_ds[:, 2] + 0.01 * noise[:, 3],
        ],
        axis=1,
    )
    rest = jax.random.uniform(k4, (B, N - 1, 4, hb, wb), jnp.float32)
    burst_input = jnp.concatenate([frame0[:, None], rest], axis=1)

    loss_fn = AlignedL1Loss(alignment_net=constant_flow_alignment_net,
                            sr_factor=sr_factor, boundary_ignore=None)
    loss = loss_fn(pred, gt, burst_input)
    loss = jax.block_until_ready(loss)
    assert bool(jnp.isfinite(loss))
    print("KERNEL_OK")
</pallas_src>

<mosaic_0001>
module attributes {stable_mosaic.version = 11 : i64} {
  func.func private @main(%arg0: i32) attributes {dimension_semantics = [#tpu.dimension_semantics<core_parallel>], iteration_bounds = array<i64: 2>, tpu.core_type = #tpu.core_type<sc_scalar_subcore>, window_params = []} {
    return
  }
}

module attributes {stable_mosaic.version = 11 : i64} {
  func.func private @main(%arg0: i32) attributes {dimension_semantics = [#tpu.dimension_semantics<core_parallel>], iteration_bounds = array<i64: 2>, tpu.core_type = #tpu.core_type<sc_scalar_subcore>, window_params = []} {
    return
  }
}

module attributes {stable_mosaic.version = 11 : i64} {
  func.func @_sep_blur_body(%arg0: i32, %arg1: memref<12x22x22xf32, #tpu.memory_space<vmem>>, %arg2: memref<12x6x6xf32, #tpu.memory_space<vmem>>) attributes {dimension_semantics = [#tpu.dimension_semantics<parallel>], iteration_bounds = array<i64: 1>, scalar_prefetch = 0 : i64, scratch_operands = 0 : i64, tpu.core_type = #tpu.core_type<tc>, window_params = [{transform_indices = @transform_0, window_bounds = array<i64: 12, 22, 22>}, {transform_indices = @transform_1, window_bounds = array<i64: 12, 6, 6>}]} {
    %c0 = arith.constant 0 : index
    %c0_0 = arith.constant 0 : index
    %c0_1 = arith.constant 0 : index
    %0 = vector.load %arg1[%c0, %c0_0, %c0_1] : memref<12x22x22xf32, #tpu.memory_space<vmem>>, vector<12x22x22xf32>
    %1 = vector.extract_strided_slice %0 {offsets = [0, 5, 0], sizes = [12, 6, 22], strides = [1, 1, 1]} : vector<12x22x22xf32> to vector<12x6x22xf32>
    %cst = arith.constant 0.036632847 : f32
    %2 = vector.broadcast %cst : f32 to vector<12x6x22xf32>
    %3 = arith.mulf %2, %1 : vector<12x6x22xf32>
    %4 = vector.extract_strided_slice %0 {offsets = [0, 6, 0], sizes = [12, 6, 22], strides = [1, 1, 1]} : vector<12x22x22xf32> to vector<12x6x22xf32>
    %cst_2 = arith.constant 0.111280762 : f32
    %5 = vector.broadcast %cst_2 : f32 to vector<12x6x22xf32>
    %6 = arith.mulf %5, %4 : vector<12x6x22xf32>
    %7 = arith.addf %3, %6 : vector<12x6x22xf32>
    %8 = vector.extract_strided_slice %0 {offsets = [0, 7, 0], sizes = [12, 6, 22], strides = [1, 1, 1]} : vector<12x22x22xf32> to vector<12x6x22xf32>
    %cst_3 = arith.constant 0.216745317 : f32
    %9 = vector.broadcast %cst_3 : f32 to vector<12x6x22xf32>
    %10 = arith.mulf %9, %8 : vector<12x6x22xf32>
    %11 = arith.addf %7, %10 : vector<12x6x22xf32>
    %12 = vector.extract_strided_slice %0 {offsets = [0, 8, 0], sizes = [12, 6, 22], strides = [1, 1, 1]} : vector<12x22x22xf32> to vector<12x6x22xf32>
    %cst_4 = arith.constant 0.270682156 : f32
    %13 = vector.broadcast %cst_4 : f32 to vector<12x6x22xf32>
    %14 = arith.mulf %13, %12 : vector<12x6x22xf32>
    %15 = arith.addf %11, %14 : vector<12x6x22xf32>
    %16 = vector.extract_strided_slice %0 {offsets = [0, 9, 0], sizes = [12, 6, 22], strides = [1, 1, 1]} : vector<12x22x22xf32> to vector<12x6x22xf32>
    %cst_5 = arith.constant 0.216745317 : f32
    %17 = vector.broadcast %cst_5 : f32 to vector<12x6x22xf32>
    %18 = arith.mulf %17, %16 : vector<12x6x22xf32>
    %19 = arith.addf %15, %18 : vector<12x6x22xf32>
    %20 = vector.extract_strided_slice %0 {offsets = [0, 10, 0], sizes = [12, 6, 22], strides = [1, 1, 1]} : vector<12x22x22xf32> to vector<12x6x22xf32>
    %cst_6 = arith.constant 0.111280762 : f32
    %21 = vector.broadcast %cst_6 : f32 to vector<12x6x22xf32>
    %22 = arith.mulf %21, %20 : vector<12x6x22xf32>
    %23 = arith.addf %19, %22 : vector<12x6x22xf32>
    %24 = vector.extract_strided_slice %0 {offsets = [0, 11, 0], sizes = [12, 6, 22], strides = [1, 1, 1]} : vector<12x22x22xf32> to vector<12x6x22xf32>
    %cst_7 = arith.constant 0.036632847 : f32
    %25 = vector.broadcast %cst_7 : f32 to vector<12x6x22xf32>
    %26 = arith.mulf %25, %24 : vector<12x6x22xf32>
    %27 = arith.addf %23, %26 : vector<12x6x22xf32>
    %28 = vector.extract_strided_slice %27 {offsets = [0, 0, 5], sizes = [12, 6, 6], strides = [1, 1, 1]} : vector<12x6x22xf32> to vector<12x6x6xf32>
    %cst_8 = arith.constant 0.036632847 : f32
    %29 = vector.broadcast %cst_8 : f32 to vector<12x6x6xf32>
    %30 = arith.mulf %29, %28 : vector<12x6x6xf32>
    %31 = vector.extract_strided_slice %27 {offsets = [0, 0, 6], sizes = [12, 6, 6], strides = [1, 1, 1]} : vector<12x6x22xf32> to vector<12x6x6xf32>
    %cst_9 = arith.constant 0.111280762 : f32
    %32 = vector.broadcast %cst_9 : f32 to vector<12x6x6xf32>
    %33 = arith.mulf %32, %31 : vector<12x6x6xf32>
    %34 = arith.addf %30, %33 : vector<12x6x6xf32>
    %35 = vector.extract_strided_slice %27 {offsets = [0, 0, 7], sizes = [12, 6, 6], strides = [1, 1, 1]} : vector<12x6x22xf32> to vector<12x6x6xf32>
    %cst_10 = arith.constant 0.216745317 : f32
    %36 = vector.broadcast %cst_10 : f32 to vector<12x6x6xf32>
    %37 = arith.mulf %36, %35 : vector<12x6x6xf32>
    %38 = arith.addf %34, %37 : vector<12x6x6xf32>
    %39 = vector.extract_strided_slice %27 {offsets = [0, 0, 8], sizes = [12, 6, 6], strides = [1, 1, 1]} : vector<12x6x22xf32> to vector<12x6x6xf32>
    %cst_11 = arith.constant 0.270682156 : f32
    %40 = vector.broadcast %cst_11 : f32 to vector<12x6x6xf32>
    %41 = arith.mulf %40, %39 : vector<12x6x6xf32>
    %42 = arith.addf %38, %41 : vector<12x6x6xf32>
    %43 = vector.extract_strided_slice %27 {offsets = [0, 0, 9], sizes = [12, 6, 6], strides = [1, 1, 1]} : vector<12x6x22xf32> to vector<12x6x6xf32>
    %cst_12 = arith.constant 0.216745317 : f32
    %44 = vector.broadcast %cst_12 : f32 to vector<12x6x6xf32>
    %45 = arith.mulf %44, %43 : vector<12x6x6xf32>
    %46 = arith.addf %42, %45 : vector<12x6x6xf32>
    %47 = vector.extract_strided_slice %27 {offsets = [0, 0, 10], sizes = [12, 6, 6], strides = [1, 1, 1]} : vector<12x6x22xf32> to vector<12x6x6xf32>
    %cst_13 = arith.constant 0.111280762 : f32
    %48 = vector.broadcast %cst_13 : f32 to vector<12x6x6xf32>
    %49 = arith.mulf %48, %47 : vector<12x6x6xf32>
    %50 = arith.addf %46, %49 : vector<12x6x6xf32>
    %51 = vector.extract_strided_slice %27 {offsets = [0, 0, 11], sizes = [12, 6, 6], strides = [1, 1, 1]} : vector<12x6x22xf32> to vector<12x6x6xf32>
    %cst_14 = arith.constant 0.036632847 : f32
    %52 = vector.broadcast %cst_14 : f32 to vector<12x6x6xf32>
    %53 = arith.mulf %52, %51 : vector<12x6x6xf32>
    %54 = arith.addf %50, %53 : vector<12x6x6xf32>
    %c0_15 = arith.constant 0 : index
    %c0_16 = arith.constant 0 : index
    %c0_17 = arith.constant 0 : index
    %55 = vector.load %arg2[%c0_15, %c0_16, %c0_17] : memref<12x6x6xf32, #tpu.memory_space<vmem>>, vector<12x6x6xf32>
    tpu.vector_store %arg2[%c0_15, %c0_16, %c0_17], %54 {strides = array<i32>} : memref<12x6x6xf32, #tpu.memory_space<vmem>>, vector<12x6x6xf32>,
    return
  }
  func.func @transform_0(%arg0: i32) -> (i32, i32, i32) {
    %c0_i32 = arith.constant 0 : i32
    %c0_i32_0 = arith.constant 0 : i32
    %c0_i32_1 = arith.constant 0 : i32
    return %arg0, %c0_i32, %c0_i32_0 : i32, i32, i32
  }
  func.func @transform_1(%arg0: i32) -> (i32, i32, i32) {
    %c0_i32 = arith.constant 0 : i32
    %c0_i32_0 = arith.constant 0 : i32
    %c0_i32_1 = arith.constant 0 : i32
    return %arg0, %c0_i32, %c0_i32_0 : i32, i32, i32
  }
}

module attributes {stable_mosaic.version = 11 : i64} {
  func.func @_fused_l1_body(%arg0: i32, %arg1: i32, %arg2: memref<2x3x3xf32, #tpu.memory_space<smem>>, %arg3: memref<1x3x128x128xf32, #tpu.memory_space<vmem>>, %arg4: memref<1x3x128x128xf32, #tpu.memory_space<vmem>>, %arg5: memref<1x1x128x128xf32, #tpu.memory_space<vmem>>, %arg6: memref<1x1x128xf32, #tpu.memory_space<vmem>>, %arg7: memref<128x128xf32, #tpu.memory_space<vmem>>) attributes {dimension_semantics = [#tpu.dimension_semantics<parallel>, #tpu.dimension_semantics<arbitrary>], iteration_bounds = array<i64: 2, 1>, scalar_prefetch = 0 : i64, scratch_operands = 1 : i64, tpu.core_type = #tpu.core_type<tc>, window_params = [{transform_indices = @transform_0, window_bounds = array<i64: 2, 3, 3>}, {transform_indices = @transform_1, window_bounds = array<i64: 1, 3, 128, 128>}, {transform_indices = @transform_2, window_bounds = array<i64: 1, 3, 128, 128>}, {transform_indices = @transform_3, window_bounds = array<i64: 1, 1, 128, 128>}, {transform_indices = @transform_4, window_bounds = array<i64: 1, 1, 128>}]} {
    %c0_i32 = arith.constant 0 : i32
    %0 = arith.cmpi eq, %arg1, %c0_i32 : i32
    %1 = arith.extui %0 : i1 to i32
    %c0_i32_0 = arith.constant 0 : i32
    %2 = arith.cmpi ne, %1, %c0_i32_0 : i32
    scf.if %2 {
      %cst_50 = arith.constant 0.000000e+00 : f32
      %76 = vector.broadcast %cst_50 : f32 to vector<128x128xf32>
      %c0_51 = arith.constant 0 : index
      %c0_52 = arith.constant 0 : index
      %77 = vector.load %arg7[%c0_51, %c0_52] : memref<128x128xf32, #tpu.memory_space<vmem>>, vector<128x128xf32>
      tpu.vector_store %arg7[%c0_51, %c0_52], %76 {strides = array<i32>} : memref<128x128xf32, #tpu.memory_space<vmem>>, vector<128x128xf32>,
    } else {
    }
    %c0 = arith.constant 0 : index
    %c0_1 = arith.constant 0 : index
    %c0_2 = arith.constant 0 : index
    %c0_3 = arith.constant 0 : index
    %3 = vector.load %arg3[%c0, %c0_1, %c0_2, %c0_3] : memref<1x3x128x128xf32, #tpu.memory_space<vmem>>, vector<1x1x128x128xf32>
    %4 = vector.shape_cast %3 : vector<1x1x128x128xf32> to vector<128x128xf32>
    %c0_4 = arith.constant 0 : index
    %c1 = arith.constant 1 : index
    %c0_5 = arith.constant 0 : index
    %c0_6 = arith.constant 0 : index
    %5 = vector.load %arg3[%c0_4, %c1, %c0_5, %c0_6] : memref<1x3x128x128xf32, #tpu.memory_space<vmem>>, vector<1x1x128x128xf32>
    %6 = vector.shape_cast %5 : vector<1x1x128x128xf32> to vector<128x128xf32>
    %c0_7 = arith.constant 0 : index
    %c2 = arith.constant 2 : index
    %c0_8 = arith.constant 0 : index
    %c0_9 = arith.constant 0 : index
    %7 = vector.load %arg3[%c0_7, %c2, %c0_8, %c0_9] : memref<1x3x128x128xf32, #tpu.memory_space<vmem>>, vector<1x1x128x128xf32>
    %8 = vector.shape_cast %7 : vector<1x1x128x128xf32> to vector<128x128xf32>
    %c0_10 = arith.constant 0 : index
    %c0_11 = arith.constant 0 : index
    %c0_12 = arith.constant 0 : index
    %c0_13 = arith.constant 0 : index
    %9 = vector.load %arg5[%c0_10, %c0_11, %c0_12, %c0_13] : memref<1x1x128x128xf32, #tpu.memory_space<vmem>>, vector<1x1x128x128xf32>
    %10 = vector.shape_cast %9 : vector<1x1x128x128xf32> to vector<128x128xf32>
    %cst = arith.constant 0.000000e+00 : f32
    %11 = vector.broadcast %cst : f32 to vector<128x128xf32>
    %12 = arith.index_cast %arg0 : i32 to index
    %c0_14 = arith.constant 0 : index
    %c0_15 = arith.constant 0 : index
    %13 = memref.load %arg2[%12, %c0_14, %c0_15] : memref<2x3x3xf32, #tpu.memory_space<smem>>
    %14 = vector.broadcast %13 : f32 to vector<128x128xf32>
    %15 = arith.mulf %14, %4 : vector<128x128xf32>
    %16 = arith.index_cast %arg0 : i32 to index
    %c1_16 = arith.constant 1 : index
    %c0_17 = arith.constant 0 : index
    %17 = memref.load %arg2[%16, %c1_16, %c0_17] : memref<2x3x3xf32, #tpu.memory_space<smem>>
    %18 = vector.broadcast %17 : f32 to vector<128x128xf32>
    %19 = arith.mulf %18, %6 : vector<128x128xf32>
    %20 = arith.addf %15, %19 : vector<128x128xf32>
    %21 = arith.index_cast %arg0 : i32 to index
    %c2_18 = arith.constant 2 : index
    %c0_19 = arith.constant 0 : index
    %22 = memref.load %arg2[%21, %c2_18, %c0_19] : memref<2x3x3xf32, #tpu.memory_space<smem>>
    %23 = vector.broadcast %22 : f32 to vector<128x128xf32>
    %24 = arith.mulf %23, %8 : vector<128x128xf32>
    %25 = arith.addf %20, %24 : vector<128x128xf32>
    %c0_20 = arith.constant 0 : index
    %c0_21 = arith.constant 0 : index
    %c0_22 = arith.constant 0 : index
    %c0_23 = arith.constant 0 : index
    %26 = vector.load %arg4[%c0_20, %c0_21, %c0_22, %c0_23] : memref<1x3x128x128xf32, #tpu.memory_space<vmem>>, vector<1x1x128x128xf32>
    %27 = vector.shape_cast %26 : vector<1x1x128x128xf32> to vector<128x128xf32>
    %28 = arith.subf %25, %27 : vector<128x128xf32>
    %29 = math.absf %28 : vector<128x128xf32>
    %30 = arith.addf %11, %29 : vector<128x128xf32>
    %31 = arith.index_cast %arg0 : i32 to index
    %c0_24 = arith.constant 0 : index
    %c1_25 = arith.constant 1 : index
    %32 = memref.load %arg2[%31, %c0_24, %c1_25] : memref<2x3x3xf32, #tpu.memory_space<smem>>
    %33 = vector.broadcast %32 : f32 to vector<128x128xf32>
    %34 = arith.mulf %33, %4 : vector<128x128xf32>
    %35 = arith.index_cast %arg0 : i32 to index
    %c1_26 = arith.constant 1 : index
    %c1_27 = arith.constant 1 : index
    %36 = memref.load %arg2[%35, %c1_26, %c1_27] : memref<2x3x3xf32, #tpu.memory_space<smem>>
    %37 = vector.broadcast %36 : f32 to vector<128x128xf32>
    %38 = arith.mulf %37, %6 : vector<128x128xf32>
    %39 = arith.addf %34, %38 : vector<128x128xf32>
    %40 = arith.index_cast %arg0 : i32 to index
    %c2_28 = arith.constant 2 : index
    %c1_29 = arith.constant 1 : index
    %41 = memref.load %arg2[%40, %c2_28, %c1_29] : memref<2x3x3xf32, #tpu.memory_space<smem>>
    %42 = vector.broadcast %41 : f32 to vector<128x128xf32>
    %43 = arith.mulf %42, %8 : vector<128x128xf32>
    %44 = arith.addf %39, %43 : vector<128x128xf32>
    %c0_30 = arith.constant 0 : index
    %c1_31 = arith.constant 1 : index
    %c0_32 = arith.constant 0 : index
    %c0_33 = arith.constant 0 : index
    %45 = vector.load %arg4[%c0_30, %c1_31, %c0_32, %c0_33] : memref<1x3x128x128xf32, #tpu.memory_space<vmem>>, vector<1x1x128x128xf32>
    %46 = vector.shape_cast %45 : vector<1x1x128x128xf32> to vector<128x128xf32>
    %47 = arith.subf %44, %46 : vector<128x128xf32>
    %48 = math.absf %47 : vector<128x128xf32>
    %49 = arith.addf %30, %48 : vector<128x128xf32>
    %50 = arith.index_cast %arg0 : i32 to index
    %c0_34 = arith.constant 0 : index
    %c2_35 = arith.constant 2 : index
    %51 = memref.load %arg2[%50, %c0_34, %c2_35] : memref<2x3x3xf32, #tpu.memory_space<smem>>
    %52 = vector.broadcast %51 : f32 to vector<128x128xf32>
    %53 = arith.mulf %52, %4 : vector<128x128xf32>
    %54 = arith.index_cast %arg0 : i32 to index
    %c1_36 = arith.constant 1 : index
    %c2_37 = arith.constant 2 : index
    %55 = memref.load %arg2[%54, %c1_36, %c2_37] : memref<2x3x3xf32, #tpu.memory_space<smem>>
    %56 = vector.broadcast %55 : f32 to vector<128x128xf32>
    %57 = arith.mulf %56, %6 : vector<128x128xf32>
    %58 = arith.addf %53, %57 : vector<128x128xf32>
    %59 = arith.index_cast %arg0 : i32 to index
    %c2_38 = arith.constant 2 : index
    %c2_39 = arith.constant 2 : index
    %60 = memref.load %arg2[%59, %c2_38, %c2_39] : memref<2x3x3xf32, #tpu.memory_space<smem>>
    %61 = vector.broadcast %60 : f32 to vector<128x128xf32>
    %62 = arith.mulf %61, %8 : vector<128x128xf32>
    %63 = arith.addf %58, %62 : vector<128x128xf32>
    %c0_40 = arith.constant 0 : index
    %c2_41 = arith.constant 2 : index
    %c0_42 = arith.constant 0 : index
    %c0_43 = arith.constant 0 : index
    %64 = vector.load %arg4[%c0_40, %c2_41, %c0_42, %c0_43] : memref<1x3x128x128xf32, #tpu.memory_space<vmem>>, vector<1x1x128x128xf32>
    %65 = vector.shape_cast %64 : vector<1x1x128x128xf32> to vector<128x128xf32>
    %66 = arith.subf %63, %65 : vector<128x128xf32>
    %67 = math.absf %66 : vector<128x128xf32>
    %68 = arith.addf %49, %67 : vector<128x128xf32>
    %c0_44 = arith.constant 0 : index
    %c0_45 = arith.constant 0 : index
    %69 = vector.load %arg7[%c0_44, %c0_45] : memref<128x128xf32, #tpu.memory_space<vmem>>, vector<128x128xf32>
    %70 = arith.mulf %68, %10 : vector<128x128xf32>
    %71 = arith.addf %69, %70 : vector<128x128xf32>
    %c0_46 = arith.constant 0 : index
    %c0_47 = arith.constant 0 : index
    %72 = vector.load %arg7[%c0_46, %c0_47] : memref<128x128xf32, #tpu.memory_space<vmem>>, vector<128x128xf32>
    tpu.vector_store %arg7[%c0_46, %c0_47], %71 {strides = array<i32>} : memref<128x128xf32, #tpu.memory_space<vmem>>, vector<128x128xf32>,
    %c0_i32_48 = arith.constant 0 : i32
    %73 = arith.cmpi eq, %arg1, %c0_i32_48 : i32
    %74 = arith.extui %73 : i1 to i32
    %c0_i32_49 = arith.constant 0 : i32
    %75 = arith.cmpi ne, %74, %c0_i32_49 : i32
    scf.if %75 {
      %c0_50 = arith.constant 0 : index
      %c0_51 = arith.constant 0 : index
      %76 = vector.load %arg7[%c0_50, %c0_51] : memref<128x128xf32, #tpu.memory_space<vmem>>, vector<128x128xf32>
      %77 = vector.shape_cast %76 : vector<128x128xf32> to vector<1x128x128xf32>
      %cst_52 = arith.constant dense<0.000000e+00> : vector<1xf32>
      %78 = vector.multi_reduction <add>, %77, %cst_52 [1, 2] : vector<1x128x128xf32> to vector<1xf32>
      %79 = vector.shape_cast %78 : vector<1xf32> to vector<1x1x1xf32>
      %80 = vector.extract %79[0, 0, 0] : f32 from vector<1x1x1xf32>
      %81 = vector.broadcast %80 : f32 to vector<1x1x128xf32>
      %c0_53 = arith.constant 0 : index
      %c0_54 = arith.constant 0 : index
      %c0_55 = arith.constant 0 : index
      %82 = vector.load %arg6[%c0_53, %c0_54, %c0_55] : memref<1x1x128xf32, #tpu.memory_space<vmem>>, vector<1x1x128xf32>
      tpu.vector_store %arg6[%c0_53, %c0_54, %c0_55], %81 {strides = array<i32>} : memref<1x1x128xf32, #tpu.memory_space<vmem>>, vector<1x1x128xf32>,
    } else {
    }
    return
  }
  func.func @transform_0(%arg0: i32, %arg1: i32) -> (i32, i32, i32) {
    %c0_i32 = arith.constant 0 : i32
    %c0_i32_0 = arith.constant 0 : i32
    %c0_i32_1 = arith.constant 0 : i32
    %c0_i32_2 = arith.constant 0 : i32
    return %c0_i32, %c0_i32_0, %c0_i32_1 : i32, i32, i32
  }
  func.func @transform_1(%arg0: i32, %arg1: i32) -> (i32, i32, i32, i32) {
    %c0_i32 = arith.constant 0 : i32
    %c0_i32_0 = arith.constant 0 : i32
    %c0_i32_1 = arith.constant 0 : i32
    return %arg0, %c0_i32, %arg1, %c0_i32_0 : i32, i32, i32, i32
  }
  func.func @transform_2(%arg0: i32, %arg1: i32) -> (i32, i32, i32, i32) {
    %c0_i32 = arith.constant 0 : i32
    %c0_i32_0 = arith.constant 0 : i32
    %c0_i32_1 = arith.constant 0 : i32
    return %arg0, %c0_i32, %arg1, %c0_i32_0 : i32, i32, i32, i32
  }
  func.func @transform_3(%arg0: i32, %arg1: i32) -> (i32, i32, i32, i32) {
    %c0_i32 = arith.constant 0 : i32
    %c0_i32_0 = arith.constant 0 : i32
    %c0_i32_1 = arith.constant 0 : i32
    return %arg0, %c0_i32, %arg1, %c0_i32_0 : i32, i32, i32, i32
  }
  func.func @transform_4(%arg0: i32, %arg1: i32) -> (i32, i32, i32) {
    %c0_i32 = arith.constant 0 : i32
    %c0_i32_0 = arith.constant 0 : i32
    %c0_i32_1 = arith.constant 0 : i32
    return %arg0, %c0_i32, %c0_i32_0 : i32, i32, i32
  }
}

</mosaic_0001>

<bundles_post_ra>
// kernel: squeeze.37
= control target key start
LH: loop header
LB: loop body
LE: loop exit
PB: predicated region body
PF: predicated region fallthrough
CT: control target
= control target key end

     0   :  { %s51_s8 = smov 30   ;;  %s52_s11 = smov 18   ;;  %vm3_vm0 = vcmask 48128   ;;  %vm9_vm1 = vcmask 294128   ;;  %vm15_vm2 = vcmask 244928   ;;  %vm21_vm3 = vcmask 195728   ;;  %s87_s0 = inlined_call_operand.vmem [shape: f32[1,3,6,6], index: 0, kind: input, shape index: {}]   ;;  %s88_s1 = inlined_call_operand.vmem [shape: f32[3,36], index: 1, kind: output, shape index: {}]  }
   0x1   :  { %v41_v0 = vld [vmem:[%s87_s0 + $0x5] ss:$8 sm:$0x7]   ;;  %v43_v1 = vld [vmem:[%s87_s0 + $0x3] ss:$8 sm:$0x7]  }
   0x2   :  { %7 = vrot.lane.b32.xlu0 %v41_v0, %s51_s8  ;;  %19 = vrot.lane.b32.xlu1 %v43_v1, %s52_s11  ;;  %v42_v2 = vld [vmem:[%s87_s0 + $0x4] ss:$8 sm:$0x7]   ;;  %v44_v3 = vld [vmem:[%s87_s0 + $0x2] ss:$8 sm:$0x7]  }
   0x3   :  { %v2_v4 = vld [vmem:[%s87_s0] ss:$8 sm:$0x7]   ;;  %s53_s18 = smov 24   ;;  %s54_s19 = smov 12   ;;  %vm27_vm4 = vcmask 146528  }
   0x4   :  { %4 = vst.msk [vmem:[#allocation0] sm:$0x7] %vm3_vm0, %v2_v4   ;;  %v45_v5 = vld [vmem:[%s87_s0 + $0x1] ss:$8 sm:$0x7]   ;;  %s55_s0 = smov 6  }
   0x5   :  { %vm33_vm5 = vcmask 97328  }
   0x6   :  { %13 = vrot.lane.b32.xlu0 %v42_v2, %s53_s18  ;;  %25 = vrot.lane.b32.xlu1 %v44_v3, %s54_s19 }
   0xa   :  { %31 = vrot.lane.b32.xlu0 %v45_v5, %s55_s0 }
  0x74   :  { %v8_v6 = vpop.permute.xlu0 %7   ;;  %v20_v7 = vpop.permute.xlu1 %19  }
  0x75   :  { %10 = vst.msk [vmem:[#allocation0] sm:$0x7] %vm9_vm1, %v8_v6  }
  0x78   :  { %v14_v8 = vpop.permute.xlu0 %13   ;;  %v26_v9 = vpop.permute.xlu1 %25  }
  0x79   :  { %16 = vst.msk [vmem:[#allocation0] sm:$0x7] %vm15_vm2, %v14_v8  }
  0x7a   :  { %22 = vst.msk [vmem:[#allocation0] sm:$0x7] %vm21_vm3, %v20_v7  }
  0x7b   :  { %28 = vst.msk [vmem:[#allocation0] sm:$0x7] %vm27_vm4, %v26_v9  }
  0x7c   :  { %v32_v10 = vpop.permute.xlu0 %31  }
  0x7d   :  { %34 = vst.msk [vmem:[#allocation0] sm:$0x7] %vm33_vm5, %v32_v10  }
  0x84   :  { %v38_v11 = vld [vmem:[#allocation0] sm:$0xf] }
  0x85   :  { %40 = vst [vmem:[%s88_s1] sm:$0xf] %v38_v11 }

// kernel: custom-call.95
= control target key start
LH: loop header
LB: loop body
LE: loop exit
PB: predicated region body
PF: predicated region fallthrough
CT: control target
= control target key end

     0   :  { %v617_v5 = vmov 0.0   ;;  %s649_s19 = smov 0   ;;  %s848_s0 = inlined_call_operand.vmem [shape: f32[36,3], index: 0, kind: input, shape index: {}]   ;;  %s849_s1 = inlined_call_operand.vmem [shape: f32[36,3], index: 1, kind: output, shape index: {0}]   ;;  %s850_s2 = inlined_call_operand.vmem [shape: f32[3], index: 2, kind: output, shape index: {1}]  }
   0x1   :  { %v39_v0 = vld [vmem:[%s848_s0] sm:$0xff]  ;;  %v41_v1 = vld [vmem:[%s848_s0 + $0x8] sm:$0xff]  ;;  %v43_v2 = vld [vmem:[%s848_s0 + $0x10] sm:$0xff]  ;;  %70 = vst [vmem:[#allocation2] sm:$0x1] %v617_v5 }
   0x2   :  { %v45_v3 = vld [vmem:[%s848_s0 + $0x18] sm:$0xff]  ;;  %v47_v4 = vld [vmem:[%s848_s0 + $0x20] sm:$0xff]  ;;  %53 = vst [vmem:[#allocation1] sm:$0xff] %v39_v0  ;;  %57 = vst [vmem:[#allocation1 + $0x8] sm:$0xff] %v41_v1 }
   0x3   :  { %61 = vst [vmem:[#allocation1 + $0x10] sm:$0xff] %v43_v2  ;;  %65 = vst [vmem:[#allocation1 + $0x18] sm:$0xff] %v45_v3 }
   0x4   :  { %69 = vst [vmem:[#allocation1 + $0x20] sm:$0xff] %v47_v4 }
   0x5 LB: > { %v78_v6 = vlaneseq  ;;  %v658_v9 = vstv %s615_s19  ;;  %s145_s0 = scalar_lea.vmem [#allocation1], %s615_s19  ;;  %s181_s20 = smov [#allocation1]  ;;  %s615_s19 = sphi %s649_s19, %s76_s19  }
   0x6   : > { %s275_s21 = scalar_lea.vmem [#allocation4], %s615_s19  ;;  %s735_s22 = smov [#allocation1] }
   0x7   : > { %v655_v8 = vshrl.u32 %v78_v6, 7  ;;  %s737_s23 = smov [#allocation4] }
   0x9   : > { %v77_v7 = vld [vmem:[#allocation1] sm:$0xff]  ;;  %vm82_vm0 = vcmp.gt.s32.totalorder %v655_v8, %v658_v9  ;;  %v86_v10 = vld [vmem:[#allocation1 + $0x8] sm:$0xff]  ;;  %v89_v11 = vadd.s32 8, %v655_v8  ;;  %v99_v13 = vadd.s32 16, %v655_v8  ;;  %v109_v15 = vadd.s32 24, %v655_v8 }
   0xa   : > { %v96_v12 = vld [vmem:[#allocation1 + $0x10] sm:$0xff]  ;;  %v106_v14 = vld [vmem:[#allocation1 + $0x18] sm:$0xff]  ;;  %v83_v16 = vsel %vm82_vm0, %v77_v7, 0.0  ;;  %v119_v17 = vadd.s32 32, %v655_v8  ;;  %v184_v8 = vmov %v655_v8 }
   0xb   : > { %v84_v18 = vmul.f32 %v83_v16, %v83_v16  ;;  %vm91_vm1 = vcmp.gt.s32.totalorder %v89_v11, %v658_v9  ;;  %vm101_vm2 = vcmp.gt.s32.totalorder %v99_v13, %v658_v9  ;;  %vm111_vm3 = vcmp.gt.s32.totalorder %v109_v15, %v658_v9  ;;  %v116_v22 = vld [vmem:[#allocation1 + $0x20] sm:$0xff]  ;;  %v565_v13 = vld [vmem:[%s181_s20 + $0x8] sm:$0xff] }
   0xc   : > { %v92_v19 = vsel %vm91_vm1, %v86_v10, 0.0  ;;  %v102_v20 = vsel %vm101_vm2, %v96_v12, 0.0  ;;  %v112_v21 = vsel %vm111_vm3, %v106_v14, 0.0  ;;  %vm121_vm4 = vcmp.gt.s32.totalorder %v119_v17, %v658_v9  ;;  %v674_v38 = vld [vmem:[%s145_s0] ss:$0 sm:$0xff]  ;;  %v566_v12 = vld [vmem:[%s181_s20 + $0x10] sm:$0xff] }
   0xd   : > { %v93_v23 = vmul.f32 %v92_v19, %v92_v19  ;;  %v103_v24 = vmul.f32 %v102_v20, %v102_v20  ;;  %vm122_vm5 = vcmp.lt.s32.totalorder %v119_v17, 36  ;;  %v113_v26 = vmul.f32 %v112_v21, %v112_v21  ;;  %v185_v11 = vld [vmem:[%s181_s20] sm:$0xff]  ;;  %v567_v14 = vld [vmem:[%s181_s20 + $0x18] sm:$0xff] }
   0xe   : > { %vm123_vm6 = vmand %vm121_vm4, %vm122_vm5  ;;  %v147_v39 = vand.u32 2147483647, %v674_v38  ;;  %vm172_vm12 = vcmp.lt.f32.partialorder %v674_v38, 0.0  ;;  %v257_v4 = vadd.s32 32, %v184_v8  ;;  %v221_v5 = vadd.s32 16, %v184_v8  ;;  %v568_v16 = vld [vmem:[%s181_s20 + $0x20] sm:$0xff] }
   0xf   : > { %v94_v25 = vadd.f32 %v93_v23, %v84_v18  ;;  %v124_v27 = vsel %vm123_vm6, %v116_v22, 0.0  ;;  %v203_v7 = vadd.s32 8, %v184_v8  ;;  %v239_v10 = vadd.s32 24, %v184_v8 }
  0x10   : > { %v125_v29 = vmul.f32 %v124_v27, %v124_v27  ;;  %v148_v44 = vmax.f32 %v147_v39, 0.0  ;;  %vm259_vm13 = vcmp.gt.s32.totalorder %v257_v4, %v658_v9  ;;  %vm260_vm14 = vcmp.lt.s32.totalorder %v257_v4, 36 }
  0x11   : > { %v104_v28 = vadd.f32 %v103_v24, %v94_v25  ;;  %vm188_vm15 = vcmp.gt.s32.totalorder %v184_v8, %v658_v9  ;;  %vm223_vm0 = vcmp.gt.s32.totalorder %v221_v5, %v658_v9  ;;  %vm205_vm1 = vcmp.gt.s32.totalorder %v203_v7, %v658_v9  ;;  %vm261_vm3 = vmand %vm259_vm13, %vm260_vm14 }
  0x12   : > { %vm241_vm2 = vcmp.gt.s32.totalorder %v239_v10, %v658_v9  ;;  %v699_v15 = vand.u32 127, %v78_v6  ;;  %v189_v17 = vsel %vm188_vm15, %v185_v11, 0.0  ;;  %v224_v18 = vsel %vm223_vm0, %v566_v12, 0.0 }
  0x13   : > { %v114_v30 = vadd.f32 %v113_v26, %v104_v28  ;;  %v206_v19 = vsel %vm205_vm1, %v565_v13, 0.0  ;;  %v242_v20 = vsel %vm241_vm2, %v567_v14, 0.0  ;;  %v262_v23 = vsel %vm261_vm3, %v568_v16, 0.0 }
  0x14   : > { %vm704_vm4 = vcmp.eq.s32.totalorder %v699_v15, %v658_v9  ;;  %v295_v8 = vmov %v655_v8 }
  0x15   : > { %v126_v31 = vadd.f32 %v125_v29, %v114_v30 }
  0x17   : > { %v127_v32 = vrot.slane %v126_v31, 4 }
  0x19   : > { %v128_v33 = vadd.f32 %v127_v32, %v126_v31 }
  0x1b   : > { %v129_v34 = vrot.slane %v128_v33, 2 }
  0x1d   : > { %v130_v35 = vadd.f32 %v129_v34, %v128_v33 }
  0x1f   : > { %v131_v36 = vrot.slane %v130_v35, 1 }
  0x21   : > { %v670_v37 = vadd.f32 %v131_v36, %v130_v35 }
  0x23   : > { %599 = vrsqrt.f32 %v670_v37  ;;  %vm135_vm7 = vcmp.eq.f32.partialorder %v670_v37, inf  ;;  %v138_v41 = vand.u32 2147483648, %v670_v37  ;;  %vm137_vm8 = vcmp.eq.f32.partialorder %v670_v37, 0.0 }
  0x2d   : > { %v600_v40 = vpop.eup %599 }
  0x2e   : > { %v134_v42 = vmul.f32 %v600_v40, %v670_v37 }
  0x30   : > { %v136_v43 = vsel %vm135_vm7, %v670_v37, %v134_v42  ;;  %v288_v37 = vld [vmem:[#allocation2] ss:$0 sm:$0xff] }
  0x31   : > { %v139_v45 = vsel %vm137_vm8, %v138_v41, %v136_v43 }
  0x32   : > { %v149_v46 = vand.u32 2147483647, %v139_v45 }
  0x34   : > { %v150_v47 = vmax.f32 %v148_v44, %v149_v46 }
  0x36   : > { %601 = vrcp.f32 %v150_v47  ;;  %vm162_vm11 = vcmp.eq.f32.partialorder %v150_v47, 0.0 }
  0x40   : > { %v602_v48 = vpop.eup %601 }
  0x41   : > { %v152_v49 = vmul.f32 %v602_v48, %v147_v39  ;;  %v155_v50 = vmul.f32 0.0, %v602_v48  ;;  %v159_v51 = vmul.f32 %v602_v48, %v149_v46 }
  0x43   : > { %v153_v52 = vmul.f32 %v152_v49, %v152_v49  ;;  %v156_v53 = vmul.f32 %v155_v50, %v155_v50  ;;  %v160_v54 = vmul.f32 %v159_v51, %v159_v51  ;;  %v618_v51 = vmov 1.0  }
  0x45   : > { %v157_v55 = vadd.f32 %v156_v53, %v153_v52  ;;  %v298_v52 = vld [vmem:[%s735_s22] sm:$0xff]  ;;  %v570_v53 = vld [vmem:[%s735_s22 + $0x8] sm:$0xff] }
  0x47   : > { %v161_v56 = vadd.f32 %v160_v54, %v157_v55  ;;  %v572_v54 = vld [vmem:[%s735_s22 + $0x10] sm:$0xff] }
  0x49   : > { %603 = vrsqrt.f32 %v161_v56  ;;  %vm165_vm9 = vcmp.eq.f32.partialorder %v161_v56, inf  ;;  %v168_v58 = vand.u32 2147483648, %v161_v56  ;;  %vm167_vm10 = vcmp.eq.f32.partialorder %v161_v56, 0.0 }
  0x53   : > { %v604_v57 = vpop.eup %603 }
  0x54   : > { %v164_v59 = vmul.f32 %v604_v57, %v161_v56 }
  0x56   : > { %v166_v60 = vsel %vm165_vm9, %v161_v56, %v164_v59 }
  0x57   : > { %v169_v61 = vsel %vm167_vm10, %v168_v58, %v166_v60  ;;  %v321_v60 = vadd.s32 32, %v295_v8  ;;  %v340_v8 = vmov %v655_v8 }
  0x58   : > { %v170_v62 = vmul.f32 %v169_v61, %v150_v47  ;;  %vm357_vm6 = vcmp.ge.s32.totalorder %v340_v8, %v658_v9 }
  0x59   : > { %vm327_vm5 = vcmp.lt.s32.totalorder %v321_v60, 36 }
  0x5a   : > { %v171_v63 = vsel %vm162_vm11, 0.0, %v170_v62  ;;  %v576_v62 = vld [vmem:[%s735_s22 + $0x20] sm:$0xff] }
  0x5b   : > { %v173_v0 = vxor.u32 2147483648, %v171_v63 }
  0x5d   : > { %v174_v1 = vsel %vm172_vm12, %v171_v63, %v173_v0  ;;  %v574_v0 = vld [vmem:[%s735_s22 + $0x18] sm:$0xff]  ;;  %s752_s22 = smov %s735_s22  ;;  %vm778_vm12 = vcmp.gt.s32.totalorder %v699_v15, %v658_v9 }
  0x5e   : > { %v688_v2 = vsel %vm137_vm8, %v674_v38, %v174_v1  ;;  %605 = vrcp.f32 %v174_v1  ;;  %v175_v21 = vsub.f32 %v174_v1, %v674_v38  ;;  %s445_s24 = scalar_lea.vmem %s752_s22, %s615_s19  ;;  %s76_s19 = sadd.s32 1, %s615_s19  }
  0x5f   : > { %v180_v3 = vsub.f32 %v674_v38, %v688_v2  ;;  %p73_p0 = scmp.ge.s32.totalorder %s76_s19, 3  }
  0x61   : > { %607 = vrcp.f32 %v180_v3 }
  0x68   : > { %v606_v22 = vpop.eup %605 }
  0x69   : > { %v177_v30 = vmul.f32 %v606_v22, %v175_v21  ;;  %v403_v21 = vadd.s32 24, %v340_v8 }
  0x6b   : > { %v608_v24 = vpop.eup %607  ;;  %v179_v41 = vsel %vm137_vm8, 0.0, %v177_v30  ;;  %vm420_vm10 = vcmp.ge.s32.totalorder %v403_v21, %v658_v9 }
  0x6c   : > { %v191_v26 = vmul.f32 %v608_v24, %v189_v17  ;;  %v226_v6 = vmul.f32 %v608_v24, %v224_v18  ;;  %v208_v27 = vmul.f32 %v608_v24, %v206_v19  ;;  %v244_v28 = vmul.f32 %v608_v24, %v242_v20  ;;  %vm793_vm15 = vmand %vm704_vm4, %vm420_vm10 }
  0x6d   : > { %v264_v29 = vmul.f32 %v608_v24, %v262_v23  ;;  %v281_v43 = vsel %vm704_vm4, %v179_v41, 0.0  ;;  %v361_v18 = vadd.s32 8, %v340_v8  ;;  %v382_v20 = vadd.s32 16, %v340_v8  ;;  %v347_v23 = vld [vmem:[%s752_s22] sm:$0xff]  ;;  %v578_v24 = vld [vmem:[%s752_s22 + $0x8] sm:$0xff] }
  0x6e   : > { %v192_v31 = vsel %vm137_vm8, 0.0, %v191_v26  ;;  %v227_v32 = vsel %vm137_vm8, 0.0, %v226_v6  ;;  %v209_v33 = vsel %vm137_vm8, 0.0, %v208_v27  ;;  %v245_v34 = vsel %vm137_vm8, 0.0, %v244_v28  ;;  %v581_v26 = vld [vmem:[%s752_s22 + $0x10] sm:$0xff] }
  0x6f   : > { %v197_v35 = vsel %vm704_vm4, %v192_v31, 0.0  ;;  %v232_v36 = vsel %vm704_vm4, %v227_v32, 0.0  ;;  %v214_v38 = vsel %vm704_vm4, %v209_v33, 0.0  ;;  %v250_v39 = vsel %vm704_vm4, %v245_v34, 0.0 }
  0x70   : > { %198 = vadd.xlane.f32.xlu0 %v197_v35  ;;  %233 = vadd.xlane.f32.xlu1 %v232_v36  ;;  %v265_v40 = vsel %vm137_vm8, 0.0, %v264_v29  ;;  %vm378_vm7 = vcmp.ge.s32.totalorder %v361_v18, %v658_v9  ;;  %v424_v6 = vadd.s32 32, %v340_v8  ;;  %vm762_vm8 = vmand %vm704_vm4, %vm357_vm6  ;;  %vm399_vm9 = vcmp.ge.s32.totalorder %v382_v20, %v658_v9  ;;  %v584_v29 = vld [vmem:[%s752_s22 + $0x18] sm:$0xff]  ;;  %v587_v35 = vld [vmem:[%s752_s22 + $0x20] sm:$0xff] }
  0x71   : > { %v270_v42 = vsel %vm704_vm4, %v265_v40, 0.0  ;;  %vm771_vm11 = vmand %vm704_vm4, %vm378_vm7 }
  0x72   : > { %vm786_vm13 = vmand %vm704_vm4, %vm399_vm9  ;;  %vm441_vm14 = vcmp.ge.s32.totalorder %v424_v6, %v658_v9 }
  0x73   : > { %vm442_vm0 = vmand %vm704_vm4, %vm441_vm14 }
  0x74   : > { %215 = vadd.xlane.f32.xlu0 %v214_v38  ;;  %251 = vadd.xlane.f32.xlu1 %v250_v39 }
  0x78   : > { %271 = vadd.xlane.f32.xlu0 %v270_v42  ;;  %282 = vadd.xlane.f32.xlu1 %v281_v43 }
  0xfd   : > { %v199_v44 = vpop.xlane.xlu0 %198  ;;  %v234_v45 = vpop.xlane.xlu1 %233 }
  0xfe   : > { %200 = vst [vmem:[#allocation4] sm:$0xff] %v199_v44  ;;  %236 = vst [vmem:[#allocation4 + $0x10] sm:$0xff] %v234_v45 }
 0x101   : > { %v216_v46 = vpop.xlane.xlu0 %215  ;;  %v252_v47 = vpop.xlane.xlu1 %251 }
 0x102   : > { %218 = vst [vmem:[#allocation4 + $0x8] sm:$0xff] %v216_v46  ;;  %254 = vst [vmem:[#allocation4 + $0x18] sm:$0xff] %v252_v47 }
 0x105   : > { %v272_v48 = vpop.xlane.xlu0 %271  ;;  %v283_v49 = vpop.xlane.xlu1 %282 }
 0x106   : > { %274 = vst [vmem:[#allocation4 + $0x20] sm:$0xff] %v272_v48  ;;  %v289_v50 = vsel %vm704_vm4, %v283_v49, %v288_v37 }
 0x107   : > { %276 = vst [vmem:[%s275_s21] sm:$0x1] %v618_v51  ;;  %290 = vst [vmem:[#allocation2] sm:$0x1] %v289_v50 }
 0x10e   : > { %v297_v55 = vld [vmem:[%s737_s23] sm:$0xff]  ;;  %v569_v56 = vld [vmem:[%s737_s23 + $0x8] sm:$0xff]  ;;  %v571_v57 = vld [vmem:[%s737_s23 + $0x10] sm:$0xff] }
 0x10f   : > { %v299_v58 = vmul.f32 %v298_v52, %v297_v55  ;;  %v305_v59 = vmul.f32 %v570_v53, %v569_v56  ;;  %v575_v61 = vld [vmem:[%s737_s23 + $0x20] sm:$0xff]  ;;  %v573_v63 = vld [vmem:[%s737_s23 + $0x18] sm:$0xff]  ;;  %v312_v3 = vmul.f32 %v572_v54, %v571_v57  ;;  %s337_s23 = smov %s737_s23 }
 0x110   : > { %v326_v4 = vmul.f32 %v576_v62, %v575_v61  ;;  %v319_v7 = vmul.f32 %v574_v0, %v573_v63  ;;  %v345_v27 = vld [vmem:[%s337_s23] sm:$0xff]  ;;  %v577_v31 = vld [vmem:[%s337_s23 + $0x8] sm:$0xff]  ;;  %v580_v32 = vld [vmem:[%s337_s23 + $0x10] sm:$0xff] }
 0x111   : > { %v306_v1 = vadd.f32 %v305_v59, %v299_v58  ;;  %v583_v33 = vld [vmem:[%s337_s23 + $0x18] sm:$0xff]  ;;  %v586_v34 = vld [vmem:[%s337_s23 + $0x20] sm:$0xff]  ;;  %v456_v59 = vld [vmem:[#allocation2] sm:$0x1] (%p73_p0) }
 0x112   : > { %v328_v11 = vsel %vm327_vm5, %v326_v4, 0.0  ;;  %458 = vst [vmem:[#allocation3] sm:$0x1] (%p73_p0), %v456_v59 }
 0x113   : > { %v313_v5 = vadd.f32 %v312_v3, %v306_v1 }
 0x115   : > { %v320_v10 = vadd.f32 %v319_v7, %v313_v5 }
 0x117   : > { %v329_v12 = vadd.f32 %v328_v11, %v320_v10 }
 0x119   : > { %v330_v13 = vrot.slane %v329_v12, 4  ;;  %v524_v63 = vld [vmem:[#allocation3] sm:$0x1] (%p73_p0) }
 0x11a   :  { %525 = vst [vmem:[%s850_s2] sm:$0x1] (%p73_p0), %v524_v63 }
 0x11b   : > { %v331_v14 = vadd.f32 %v330_v13, %v329_v12 }
 0x11d   : > { %v332_v16 = vrot.slane %v331_v14, 2 }
 0x11f   : > { %v333_v17 = vadd.f32 %v332_v16, %v331_v14 }
 0x121   : > { %v334_v19 = vrot.slane %v333_v17, 1 }
 0x123   : > { %v335_v22 = vadd.f32 %v334_v19, %v333_v17 }
 0x125   : > { %v341_v30 = vmul.f32 %v335_v22, %v283_v49 }
 0x127   : > { %v346_v36 = vmul.f32 %v345_v27, %v341_v30  ;;  %v366_v38 = vmul.f32 %v577_v31, %v341_v30  ;;  %v387_v39 = vmul.f32 %v580_v32, %v341_v30  ;;  %v408_v40 = vmul.f32 %v583_v33, %v341_v30 }
 0x128   : > { %v429_v43 = vmul.f32 %v586_v34, %v341_v30 }
 0x129   : > { %v350_v15 = vsub.f32 %v347_v23, %v346_v36  ;;  %v371_v45 = vsub.f32 %v578_v24, %v366_v38  ;;  %v392_v46 = vsub.f32 %v581_v26, %v387_v39  ;;  %v413_v47 = vsub.f32 %v584_v29, %v408_v40 }
 0x12a   : > { %v434_v37 = vsub.f32 %v587_v35, %v429_v43 }
 0x12b   : > { %v351_v9 = vsel %vm778_vm12, %v350_v15, %v347_v23  ;;  %v372_v48 = vsel %vm778_vm12, %v371_v45, %v578_v24  ;;  %v393_v49 = vsel %vm778_vm12, %v392_v46, %v581_v26  ;;  %v414_v50 = vsel %vm778_vm12, %v413_v47, %v584_v29 }
 0x12c   : > { %v359_v51 = vsel %vm762_vm8, %v345_v27, %v351_v9  ;;  %v380_v52 = vsel %vm771_vm11, %v577_v31, %v372_v48  ;;  %v401_v53 = vsel %vm786_vm13, %v580_v32, %v393_v49  ;;  %v422_v54 = vsel %vm793_vm15, %v583_v33, %v414_v50 }
 0x12d   : > { %360 = vst [vmem:[%s752_s22] sm:$0xff] %v359_v51  ;;  %579 = vst [vmem:[%s752_s22 + $0x8] sm:$0xff] %v380_v52  ;;  %v435_v55 = vsel %vm778_vm12, %v434_v37, %v587_v35 }
 0x12e   : > { %582 = vst [vmem:[%s752_s22 + $0x10] sm:$0xff] %v401_v53  ;;  %585 = vst [vmem:[%s752_s22 + $0x18] sm:$0xff] %v422_v54  ;;  %v443_v56 = vsel %vm442_vm0, %v586_v34, %v435_v55 }
 0x12f   : > { %588 = vst [vmem:[%s752_s22 + $0x20] sm:$0xff] %v443_v56 }
 0x132   :  { %75 = sbr.rel (!%p73_p0) target bundleno = 5 (0x5), region = 175 }
 0x136   : > { %v446_v57 = vld [vmem:[%s445_s24] ss:$0 sm:$0xff] }
 0x137   : > { %v451_v58 = vsel %vm704_vm4, %v688_v2, %v446_v57 }
 0x138   : > { %452 = vst [vmem:[%s445_s24] sm:$0x1] %v451_v58 }
 0x13f   :  { %v494_v60 = vld [vmem:[#allocation1] sm:$0xff]  ;;  %v496_v61 = vld [vmem:[#allocation1 + $0x8] sm:$0xff]  ;;  %v498_v2 = vld [vmem:[#allocation1 + $0x10] sm:$0xff] }
 0x140   :  { %495 = vst [vmem:[%s849_s1] sm:$0xff] %v494_v60  ;;  %497 = vst [vmem:[%s849_s1 + $0x8] sm:$0xff] %v496_v61  ;;  %v500_v25 = vld [vmem:[#allocation1 + $0x18] sm:$0xff]  ;;  %v502_v62 = vld [vmem:[#allocation1 + $0x20] sm:$0xff] }
 0x141   :  { %499 = vst [vmem:[%s849_s1 + $0x10] sm:$0xff] %v498_v2  ;;  %501 = vst [vmem:[%s849_s1 + $0x18] sm:$0xff] %v500_v25 }
 0x142   :  { %503 = vst [vmem:[%s849_s1 + $0x20] sm:$0xff] %v502_v62 }

// kernel: custom-call.153
= control target key start
LH: loop header
LB: loop body
LE: loop exit
PB: predicated region body
PF: predicated region fallthrough
CT: control target
= control target key end

     0   :  { %v321_v1 = vmov 0.0   ;;  %s341_s11 = smov 0   ;;  %s397_s0 = inlined_call_operand.vmem [shape: f32[6,3], index: 0, kind: input, shape index: {}]   ;;  %s398_s1 = inlined_call_operand.vmem [shape: f32[6,3], index: 1, kind: output, shape index: {0}]   ;;  %s399_s2 = inlined_call_operand.vmem [shape: f32[3], index: 2, kind: output, shape index: {1}]  }
   0x1   :  { %v31_v0 = vld [vmem:[%s397_s0] sm:$0xff]  ;;  %38 = vst [vmem:[#allocation2] sm:$0x1] %v321_v1 }
   0x2   :  { %37 = vst [vmem:[#allocation1] sm:$0xff] %v31_v0 }
   0x3 LB: > { %v46_v2 = vlaneseq  ;;  %v350_v4 = vstv %s319_s11  ;;  %s73_s0 = scalar_lea.vmem [#allocation1], %s319_s11  ;;  %s109_s12 = smov [#allocation1]  ;;  %v322_v58 = vmov 1.0   ;;  %s319_s11 = sphi %s341_s11, %s44_s11  }
   0x4   : > { %s131_s13 = scalar_lea.vmem [#allocation4], %s319_s11  ;;  %s147_s14 = smov [#allocation1] }
   0x5   : > { %v347_v3 = vshrl.u32 %v46_v2, 7  ;;  %v125_v47 = vand.u32 127, %v46_v2  ;;  %s148_s15 = smov [#allocation4] }
   0x7   : > { %vm50_vm0 = vcmp.gt.s32.totalorder %v347_v3, %v350_v4  ;;  %vm51_vm1 = vcmp.lt.s32.totalorder %v347_v3, 6  ;;  %v112_v3 = vmov %v347_v3  ;;  %vm365_vm12 = vcmp.eq.s32.totalorder %v125_v47, %v350_v4 }
   0x8   : > { %vm52_vm2 = vmand %vm50_vm0, %vm51_vm1  ;;  %vm116_vm9 = vcmp.gt.s32.totalorder %v112_v3, %v350_v4  ;;  %vm117_vm10 = vcmp.lt.s32.totalorder %v112_v3, 6  ;;  %v144_v59 = vld [vmem:[#allocation2] ss:$0 sm:$0xff]  ;;  %v151_v3 = vmov %v347_v3  ;;  %vm177_vm15 = vcmp.gt.s32.totalorder %v125_v47, %v350_v4 }
   0x9   : > { %v45_v5 = vld [vmem:[#allocation1] sm:$0xff]  ;;  %vm118_vm11 = vmand %vm116_vm9, %vm117_vm10  ;;  %vm156_vm13 = vcmp.lt.s32.totalorder %v151_v3, 6  ;;  %v168_v3 = vmov %v347_v3 }
   0xa   : > { %v53_v6 = vsel %vm52_vm2, %v45_v5, 0.0  ;;  %v74_v14 = vld [vmem:[%s73_s0] ss:$0 sm:$0xff]  ;;  %vm185_vm14 = vcmp.ge.s32.totalorder %v168_v3, %v350_v4 }
   0xb   : > { %v54_v7 = vmul.f32 %v53_v6, %v53_v6  ;;  %v75_v15 = vand.u32 2147483647, %v74_v14  ;;  %vm100_vm8 = vcmp.lt.f32.partialorder %v74_v14, 0.0  ;;  %v113_v44 = vld [vmem:[%s109_s12] sm:$0xff]  ;;  %vm186_vm0 = vmand %vm365_vm12, %vm185_vm14 }
   0xc   : > { %v119_v48 = vsel %vm118_vm11, %v113_v44, 0.0  ;;  %v154_v62 = vld [vmem:[%s147_s14] sm:$0xff]  ;;  %s164_s14 = smov %s147_s14 }
   0xd   : > { %v55_v8 = vrot.slane %v54_v7, 4  ;;  %v76_v20 = vmax.f32 %v75_v15, 0.0  ;;  %s189_s16 = scalar_lea.vmem %s164_s14, %s319_s11  ;;  %s44_s11 = sadd.s32 1, %s319_s11  }
   0xe   : > { %p41_p0 = scmp.ge.s32.totalorder %s44_s11, 3  }
   0xf   : > { %v56_v9 = vadd.f32 %v55_v8, %v54_v7 }
  0x11   : > { %v57_v10 = vrot.slane %v56_v9, 2 }
  0x13   : > { %v58_v11 = vadd.f32 %v57_v10, %v56_v9 }
  0x15   : > { %v59_v12 = vrot.slane %v58_v11, 1 }
  0x17   : > { %v60_v13 = vadd.f32 %v59_v12, %v58_v11  ;;  %v175_v12 = vld [vmem:[%s164_s14] sm:$0xff] }
  0x19   : > { %303 = vrsqrt.f32 %v60_v13  ;;  %vm63_vm3 = vcmp.eq.f32.partialorder %v60_v13, inf  ;;  %v66_v17 = vand.u32 2147483648, %v60_v13  ;;  %vm65_vm4 = vcmp.eq.f32.partialorder %v60_v13, 0.0 }
  0x23   : > { %v304_v16 = vpop.eup %303 }
  0x24   : > { %v62_v18 = vmul.f32 %v304_v16, %v60_v13 }
  0x26   : > { %v64_v19 = vsel %vm63_vm3, %v60_v13, %v62_v18 }
  0x27   : > { %v67_v21 = vsel %vm65_vm4, %v66_v17, %v64_v19 }
  0x28   : > { %v77_v22 = vand.u32 2147483647, %v67_v21 }
  0x2a   : > { %v78_v23 = vmax.f32 %v76_v20, %v77_v22 }
  0x2c   : > { %305 = vrcp.f32 %v78_v23  ;;  %vm90_vm7 = vcmp.eq.f32.partialorder %v78_v23, 0.0 }
  0x36   : > { %v306_v24 = vpop.eup %305 }
  0x37   : > { %v80_v25 = vmul.f32 %v306_v24, %v75_v15  ;;  %v83_v26 = vmul.f32 0.0, %v306_v24  ;;  %v87_v27 = vmul.f32 %v306_v24, %v77_v22 }
  0x39   : > { %v81_v28 = vmul.f32 %v80_v25, %v80_v25  ;;  %v84_v29 = vmul.f32 %v83_v26, %v83_v26  ;;  %v88_v30 = vmul.f32 %v87_v27, %v87_v27 }
  0x3b   : > { %v85_v31 = vadd.f32 %v84_v29, %v81_v28 }
  0x3d   : > { %v89_v32 = vadd.f32 %v88_v30, %v85_v31 }
  0x3f   : > { %307 = vrsqrt.f32 %v89_v32  ;;  %vm93_vm5 = vcmp.eq.f32.partialorder %v89_v32, inf  ;;  %v96_v34 = vand.u32 2147483648, %v89_v32  ;;  %vm95_vm6 = vcmp.eq.f32.partialorder %v89_v32, 0.0 }
  0x49   : > { %v308_v33 = vpop.eup %307 }
  0x4a   : > { %v92_v35 = vmul.f32 %v308_v33, %v89_v32 }
  0x4c   : > { %v94_v36 = vsel %vm93_vm5, %v89_v32, %v92_v35 }
  0x4d   : > { %v97_v37 = vsel %vm95_vm6, %v96_v34, %v94_v36 }
  0x4e   : > { %v98_v38 = vmul.f32 %v97_v37, %v78_v23 }
  0x50   : > { %v99_v39 = vsel %vm90_vm7, 0.0, %v98_v38 }
  0x51   : > { %v101_v40 = vxor.u32 2147483648, %v99_v39 }
  0x53   : > { %v102_v41 = vsel %vm100_vm8, %v99_v39, %v101_v40 }
  0x54   : > { %v358_v42 = vsel %vm65_vm4, %v74_v14, %v102_v41  ;;  %309 = vrcp.f32 %v102_v41  ;;  %v103_v45 = vsub.f32 %v102_v41, %v74_v14 }
  0x55   : > { %v108_v43 = vsub.f32 %v74_v14, %v358_v42 }
  0x57   : > { %311 = vrcp.f32 %v108_v43 }
  0x5e   : > { %v310_v46 = vpop.eup %309 }
  0x5f   : > { %v105_v49 = vmul.f32 %v310_v46, %v103_v45 }
  0x61   : > { %v312_v50 = vpop.eup %311  ;;  %v107_v54 = vsel %vm65_vm4, 0.0, %v105_v49 }
  0x62   : > { %v121_v51 = vmul.f32 %v312_v50, %v119_v48  ;;  %v137_v56 = vsel %vm365_vm12, %v107_v54, 0.0 }
  0x64   : > { %v122_v53 = vsel %vm65_vm4, 0.0, %v121_v51 }
  0x65   : > { %v127_v55 = vsel %vm365_vm12, %v122_v53, 0.0 }
  0x66   : > { %128 = vadd.xlane.f32.xlu0 %v127_v55 }
  0x6a   : > { %138 = vadd.xlane.f32.xlu0 %v137_v56 }
  0xf3   : > { %v129_v57 = vpop.xlane.xlu0 %128 }
  0xf4   : > { %130 = vst [vmem:[#allocation4] sm:$0xff] %v129_v57 }
  0xf5   : > { %132 = vst [vmem:[%s131_s13] sm:$0x1] %v322_v58 }
  0xf7   : > { %v139_v60 = vpop.xlane.xlu0 %138 }
  0xf8   : > { %v145_v61 = vsel %vm365_vm12, %v139_v60, %v144_v59 }
  0xf9   : > { %146 = vst [vmem:[#allocation2] sm:$0x1] %v145_v61 }
  0xfc   : > { %v153_v63 = vld [vmem:[%s148_s15] sm:$0xff]  ;;  %s165_s15 = smov %s148_s15 }
  0xfd   : > { %v155_v0 = vmul.f32 %v154_v62, %v153_v63  ;;  %v173_v11 = vld [vmem:[%s165_s15] sm:$0xff] }
  0xff   : > { %v157_v1 = vsel %vm156_vm13, %v155_v0, 0.0 }
 0x100   : > { %v158_v2 = vrot.slane %v157_v1, 4  ;;  %v200_v3 = vld [vmem:[#allocation2] sm:$0x1] (%p41_p0) }
 0x101   :  { %202 = vst [vmem:[#allocation3] sm:$0x1] (%p41_p0), %v200_v3 }
 0x102   : > { %v159_v5 = vadd.f32 %v158_v2, %v157_v1 }
 0x104   : > { %v160_v6 = vrot.slane %v159_v5, 2 }
 0x106   : > { %v161_v7 = vadd.f32 %v160_v6, %v159_v5 }
 0x108   : > { %v162_v8 = vrot.slane %v161_v7, 1  ;;  %v252_v19 = vld [vmem:[#allocation3] sm:$0x1] (%p41_p0) }
 0x109   :  { %253 = vst [vmem:[%s399_s2] sm:$0x1] (%p41_p0), %v252_v19 }
 0x10a   : > { %v163_v9 = vadd.f32 %v162_v8, %v161_v7 }
 0x10c   : > { %v169_v10 = vmul.f32 %v163_v9, %v139_v60 }
 0x10e   : > { %v174_v13 = vmul.f32 %v173_v11, %v169_v10 }
 0x110   : > { %v178_v14 = vsub.f32 %v175_v12, %v174_v13 }
 0x112   : > { %v179_v15 = vsel %vm177_vm15, %v178_v14, %v175_v12 }
 0x113   : > { %v187_v16 = vsel %vm186_vm0, %v173_v11, %v179_v15 }
 0x114   : > { %188 = vst [vmem:[%s164_s14] sm:$0xff] %v187_v16 }
 0x117   :  { %43 = sbr.rel (!%p41_p0) target bundleno = 3 (0x3), region = 139 }
 0x11b   : > { %v190_v17 = vld [vmem:[%s189_s16] ss:$0 sm:$0xff] }
 0x11c   : > { %v195_v18 = vsel %vm365_vm12, %v358_v42, %v190_v17 }
 0x11d   : > { %196 = vst [vmem:[%s189_s16] sm:$0x1] %v195_v18 }
 0x124   :  { %v230_v4 = vld [vmem:[#allocation1] sm:$0xff] }
 0x125   :  { %231 = vst [vmem:[%s398_s1] sm:$0xff] %v230_v4 }

// kernel: custom-call.154
= control target key start
LH: loop header
LB: loop body
LE: loop exit
PB: predicated region body
PF: predicated region fallthrough
CT: control target
= control target key end

     0   :  { %v68_v1 = vlaneseq  ;;  %vm82_vm1 = vcmask 23552   ;;  %s238_s0 = inlined_call_operand.vmem [shape: f32[3,3], index: 0, kind: input, shape index: {}]   ;;  %s239_s1 = inlined_call_operand.vmem [shape: f32[3,3], index: 1, kind: output, shape index: {}]  }
   0x1   :  { %v62_v0 = vld [vmem:[%s238_s0] sm:$0xf] }
   0x2   :  { %63 = vst [vmem:[#allocation1] sm:$0xf] %v62_v0  ;;  %v69_v3 = vand.u32 127, %v68_v1  ;;  %v71_v4 = vshrl.u32 %v68_v1, 7 }
   0x4   :  { %vm77_vm0 = vcmp.eq.s32.totalorder %v69_v3, 0  ;;  %vm73_vm2 = vcmp.eq.s32.totalorder %v69_v3, %v71_v4  ;;  %vm86_vm3 = vcmp.eq.s32.totalorder %v69_v3, 1  ;;  %vm97_vm4 = vcmp.eq.s32.totalorder %v69_v3, 2 }
   0x9   :  { %v66_v2 = vld [vmem:[#allocation1] sm:$0xf] }
   0xa   :  { %67 = vst [vmem:[#allocation0] sm:$0xf] %v66_v2 }
  0x11   :  { %v74_v5 = vld [vmem:[#allocation0] sm:$0xff] }
  0x12   :  { %v81_v6 = vld [vmem:[#allocation0 + $0x1] ss:$0 sm:$0xff]  ;;  %v78_v7 = vsel %vm77_vm0, %v74_v5, 1.0  ;;  %v92_v11 = vld [vmem:[#allocation0 + $0x2] ss:$0 sm:$0xff] }
  0x13   :  { %v83_v8 = vsel %vm82_vm1, %v81_v6, 0.0  ;;  %v79_v9 = vsel %vm73_vm2, %v78_v7, 0.0  ;;  %v94_v12 = vsel %vm82_vm1, %v92_v11, 0.0 }
  0x14   :  { %v87_v10 = vmul.f32 %v83_v8, %v79_v9 }
  0x16   :  { %88 = vadd.xlane.f32.xlu0 %v87_v10 }
  0xa3   :  { %v89_v13 = vpop.xlane.xlu0 %88 }
  0xa4   :  { %v90_v14 = vsel %vm86_vm3, %v89_v13, %v79_v9 }
  0xa5   :  { %v98_v15 = vmul.f32 %v94_v12, %v90_v14 }
  0xa7   :  { %99 = vadd.xlane.f32.xlu0 %v98_v15 }
 0x134   :  { %v100_v16 = vpop.xlane.xlu0 %99 }
 0x135   :  { %v101_v17 = vsel %vm97_vm4, %v100_v16, %v90_v14 }
 0x136   :  { %102 = vst [vmem:[#allocation2] sm:$0xff] %v101_v17 }
 0x13d   :  { %v106_v18 = vld [vmem:[#allocation2] sm:$0xf] }
 0x13e   :  { %108 = vst [vmem:[#allocation3] sm:$0xf] %v106_v18 }
 0x145   :  { %v169_v19 = vld [vmem:[#allocation3] sm:$0xf] }
 0x146   :  { %170 = vst [vmem:[%s239_s1] sm:$0xf] %v169_v19 }

// kernel: _forward.2
= control target key start
LH: loop header
LB: loop body
LE: loop exit
PB: predicated region body
PF: predicated region fallthrough
CT: control target
= control target key end

     0   :  { %6 = vsyncpa [#allocation3], 0  ;;  %s2975_s0 = inlined_call_operand.hbm [shape: f32[12,22,22], index: 0, kind: input, shape index: {}]   ;;  %s2976_s1 = inlined_call_operand.hbm [shape: f32[12,6,6], index: 1, kind: output, shape index: {}]  }
   0x1   :  { %7 = vsyncpa [#allocation4], 0  ;;  %s1603_s6 = smov [#allocation2]   ;;  %s1555_s10 = scalar_lea.hbm %s2975_s0, 4608 }
   0x2   :  { %s13_s7 = sshll.u32 %s1603_s6, 4  ;;  %p1556_p0 = scmp.ne.s32.totalorder %s2975_s0, %s1555_s10  ;;  %s14_s7 = int_to_ptr.vmem [resolvable:$true] %s13_s7 }
   0x3   :  { %p1559_p1 = scmp.lt.u32.totalorder %s1555_s10, %s2975_s0 }
   0x5   :  { %p1561_p2 = pnand %p1559_p1, %p1556_p0 }
   0x7   :  { %1564 = shalt.err (!%p1561_p2)
}
   0x8   :  { %s1565_s15 = scalar_lea.vmem %s14_s7, 4608  ;;  %p1570_p4 = scmp.lt.s32.totalorder %s14_s7, %s14_s7 }
   0x9   :  { %p1566_p3 = scmp.ne.s32.totalorder %s14_s7, %s1565_s15  ;;  %p1571_p5 = scmp.lt.s32.totalorder %s1565_s15, %s1565_s15 }
   0xb   :  { %p1572_p6 = por %p1571_p5, %p1570_p4 }
   0xd   :  { %p1573_p7 = pnand %p1572_p6, %p1566_p3 }
   0xf   :  { %1576 = shalt.err (!%p1573_p7)
}
  0x10   :  { %s1604_s16 = smov 128   ;;  %s1605_s17 = smov 8  }
  0x11   :  { %19 = dma.hbm_to_vmem [thread:$0]  %s2975_s0, 4608, %s14_s7, [#allocation3], %s1604_s16, %s1604_s16, %s1605_s17  }
  0x12   :  { %1599 = dma.done.wait [#allocation3], 4608  }
  0x13   :  { %1600 = vsyncadd [#allocation3], 4294962688  ;;  %v27_v0 = vld [vmem:[#allocation2 + $0x20] sm:$0xff]  ;;  %v28_v1 = vld [vmem:[#allocation2 + $0x28] sm:$0x3f]  ;;  %vm131_vm0 = vcmask 1046528  }
  0x14   :  { %v1638_v2 = vld [vmem:[#allocation2 + $0x18] sm:$0xff]  ;;  %v1640_v3 = vmul.f32 0.036632847, %v27_v0  ;;  %v1642_v4 = vmul.f32 0.11128076, %v27_v0  ;;  %vm553_vm1 = vcmask 1041408  }
  0x15   :  { %v1644_v5 = vmul.f32 0.21674532, %v27_v0  ;;  %v1646_v6 = vmul.f32 0.27068216, %v27_v0  ;;  %v518_v7 = vmul.f32 0.036632847, %v28_v1 }
  0x16   :  { %v85_v8 = vmul.f32 0.11128076, %v1638_v2  ;;  %v136_v9 = vrot.slane %v1642_v4, 1  ;;  %v24_v12 = vld [vmem:[#allocation2 + $0x8] sm:$0xff]  ;;  %v2978_v14 = vrot.slane %v1642_v4, 5  ;;  %v2977_v15 = vrot.slane %v1640_v3, 6 }
  0x17   :  { %v269_v10 = vrot.slane %v1644_v5, 2  ;;  %v2979_v11 = vrot.slane %v1644_v5, 4  ;;  %v2983_v13 = vrot.slane %v1646_v6, 3  ;;  %v558_v16 = vrot.slane %v518_v7, 6  ;;  %v25_v17 = vld [vmem:[#allocation2 + $0x10] sm:$0x3f] }
  0x18   :  { %v195_v18 = vadd.f32 %v136_v9, %v1640_v3  ;;  %v1656_v19 = vmul.f32 0.036632847, %v24_v12  ;;  %v1658_v20 = vmul.f32 0.11128076, %v24_v12  ;;  %v1660_v21 = vmul.f32 0.21674532, %v24_v12 }
  0x19   :  { %v135_v22 = vrot.slane %v85_v8, 1  ;;  %v1662_v23 = vmul.f32 0.27068216, %v24_v12  ;;  %v517_v24 = vmul.f32 0.036632847, %v25_v17  ;;  %v23_v25 = vld [vmem:[#allocation2] sm:$0xff]  ;;  %v559_v27 = vsel %vm553_vm1, %v2977_v15, %v558_v16 }
  0x1a   :  { %v328_v26 = vadd.f32 %v269_v10, %v195_v18  ;;  %v133_v28 = vrot.slane %v1658_v20, 1  ;;  %v266_v29 = vrot.slane %v1660_v21, 2  ;;  %v30_v30 = vld [vmem:[#allocation2 + $0x38] sm:$0xff]  ;;  %v421_v32 = vrot.slane %v1660_v21, 4  ;;  %v31_v35 = vld [vmem:[#allocation2 + $0x40] sm:$0x3f] }
  0x1b   :  { %v373_v31 = vrot.slane %v1662_v23, 3  ;;  %v554_v33 = vrot.slane %v1656_v19, 6  ;;  %v555_v34 = vrot.slane %v517_v24, 6  ;;  %vm264_vm2 = vcmask 1045504   ;;  %v33_v56 = vld [vmem:[#allocation2 + $0x50] sm:$0xff]  ;;  %s1606_s0 = smov 127  }
  0x1c   :  { %v400_v36 = vadd.f32 %v2983_v13, %v328_v26  ;;  %v193_v37 = vadd.f32 %v133_v28, %v1656_v19  ;;  %v83_v38 = vmul.f32 0.11128076, %v23_v25  ;;  %v1677_v39 = vmul.f32 0.036632847, %v30_v30  ;;  %s1607_s20 = smov 126   ;;  %s1608_s21 = smov 125  }
  0x1d   :  { %v1680_v40 = vsel %vm131_vm0, %v135_v22, %v136_v9  ;;  %v1682_v41 = vmul.f32 0.11128076, %v30_v30  ;;  %v1684_v42 = vmul.f32 0.21674532, %v30_v30  ;;  %v1686_v43 = vmul.f32 0.27068216, %v30_v30 }
  0x1e   :  { %v448_v44 = vadd.f32 %v2979_v11, %v400_v36  ;;  %v326_v45 = vadd.f32 %v266_v29, %v193_v37  ;;  %v132_v46 = vrot.slane %v83_v38, 1  ;;  %v519_v47 = vmul.f32 0.036632847, %v31_v35  ;;  %s1609_s22 = smov 124   ;;  %s1610_s23 = smov 123  }
  0x1f   :  { %v469_v48 = vrot.slane %v1658_v20, 5  ;;  %v556_v49 = vsel %vm553_vm1, %v554_v33, %v555_v34  ;;  %v139_v50 = vrot.slane %v1682_v41, 1  ;;  %v272_v51 = vrot.slane %v1684_v42, 2  ;;  %s1611_s24 = smov 122   ;;  %s1612_s25 = smov [#allocation5]  }
  0x20   :  { %v496_v52 = vadd.f32 %v2978_v14, %v448_v44  ;;  %v398_v53 = vadd.f32 %v373_v31, %v326_v45  ;;  %v134_v54 = vsel %vm131_vm0, %v132_v46, %v133_v28  ;;  %v375_v55 = vrot.slane %v1686_v43, 3  ;;  %v29_v45 = vld [vmem:[#allocation2 + $0x30] sm:$0xff]  ;;  %v42_v14 = vld [vmem:[#allocation2 + $0x98] sm:$0xff]  ;;  %s1533_s26 = sshll.u32 %s1612_s25, 4  ;;  %s1534_s26 = int_to_ptr.vmem [resolvable:$true] %s1533_s26 }
  0x21   :  { %v197_v57 = vadd.f32 %v139_v50, %v1677_v39  ;;  %v423_v58 = vrot.slane %v1684_v42, 4  ;;  %v560_v59 = vrot.slane %v1677_v39, 6  ;;  %v59_v60 = vmul.f32 0.036632847, %v23_v25  ;;  %s1577_s27 = scalar_lea.vmem %s1534_s26, 1536  ;;  %p1582_p9 = scmp.lt.s32.totalorder %s1534_s26, %s1534_s26 }
  0x22   :  { %v1707_v61 = vadd.f32 %v559_v27, %v496_v52  ;;  %v446_v62 = vadd.f32 %v421_v32, %v398_v53  ;;  %v561_v63 = vrot.slane %v519_v47, 6  ;;  %v216_v0 = vmul.f32 0.21674532, %v23_v25  ;;  %v34_v25 = vld [vmem:[#allocation2 + $0x58] sm:$0x3f]  ;;  %p1578_p8 = scmp.ne.s32.totalorder %s1534_s26, %s1577_s27  ;;  %p1583_p10 = scmp.lt.s32.totalorder %s1577_s27, %s1577_s27 }
  0x23   :  { %v330_v1 = vadd.f32 %v272_v51, %v197_v57  ;;  %v192_v7 = vadd.f32 %v134_v54, %v59_v60  ;;  %v1713_v8 = vmul.f32 0.036632847, %v33_v56  ;;  %v1715_v9 = vmul.f32 0.11128076, %v33_v56  ;;  %v36_v57 = vld [vmem:[#allocation2 + $0x68] sm:$0xff] }
  0x24   :  { %3014 = vst [vmem:[#allocation8_spill] sm:$0xff] %v1707_v61  ;;  %v1718_v12 = vmul.f32 0.11128076, %v1707_v61  ;;  %v494_v16 = vadd.f32 %v469_v48, %v446_v62  ;;  %v265_v17 = vrot.slane %v216_v0, 2  ;;  %v1722_v18 = vmul.f32 0.21674532, %v33_v56  ;;  %p1584_p11 = por %p1583_p10, %p1582_p9 }
  0x25   :  { %v402_v22 = vadd.f32 %v375_v55, %v330_v1  ;;  %v471_v24 = vrot.slane %v1682_v41, 5  ;;  %v142_v26 = vrot.slane %v1715_v9, 1  ;;  %v1728_v27 = vmul.f32 0.27068216, %v33_v56  ;;  %v35_v41 = vld [vmem:[#allocation2 + $0x60] sm:$0xff] }
  0x26   :  { %716 = vrot.lane.b32.xlu1 %v1718_v12, %s1606_s0  ;;  %v1732_v28 = vadd.f32 %v556_v49, %v494_v16  ;;  %v562_v30 = vsel %vm553_vm1, %v560_v59, %v561_v63  ;;  %v267_v34 = vsel %vm264_vm2, %v265_v17, %v266_v29  ;;  %v275_v35 = vrot.slane %v1722_v18, 2  ;;  %p1585_p12 = pnand %p1584_p11, %p1578_p8 }
  0x27   :  { %v450_v36 = vadd.f32 %v423_v58, %v402_v22  ;;  %v325_v37 = vadd.f32 %v267_v34, %v192_v7  ;;  %v199_v38 = vadd.f32 %v142_v26, %v1713_v8  ;;  %v376_v44 = vrot.slane %v1728_v27, 3 }
  0x28   :  { %3015 = vst [vmem:[#allocation9_spill] sm:$0xff] %v1732_v28  ;;  %v1746_v46 = vmul.f32 0.11128076, %v1732_v28  ;;  %v424_v47 = vrot.slane %v1722_v18, 4  ;;  %v520_v49 = vmul.f32 0.036632847, %v34_v25 }
  0x29   :  { %v563_v29 = vrot.slane %v1713_v8, 6  ;;  %v498_v52 = vadd.f32 %v471_v24, %v450_v36  ;;  %v397_v53 = vadd.f32 %v373_v31, %v325_v37  ;;  %v332_v54 = vadd.f32 %v275_v35, %v199_v38  ;;  %v37_v38 = vld [vmem:[#allocation2 + $0x70] sm:$0x3f] }
  0x2a   :  { %v63_v56 = vmul.f32 0.036632847, %v29_v45  ;;  %712 = vrot.lane.b32.xlu0 %v1746_v46, %s1606_s0  ;;  %v472_v60 = vrot.slane %v1715_v9, 5  ;;  %v564_v62 = vrot.slane %v520_v49, 6  ;;  %v87_v63 = vmul.f32 0.11128076, %v29_v45 }
  0x2b   :  { %v220_v0 = vmul.f32 0.21674532, %v29_v45  ;;  %v1759_v1 = vadd.f32 %v562_v30, %v498_v52  ;;  %v445_v7 = vadd.f32 %v421_v32, %v397_v53  ;;  %v404_v23 = vadd.f32 %v376_v44, %v332_v54  ;;  %v32_v53 = vld [vmem:[#allocation2 + $0x48] sm:$0xff] }
  0x2c   :  { %v1765_v31 = vmul.f32 0.036632847, %v36_v57  ;;  %v565_v16 = vsel %vm553_vm1, %v563_v29, %v564_v62  ;;  %v138_v17 = vrot.slane %v87_v63, 1  ;;  %v1770_v25 = vmul.f32 0.11128076, %v36_v57 }
  0x2d   :  { %3016 = vst [vmem:[#allocation10_spill] sm:$0xff] %v1759_v1  ;;  %v271_v22 = vrot.slane %v220_v0, 2  ;;  %v1773_v34 = vmul.f32 0.11128076, %v1759_v1  ;;  %v493_v21 = vadd.f32 %v469_v48, %v445_v7  ;;  %v452_v32 = vadd.f32 %v424_v47, %v404_v23  ;;  %v39_v0 = vld [vmem:[#allocation2 + $0x80] sm:$0xff] }
  0x2e   :  { %v1779_v30 = vmul.f32 0.21674532, %v36_v57  ;;  %v140_v36 = vsel %vm131_vm0, %v138_v17, %v139_v50  ;;  %v145_v45 = vrot.slane %v1770_v25, 1  ;;  %v1788_v49 = vmul.f32 0.27068216, %v36_v57 }
  0x2f   :  { %v273_v37 = vsel %vm264_vm2, %v271_v22, %v272_v51  ;;  %720 = vrot.lane.b32.xlu1 %v1773_v34, %s1606_s0  ;;  %v1794_v20 = vadd.f32 %v554_v33, %v493_v21  ;;  %v500_v48 = vadd.f32 %v472_v60, %v452_v32  ;;  %v196_v50 = vadd.f32 %v140_v36, %v63_v56 }
  0x30   :  { %v278_v52 = vrot.slane %v1779_v30, 2  ;;  %v201_v51 = vadd.f32 %v145_v45, %v1765_v31  ;;  %v377_v54 = vrot.slane %v1788_v49, 3  ;;  %v425_v57 = vrot.slane %v1779_v30, 4 }
  0x31   :  { %v473_v62 = vrot.slane %v1770_v25, 5  ;;  %v1806_v19 = vmul.f32 0.11128076, %v1794_v20  ;;  %v1808_v33 = vadd.f32 %v565_v16, %v500_v48  ;;  %v329_v63 = vadd.f32 %v273_v37, %v196_v50 }
  0x32   :  { %v521_v56 = vmul.f32 0.036632847, %v37_v38  ;;  %v334_v7 = vadd.f32 %v278_v52, %v201_v51  ;;  %v566_v23 = vrot.slane %v1765_v31, 6  ;;  %v65_v17 = vmul.f32 0.036632847, %v32_v53 }
  0x33   :  { %v89_v22 = vmul.f32 0.11128076, %v32_v53  ;;  %710 = vrot.lane.b32.xlu0 %v1806_v19, %s1606_s0  ;;  %v1816_v21 = vmul.f32 0.11128076, %v1808_v33  ;;  %v401_v16 = vadd.f32 %v375_v55, %v329_v63  ;;  %v222_v36 = vmul.f32 0.21674532, %v32_v53 }
  0x34   :  { %v567_v32 = vrot.slane %v521_v56, 6  ;;  %v406_v37 = vadd.f32 %v377_v54, %v334_v7  ;;  %v1822_v48 = vmul.f32 0.036632847, %v39_v0  ;;  %v1824_v50 = vmul.f32 0.11128076, %v39_v0 }
  0x35   :  { %v141_v38 = vrot.slane %v89_v22, 1  ;;  %724 = vrot.lane.b32.xlu1 %v1816_v21, %s1606_s0  ;;  %v449_v51 = vadd.f32 %v423_v58, %v401_v16  ;;  %v274_v55 = vrot.slane %v222_v36, 2  ;;  %v1833_v53 = vmul.f32 0.21674532, %v39_v0  ;;  %v40_v7 = vld [vmem:[#allocation2 + $0x88] sm:$0x3f] }
  0x36   :  { %v568_v43 = vsel %vm553_vm1, %v566_v23, %v567_v32  ;;  %v454_v63 = vadd.f32 %v425_v57, %v406_v37  ;;  %v148_v22 = vrot.slane %v1824_v50, 1  ;;  %v1841_v15 = vmul.f32 0.27068216, %v39_v0 }
  0x37   :  { %v143_v56 = vsel %vm131_vm0, %v141_v38, %v142_v26  ;;  %v497_v42 = vadd.f32 %v471_v24, %v449_v51  ;;  %v276_v16 = vsel %vm264_vm2, %v274_v55, %v275_v35  ;;  %v281_v32 = vrot.slane %v1833_v53, 2 }
  0x38   :  { %v198_v58 = vadd.f32 %v143_v56, %v65_v17  ;;  %v502_v36 = vadd.f32 %v473_v62, %v454_v63  ;;  %v203_v26 = vadd.f32 %v148_v22, %v1822_v48  ;;  %v2984_v0 = vrot.slane %v1841_v15, 3 }
  0x39   :  { %v2981_v37 = vrot.slane %v1833_v53, 4  ;;  %v1858_v24 = vadd.f32 %v560_v59, %v497_v42  ;;  %v2982_v35 = vrot.slane %v1824_v50, 5  ;;  %v522_v38 = vmul.f32 0.036632847, %v40_v7 }
  0x3a   :  { %v331_v17 = vadd.f32 %v276_v16, %v198_v58  ;;  %v1861_v51 = vadd.f32 %v568_v43, %v502_v36  ;;  %v336_v55 = vadd.f32 %v281_v32, %v203_v26  ;;  %v2980_v63 = vrot.slane %v1822_v48, 6 }
  0x3b   :  { %v67_v56 = vmul.f32 0.036632847, %v35_v41  ;;  %v1867_v11 = vmul.f32 0.11128076, %v1858_v24  ;;  %v570_v59 = vrot.slane %v522_v38, 6  ;;  %v3019_v31 = vrot.slane %v1646_v6, 3 }
  0x3c   :  { %v403_v39 = vadd.f32 %v376_v44, %v331_v17  ;;  %v91_v42 = vmul.f32 0.11128076, %v35_v41  ;;  %v1872_v58 = vmul.f32 0.11128076, %v1861_v51  ;;  %v408_v43 = vadd.f32 %v2984_v0, %v336_v55 }
  0x3d   :  { %v224_v7 = vmul.f32 0.21674532, %v35_v41  ;;  %v1876_v16 = vmul.f32 0.036632847, %v42_v14  ;;  %718 = vrot.lane.b32.xlu0 %v1867_v11, %s1606_s0  ;;  %v571_v27 = vsel %vm553_vm1, %v2980_v63, %v570_v59  ;;  %v1885_v26 = vmul.f32 0.11128076, %v42_v14 }
  0x3e   :  { %v451_v36 = vadd.f32 %v424_v47, %v403_v39  ;;  %v144_v44 = vrot.slane %v91_v42, 1  ;;  %728 = vrot.lane.b32.xlu1 %v1872_v58, %s1606_s0  ;;  %v456_v41 = vadd.f32 %v2981_v37, %v408_v43  ;;  %v1891_v38 = vmul.f32 0.21674532, %v42_v14  ;;  %v43_v39 = vld [vmem:[#allocation2 + $0xa0] sm:$0x3f] }
  0x3f   :  { %v277_v17 = vrot.slane %v224_v7, 2  ;;  %v1893_v55 = vmul.f32 0.27068216, %v42_v14  ;;  %v151_v59 = vrot.slane %v1885_v26, 1  ;;  %v475_v42 = vrot.slane %v1885_v26, 5 }
  0x40   :  { %v499_v18 = vadd.f32 %v472_v60, %v451_v36  ;;  %v146_v47 = vsel %vm131_vm0, %v144_v44, %v145_v45  ;;  %v504_v43 = vadd.f32 %v2982_v35, %v456_v41  ;;  %v284_v9 = vrot.slane %v1891_v38, 2  ;;  %v38_v60 = vld [vmem:[#allocation2 + $0x78] sm:$0xff] }
  0x41   :  { %v200_v7 = vadd.f32 %v146_v47, %v67_v56  ;;  %v279_v14 = vsel %vm264_vm2, %v277_v17, %v278_v52  ;;  %v205_v45 = vadd.f32 %v151_v59, %v1876_v16  ;;  %v379_v44 = vrot.slane %v1893_v55, 3 }
  0x42   :  { %v1910_v36 = vadd.f32 %v563_v29, %v499_v18  ;;  %v427_v63 = vrot.slane %v1891_v38, 4  ;;  %v1915_v37 = vadd.f32 %v571_v27, %v504_v43  ;;  %v523_v41 = vmul.f32 0.036632847, %v43_v39 }
  0x43   :  { %v333_v56 = vadd.f32 %v279_v14, %v200_v7  ;;  %v572_v47 = vrot.slane %v1876_v16, 6  ;;  %v338_v17 = vadd.f32 %v284_v9, %v205_v45  ;;  %v69_v35 = vmul.f32 0.036632847, %v38_v60  ;;  %v41_v14 = vld [vmem:[#allocation2 + $0x90] sm:$0xff] }
  0x44   :  { %v1919_v52 = vmul.f32 0.11128076, %v1910_v36  ;;  %v93_v8 = vmul.f32 0.11128076, %v38_v60  ;;  %v1922_v29 = vmul.f32 0.11128076, %v1915_v37 }
  0x45   :  { %v405_v18 = vadd.f32 %v377_v54, %v333_v56  ;;  %v573_v13 = vrot.slane %v523_v41, 6  ;;  %v226_v0 = vmul.f32 0.21674532, %v38_v60  ;;  %v410_v27 = vadd.f32 %v379_v44, %v338_v17 }
  0x46   :  { %722 = vrot.lane.b32.xlu0 %v1919_v52, %s1606_s0  ;;  %v147_v39 = vrot.slane %v93_v8, 1  ;;  %v61_v43 = vmul.f32 0.036632847, %v1638_v2  ;;  %v218_v7 = vmul.f32 0.21674532, %v1638_v2  ;;  %732 = vrot.lane.b32.xlu1 %v1922_v29, %s1606_s0  ;;  %v45_v8 = vld [vmem:[#allocation2 + $0xb0] sm:$0xff] }
  0x47   :  { %v453_v49 = vadd.f32 %v425_v57, %v405_v18  ;;  %v574_v54 = vsel %vm553_vm1, %v572_v47, %v573_v13  ;;  %v280_v60 = vrot.slane %v226_v0, 2  ;;  %v71_v45 = vmul.f32 0.036632847, %v41_v14 }
  0x48   :  { %v458_v56 = vadd.f32 %v427_v63, %v410_v27  ;;  %v149_v2 = vsel %vm131_vm0, %v147_v39, %v148_v22  ;;  %v194_v41 = vadd.f32 %v1680_v40, %v61_v43  ;;  %v268_v17 = vrot.slane %v218_v7, 2 }
  0x49   :  { %v501_v30 = vadd.f32 %v473_v62, %v453_v49  ;;  %v202_v57 = vadd.f32 %v149_v2, %v69_v35  ;;  %v282_v13 = vsel %vm264_vm2, %v280_v60, %v281_v32  ;;  %v95_v0 = vmul.f32 0.11128076, %v41_v14 }
  0x4a   :  { %v506_v18 = vadd.f32 %v475_v42, %v458_v56  ;;  %v270_v22 = vsel %vm264_vm2, %v268_v17, %v269_v10  ;;  %v228_v27 = vmul.f32 0.21674532, %v41_v14  ;;  %v1955_v40 = vmul.f32 0.036632847, %v45_v8  ;;  %v46_v17 = vld [vmem:[#allocation2 + $0xb8] sm:$0x3f] }
  0x4b   :  { %v1959_v25 = vadd.f32 %v566_v23, %v501_v30  ;;  %v335_v62 = vadd.f32 %v282_v13, %v202_v57  ;;  %v327_v35 = vadd.f32 %v270_v22, %v194_v41  ;;  %v150_v39 = vrot.slane %v95_v0, 1 }
  0x4c   :  { %v1961_v32 = vadd.f32 %v574_v54, %v506_v18  ;;  %v283_v43 = vrot.slane %v228_v27, 2  ;;  %v1963_v7 = vmul.f32 0.11128076, %v45_v8  ;;  %v1965_v49 = vmul.f32 0.21674532, %v45_v8  ;;  %v44_v27 = vld [vmem:[#allocation2 + $0xa8] sm:$0xff] }
  0x4d   :  { %v1968_v60 = vmul.f32 0.11128076, %v1959_v25  ;;  %v3018_v10 = vrot.slane %v1841_v15, 3  ;;  %v399_v23 = vadd.f32 %v3019_v31, %v327_v35  ;;  %v152_v56 = vsel %vm131_vm0, %v150_v39, %v151_v59 }
  0x4e   :  { %v1976_v2 = vmul.f32 0.11128076, %v1961_v32  ;;  %v204_v54 = vadd.f32 %v152_v56, %v71_v45  ;;  %v285_v41 = vsel %vm264_vm2, %v283_v43, %v284_v9  ;;  %v154_v30 = vrot.slane %v1963_v7, 1 }
  0x4f   :  { %3017 = vst [vmem:[#allocation11_spill] sm:$0xff] %v1968_v60  ;;  %v407_v14 = vadd.f32 %v3018_v10, %v335_v62  ;;  %726 = vrot.lane.b32.xlu0 %v1968_v60, %s1606_s0  ;;  %v3021_v15 = vrot.slane %v1833_v53, 4  ;;  %v3022_v6 = vrot.slane %v1644_v5, 4  ;;  %v287_v59 = vrot.slane %v1965_v49, 2 }
  0x50   :  { %3020 = vst [vmem:[#allocation12_spill] sm:$0xff] %v1976_v2  ;;  %v356_v0 = vmul.f32 0.27068216, %v45_v8  ;;  %736 = vrot.lane.b32.xlu1 %v1976_v2, %s1606_s0  ;;  %v337_v45 = vadd.f32 %v285_v41, %v204_v54  ;;  %v207_v9 = vadd.f32 %v154_v30, %v1955_v40  ;;  %v428_v18 = vrot.slane %v1965_v49, 4  ;;  %v48_v41 = vld [vmem:[#allocation2 + $0xc8] sm:$0xff] }
  0x51   :  { %v455_v57 = vadd.f32 %v3021_v15, %v407_v14  ;;  %v447_v13 = vadd.f32 %v3022_v6, %v399_v23  ;;  %v476_v22 = vrot.slane %v1963_v7, 5  ;;  %v3023_v53 = vrot.slane %v1824_v50, 5  ;;  %v49_v15 = vld [vmem:[#allocation2 + $0xd0] sm:$0x3f] }
  0x52   :  { %v3024_v5 = vrot.slane %v1642_v4, 5  ;;  %v380_v39 = vrot.slane %v356_v0, 3  ;;  %v524_v43 = vmul.f32 0.036632847, %v46_v17  ;;  %v409_v8 = vadd.f32 %v379_v44, %v337_v45 }
  0x53   :  { %v503_v62 = vadd.f32 %v3023_v53, %v455_v57  ;;  %v340_v10 = vadd.f32 %v287_v59, %v207_v9  ;;  %v575_v14 = vrot.slane %v1955_v40, 6  ;;  %v73_v31 = vmul.f32 0.036632847, %v44_v27 }
  0x54   :  { %v495_v35 = vadd.f32 %v3024_v5, %v447_v13  ;;  %v3025_v49 = vrot.slane %v1822_v48, 6  ;;  %v3026_v56 = vrot.slane %v1640_v3, 6  ;;  %v576_v54 = vrot.slane %v524_v43, 6 }
  0x55   :  { %v97_v4 = vmul.f32 0.11128076, %v44_v27  ;;  %v457_v17 = vadd.f32 %v427_v63, %v409_v8  ;;  %v412_v55 = vadd.f32 %v380_v39, %v340_v10  ;;  %v230_v44 = vmul.f32 0.21674532, %v44_v27 }
  0x56   :  { %v2001_v23 = vadd.f32 %v3025_v49, %v503_v62  ;;  %v2005_v50 = vadd.f32 %v3026_v56, %v495_v35  ;;  %v2009_v57 = vmul.f32 0.036632847, %v48_v41  ;;  %v577_v3 = vsel %vm553_vm1, %v575_v14, %v576_v54  ;;  %v51_v54 = vld [vmem:[#allocation2 + $0xe0] sm:$0xff] }
  0x57   :  { %v153_v13 = vrot.slane %v97_v4, 1  ;;  %v505_v38 = vadd.f32 %v475_v42, %v457_v17  ;;  %v460_v63 = vadd.f32 %v428_v18, %v412_v55  ;;  %v286_v0 = vrot.slane %v230_v44, 2 }
  0x58   :  { %v2012_v6 = vmul.f32 0.11128076, %v2001_v23  ;;  %v2015_v48 = vmul.f32 0.11128076, %v2005_v50  ;;  %v2022_v45 = vmul.f32 0.11128076, %v48_v41 }
  0x59   :  { %v155_v9 = vsel %vm131_vm0, %v153_v13, %v154_v30  ;;  %v2029_v27 = vmul.f32 0.21674532, %v48_v41  ;;  %v357_v53 = vmul.f32 0.27068216, %v48_v41  ;;  %v525_v62 = vmul.f32 0.036632847, %v49_v15 }
  0x5a   :  { %3027 = vst [vmem:[#allocation13_spill] sm:$0xff] %v2012_v6  ;;  %730 = vrot.lane.b32.xlu0 %v2012_v6, %s1606_s0  ;;  %714 = vrot.lane.b32.xlu1 %v2015_v48, %s1606_s0  ;;  %v2033_v26 = vadd.f32 %v572_v47, %v505_v38  ;;  %v508_v42 = vadd.f32 %v476_v22, %v460_v63  ;;  %v157_v43 = vrot.slane %v2022_v45, 1  ;;  %v47_v30 = vld [vmem:[#allocation2 + $0xc0] sm:$0xff]  ;;  %v2054_v38 = vmul.f32 0.036632847, %v51_v54 }
  0x5b   :  { %v206_v5 = vadd.f32 %v155_v9, %v73_v31  ;;  %v288_v35 = vsel %vm264_vm2, %v286_v0, %v287_v59  ;;  %v290_v8 = vrot.slane %v2029_v27, 2  ;;  %v381_v10 = vrot.slane %v357_v53, 3 }
  0x5c   :  { %v2041_v49 = vmul.f32 0.11128076, %v2033_v26  ;;  %v2043_v56 = vadd.f32 %v577_v3, %v508_v42  ;;  %v429_v47 = vrot.slane %v2029_v27, 4  ;;  %v209_v4 = vadd.f32 %v157_v43, %v2009_v57 }
  0x5d   :  { %v339_v16 = vadd.f32 %v288_v35, %v206_v5  ;;  %v477_v31 = vrot.slane %v2022_v45, 5  ;;  %v2986_v59 = vrot.slane %v2009_v57, 6  ;;  %v579_v41 = vrot.slane %v525_v62, 6  ;;  %v52_v62 = vld [vmem:[#allocation2 + $0xe8] sm:$0x3f] }
  0x5e   :  { %3028 = vst [vmem:[#allocation14_spill] sm:$0xff] %v2041_v49  ;;  %734 = vrot.lane.b32.xlu0 %v2041_v49, %s1606_s0  ;;  %v2052_v17 = vmul.f32 0.11128076, %v2043_v56  ;;  %v99_v44 = vmul.f32 0.11128076, %v47_v30  ;;  %v342_v3 = vadd.f32 %v290_v8, %v209_v4  ;;  %vm1504_vm3 = vcmask 43008  }
  0x5f   :  { %v411_v55 = vadd.f32 %v380_v39, %v339_v16  ;;  %v232_v15 = vmul.f32 0.21674532, %v47_v30  ;;  %v75_v13 = vmul.f32 0.036632847, %v47_v30  ;;  %v2056_v63 = vmul.f32 0.11128076, %v51_v54 }
  0x60   :  { %3029 = vst [vmem:[#allocation15_spill] sm:$0xff] %v2052_v17  ;;  %740 = vrot.lane.b32.xlu1 %v2052_v17, %s1606_s0  ;;  %v156_v45 = vrot.slane %v99_v44, 1  ;;  %v2060_v27 = vmul.f32 0.21674532, %v51_v54  ;;  %v414_v53 = vadd.f32 %v381_v10, %v342_v3  ;;  %v580_v39 = vsel %vm553_vm1, %v2986_v59, %v579_v41  ;;  %v55_v59 = vld [vmem:[#allocation2 + $0x100] sm:$0x3f] }
  0x61   :  { %v459_v0 = vadd.f32 %v428_v18, %v411_v55  ;;  %v289_v9 = vrot.slane %v232_v15, 2  ;;  %v160_v42 = vrot.slane %v2056_v63, 1  ;;  %v2066_v5 = vmul.f32 0.27068216, %v51_v54  ;;  %v50_v15 = vld [vmem:[#allocation2 + $0xd8] sm:$0xff] }
  0x62   :  { %v158_v30 = vsel %vm131_vm0, %v156_v45, %v157_v43  ;;  %v293_v16 = vrot.slane %v2060_v27, 2  ;;  %v462_v4 = vadd.f32 %v429_v47, %v414_v53  ;;  %v430_v7 = vrot.slane %v2060_v27, 4 }
  0x63   :  { %v507_v35 = vadd.f32 %v476_v22, %v459_v0  ;;  %v291_v18 = vsel %vm264_vm2, %v289_v9, %v290_v8  ;;  %v208_v55 = vadd.f32 %v158_v30, %v75_v13  ;;  %v211_v44 = vadd.f32 %v160_v42, %v2054_v38  ;;  %v54_v9 = vld [vmem:[#allocation2 + $0xf8] sm:$0xff] }
  0x64   :  { %v382_v41 = vrot.slane %v2066_v5, 3  ;;  %v526_v22 = vmul.f32 0.036632847, %v52_v62  ;;  %v2985_v43 = vrot.slane %v2054_v38, 6  ;;  %v510_v3 = vadd.f32 %v477_v31, %v462_v4 }
  0x65   :  { %v2077_v54 = vadd.f32 %v575_v14, %v507_v35  ;;  %v341_v8 = vadd.f32 %v291_v18, %v208_v55  ;;  %v344_v0 = vadd.f32 %v293_v16, %v211_v44  ;;  %v77_v45 = vmul.f32 0.036632847, %v50_v15 }
  0x66   :  { %v478_v53 = vrot.slane %v2056_v63, 5  ;;  %v582_v5 = vrot.slane %v526_v22, 6  ;;  %v101_v30 = vmul.f32 0.11128076, %v50_v15  ;;  %v2085_v40 = vadd.f32 %v580_v39, %v510_v3 }
  0x67   :  { %v2082_v13 = vmul.f32 0.11128076, %v2077_v54  ;;  %v413_v14 = vadd.f32 %v381_v10, %v341_v8  ;;  %v416_v35 = vadd.f32 %v382_v41, %v344_v0  ;;  %v234_v27 = vmul.f32 0.21674532, %v50_v15 }
  0x68   :  { %v583_v62 = vsel %vm553_vm1, %v2985_v43, %v582_v5  ;;  %v159_v18 = vrot.slane %v101_v30, 1  ;;  %v2092_v4 = vmul.f32 0.036632847, %v54_v9  ;;  %v2094_v55 = vmul.f32 0.11128076, %v54_v9 }
  0x69   :  { %3030 = vst [vmem:[#allocation16_spill] sm:$0xff] %v2082_v13  ;;  %738 = vrot.lane.b32.xlu0 %v2082_v13, %s1606_s0  ;;  %v2097_v63 = vmul.f32 0.11128076, %v2085_v40  ;;  %v461_v39 = vadd.f32 %v429_v47, %v413_v14  ;;  %v464_v44 = vadd.f32 %v430_v7, %v416_v35  ;;  %v292_v10 = vrot.slane %v234_v27, 2  ;;  %v53_v27 = vld [vmem:[#allocation2 + $0xf0] sm:$0xff] }
  0x6a   :  { %v161_v15 = vsel %vm131_vm0, %v159_v18, %v160_v42  ;;  %v163_v22 = vrot.slane %v2094_v55, 1  ;;  %v2101_v3 = vmul.f32 0.21674532, %v54_v9  ;;  %v359_v8 = vmul.f32 0.27068216, %v54_v9 }
  0x6b   :  { %3031 = vst [vmem:[#allocation17_spill] sm:$0xff] %v2097_v63  ;;  %744 = vrot.lane.b32.xlu1 %v2097_v63, %s1606_s0  ;;  %v509_v0 = vadd.f32 %v477_v31, %v461_v39  ;;  %v512_v5 = vadd.f32 %v478_v53, %v464_v44  ;;  %v210_v30 = vadd.f32 %v161_v15, %v77_v45  ;;  %v3032_v18 = vrot.slane %v2009_v57, 6  ;;  %v57_v15 = vld [vmem:[#allocation2 + $0x110] sm:$0xff] }
  0x6c   :  { %v294_v43 = vsel %vm264_vm2, %v292_v10, %v293_v16  ;;  %v213_v47 = vadd.f32 %v163_v22, %v2092_v4  ;;  %v296_v14 = vrot.slane %v2101_v3, 2  ;;  %v383_v35 = vrot.slane %v359_v8, 3 }
  0x6d   :  { %v431_v42 = vrot.slane %v2101_v3, 4  ;;  %v2111_v9 = vadd.f32 %v3032_v18, %v509_v0  ;;  %v2113_v13 = vadd.f32 %v583_v62, %v512_v5  ;;  %v343_v31 = vadd.f32 %v294_v43, %v210_v30 }
  0x6e   :  { %v479_v45 = vrot.slane %v2094_v55, 5  ;;  %v346_v39 = vadd.f32 %v296_v14, %v213_v47  ;;  %v527_v16 = vmul.f32 0.036632847, %v55_v59  ;;  %v584_v44 = vrot.slane %v2092_v4, 6 }
  0x6f   :  { %v79_v10 = vmul.f32 0.036632847, %v53_v27  ;;  %v2118_v8 = vmul.f32 0.11128076, %v2111_v9  ;;  %v2121_v3 = vmul.f32 0.11128076, %v2113_v13  ;;  %v415_v57 = vadd.f32 %v382_v41, %v343_v31 }
  0x70   :  { %v103_v0 = vmul.f32 0.11128076, %v53_v27  ;;  %v418_v18 = vadd.f32 %v383_v35, %v346_v39  ;;  %v585_v62 = vrot.slane %v527_v16, 6  ;;  %v236_v5 = vmul.f32 0.21674532, %v53_v27 }
  0x71   :  { %3033 = vst [vmem:[#allocation18_spill] sm:$0xff] %v2118_v8  ;;  %3034 = vst [vmem:[#allocation19_spill] sm:$0xff] %v2121_v3  ;;  %v82_v43 = vmul.f32 0.036632847, %v57_v15  ;;  %742 = vrot.lane.b32.xlu0 %v2118_v8, %s1606_s0  ;;  %748 = vrot.lane.b32.xlu1 %v2121_v3, %s1606_s0  ;;  %v463_v59 = vadd.f32 %v430_v7, %v415_v57  ;;  %v106_v55 = vmul.f32 0.11128076, %v57_v15 }
  0x72   :  { %v162_v4 = vrot.slane %v103_v0, 1  ;;  %v239_v30 = vmul.f32 0.21674532, %v57_v15  ;;  %v466_v47 = vadd.f32 %v431_v42, %v418_v18  ;;  %v586_v63 = vsel %vm553_vm1, %v584_v44, %v585_v62  ;;  %v58_v27 = vld [vmem:[#allocation2 + $0x118] sm:$0x3f]  ;;  %v56_v3 = vld [vmem:[#allocation2 + $0x108] sm:$0xff] }
  0x73   :  { %v295_v49 = vrot.slane %v236_v5, 2  ;;  %v360_v41 = vmul.f32 0.27068216, %v57_v15  ;;  %v511_v31 = vadd.f32 %v478_v53, %v463_v59  ;;  %v166_v16 = vrot.slane %v106_v55, 1 }
  0x74   :  { %v164_v39 = vsel %vm131_vm0, %v162_v4, %v163_v22  ;;  %v299_v17 = vrot.slane %v239_v30, 2  ;;  %v514_v6 = vadd.f32 %v479_v45, %v466_v47  ;;  %v3035_v7 = vrot.slane %v2054_v38, 6 }
  0x75   :  { %v212_v8 = vadd.f32 %v164_v39, %v79_v10  ;;  %v297_v2 = vsel %vm264_vm2, %v295_v49, %v296_v14  ;;  %v215_v0 = vadd.f32 %v166_v16, %v82_v43  ;;  %v384_v18 = vrot.slane %v360_v41, 3 }
  0x76   :  { %v2132_v57 = vadd.f32 %v3035_v7, %v511_v31  ;;  %v432_v62 = vrot.slane %v239_v30, 4  ;;  %v2134_v5 = vadd.f32 %v586_v63, %v514_v6  ;;  %v528_v15 = vmul.f32 0.036632847, %v58_v27 }
  0x77   :  { %v345_v53 = vadd.f32 %v297_v2, %v212_v8  ;;  %v587_v22 = vrot.slane %v82_v43, 6  ;;  %v348_v4 = vadd.f32 %v299_v17, %v215_v0  ;;  %v81_v10 = vmul.f32 0.036632847, %v56_v3 }
  0x78   :  { %v2137_v59 = vmul.f32 0.11128076, %v2132_v57  ;;  %v105_v47 = vmul.f32 0.11128076, %v56_v3  ;;  %v2140_v49 = vmul.f32 0.11128076, %v2134_v5 }
  0x79   :  { %v417_v38 = vadd.f32 %v383_v35, %v345_v53  ;;  %v588_v14 = vrot.slane %v528_v15, 6  ;;  %v238_v31 = vmul.f32 0.21674532, %v56_v3  ;;  %v420_v6 = vadd.f32 %v384_v18, %v348_v4 }
  0x7a   :  { %3036 = vst [vmem:[#allocation20_spill] sm:$0xff] %v2137_v59  ;;  %3037 = vst [vmem:[#allocation21_spill] sm:$0xff] %v2140_v49  ;;  %746 = vrot.lane.b32.xlu0 %v2137_v59, %s1606_s0  ;;  %v480_v63 = vrot.slane %v106_v55, 5  ;;  %v165_v2 = vrot.slane %v105_v47, 1  ;;  %752 = vrot.lane.b32.xlu1 %v2140_v49, %s1606_s0  ;;  %v2189_v47 = vmul.f32 0.21674532, %v2005_v50 }
  0x7b   :  { %v465_v8 = vadd.f32 %v431_v42, %v417_v38  ;;  %v298_v43 = vrot.slane %v238_v31, 2  ;;  %v468_v30 = vadd.f32 %v432_v62, %v420_v6  ;;  %v589_v27 = vsel %vm553_vm1, %v587_v22, %v588_v14 }
  0x7c   :  { %v167_v41 = vsel %vm131_vm0, %v165_v2, %v166_v16  ;;  %v2194_v38 = vmul.f32 0.21674532, %v1808_v33  ;;  %v2199_v14 = vmul.f32 0.21674532, %v1858_v24  ;;  %v2204_v31 = vmul.f32 0.21674532, %v1861_v51 }
  0x7d   :  { %v513_v39 = vadd.f32 %v479_v45, %v465_v8  ;;  %v214_v35 = vadd.f32 %v167_v41, %v81_v10  ;;  %v300_v3 = vsel %vm264_vm2, %v298_v43, %v299_v17  ;;  %v516_v7 = vadd.f32 %v480_v63, %v468_v30 }
  0x7e   :  { %v2164_v17 = vmul.f32 0.21674532, %v1732_v28  ;;  %v2209_v6 = vmul.f32 0.21674532, %v1910_v36  ;;  %v2219_v2 = vmul.f32 0.21674532, %v1959_v25 }
  0x7f   :  { %v2149_v0 = vadd.f32 %v584_v44, %v513_v39  ;;  %v347_v53 = vadd.f32 %v300_v3, %v214_v35  ;;  %v2151_v55 = vadd.f32 %v589_v27, %v516_v7  ;;  %v2224_v8 = vmul.f32 0.21674532, %v1961_v32 }
  0x80   :  { %v2229_v43 = vmul.f32 0.21674532, %v2001_v23  ;;  %v2234_v30 = vmul.f32 0.21674532, %v2043_v56  ;;  %v2239_v41 = vmul.f32 0.21674532, %v2033_v26 }
  0x81   :  { %v2154_v15 = vmul.f32 0.11128076, %v2149_v0  ;;  %v419_v42 = vadd.f32 %v384_v18, %v347_v53  ;;  %v2157_v4 = vmul.f32 0.11128076, %v2151_v55  ;;  %v2171_v18 = vmul.f32 0.21674532, %v1707_v61 }
  0x82   :  { %v2244_v39 = vmul.f32 0.21674532, %v2085_v40  ;;  %v2249_v27 = vmul.f32 0.21674532, %v2077_v54  ;;  %v2254_v35 = vmul.f32 0.21674532, %v2113_v13 }
  0x83   :  { %3038 = vst [vmem:[#allocation22_spill] sm:$0xff] %v2154_v15  ;;  %3039 = vst [vmem:[#allocation23_spill] sm:$0xff] %v2157_v4  ;;  %750 = vrot.lane.b32.xlu0 %v2154_v15, %s1606_s0  ;;  %v467_v45 = vadd.f32 %v432_v62, %v419_v42  ;;  %756 = vrot.lane.b32.xlu1 %v2157_v4, %s1606_s0  ;;  %v2179_v62 = vmul.f32 0.21674532, %v1794_v20  ;;  %v2259_v3 = vmul.f32 0.21674532, %v2111_v9 }
  0x84   :  { %v2264_v7 = vmul.f32 0.21674532, %v2134_v5  ;;  %v2269_v53 = vmul.f32 0.21674532, %v2132_v57  ;;  %v2274_v42 = vmul.f32 0.21674532, %v2151_v55 }
  0x85   :  { %v515_v44 = vadd.f32 %v480_v63, %v467_v45  ;;  %v2214_v63 = vmul.f32 0.21674532, %v1915_v37  ;;  %v2279_v45 = vmul.f32 0.21674532, %v2149_v0  ;;  %v953_v4 = vmul.f32 0.27068216, %v1707_v61 }
  0x86   :  { %v952_v60 = vmul.f32 0.27068216, %v2005_v50  ;;  %vm1502_vm4 = vcmask 48133  }
  0x87   :  { %v2166_v16 = vadd.f32 %v587_v22, %v515_v44  ;;  %856 = vrot.lane.b32.xlu1 %v2164_v17, %s1607_s20  ;;  %v2184_v22 = vmul.f32 0.21674532, %v1759_v1  ;;  %v951_v44 = vmul.f32 0.27068216, %v1732_v28  ;;  %v950_v28 = vmul.f32 0.27068216, %v1794_v20 }
  0x89   :  { %v2174_v10 = vmul.f32 0.11128076, %v2166_v16  ;;  %v2289_v15 = vmul.f32 0.21674532, %v2166_v16 }
  0x8b   :  { %3040 = vst [vmem:[#allocation24_spill] sm:$0xff] %v2174_v10  ;;  %754 = vrot.lane.b32.xlu0 %v2174_v10, %s1606_s0  ;;  %860 = vrot.lane.b32.xlu1 %v2171_v18, %s1607_s20 }
  0x8f   :  { %854 = vrot.lane.b32.xlu0 %v2179_v62, %s1607_s20  ;;  %864 = vrot.lane.b32.xlu1 %v2184_v22, %s1607_s20 }
  0x93   :  { %858 = vrot.lane.b32.xlu0 %v2189_v47, %s1607_s20  ;;  %868 = vrot.lane.b32.xlu1 %v2194_v38, %s1607_s20 }
  0x97   :  { %862 = vrot.lane.b32.xlu0 %v2199_v14, %s1607_s20  ;;  %872 = vrot.lane.b32.xlu1 %v2204_v31, %s1607_s20 }
  0x98   :  { %v2284_v10 = vpop.permute.xlu1 %716 }
  0x99   :  { %3041 = vst [vmem:[#allocation25_spill] sm:$0xff] %v2284_v10  ;;  %v955_v10 = vmul.f32 0.27068216, %v1759_v1 }
  0x9b   :  { %866 = vrot.lane.b32.xlu0 %v2209_v6, %s1607_s20  ;;  %876 = vrot.lane.b32.xlu1 %v2214_v63, %s1607_s20 }
  0x9c   :  { %v2298_v49 = vpop.permute.xlu0 %712 }
  0x9d   :  { %3043 = vst [vmem:[#allocation27_spill] sm:$0xff] %v2298_v49  ;;  %v954_v49 = vmul.f32 0.27068216, %v1858_v24 }
  0x9f   :  { %870 = vrot.lane.b32.xlu0 %v2219_v2, %s1607_s20  ;;  %880 = vrot.lane.b32.xlu1 %v2224_v8, %s1607_s20 }
  0xa1   :  { %v2293_v59 = vpop.permute.xlu1 %720 }
  0xa2   :  { %3042 = vst [vmem:[#allocation26_spill] sm:$0xff] %v2293_v59 }
  0xa3   :  { %874 = vrot.lane.b32.xlu0 %v2229_v43, %s1607_s20  ;;  %884 = vrot.lane.b32.xlu1 %v2234_v30, %s1607_s20 }
  0xa5   :  { %v2308_v61 = vpop.permute.xlu0 %710 }
  0xa6   :  { %3045 = vst [vmem:[#allocation29_spill] sm:$0xff] %v2308_v61 }
  0xa7   :  { %878 = vrot.lane.b32.xlu0 %v2239_v41, %s1607_s20  ;;  %888 = vrot.lane.b32.xlu1 %v2244_v39, %s1607_s20  ;;  %v2306_v59 = vpop.permute.xlu1 %724 }
  0xa8   :  { %3044 = vst [vmem:[#allocation28_spill] sm:$0xff] %v2306_v59  ;;  %v961_v59 = vmul.f32 0.27068216, %v1915_v37 }
  0xab   :  { %882 = vrot.lane.b32.xlu0 %v2249_v27, %s1607_s20  ;;  %892 = vrot.lane.b32.xlu1 %v2254_v35, %s1607_s20 }
  0xaf   :  { %886 = vrot.lane.b32.xlu0 %v2259_v3, %s1607_s20  ;;  %896 = vrot.lane.b32.xlu1 %v2264_v7, %s1607_s20 }
  0xb0   :  { %v2314_v1 = vpop.permute.xlu1 %728 }
  0xb1   :  { %3046 = vst [vmem:[#allocation30_spill] sm:$0xff] %v2314_v1 }
  0xb3   :  { %890 = vrot.lane.b32.xlu0 %v2269_v53, %s1607_s20  ;;  %900 = vrot.lane.b32.xlu1 %v2274_v42, %s1607_s20 }
  0xb7   :  { %894 = vrot.lane.b32.xlu0 %v2279_v45, %s1607_s20  ;;  %1000 = vrot.lane.b32.xlu1 %v951_v44, %s1608_s21  ;;  %v957_v44 = vmul.f32 0.27068216, %v1808_v33 }
  0xb8   :  { %v2326_v61 = vpop.permute.xlu1 %732 }
  0xb9   :  { %3048 = vst [vmem:[#allocation32_spill] sm:$0xff] %v2326_v61  ;;  %v967_v61 = vmul.f32 0.27068216, %v2085_v40 }
  0xbb   :  { %898 = vrot.lane.b32.xlu0 %v2289_v15, %s1607_s20  ;;  %1004 = vrot.lane.b32.xlu1 %v953_v4, %s1608_s21  ;;  %v959_v4 = vmul.f32 0.27068216, %v1861_v51 }
  0xbf   :  { %998 = vrot.lane.b32.xlu0 %v950_v28, %s1608_s21  ;;  %1008 = vrot.lane.b32.xlu1 %v955_v10, %s1608_s21  ;;  %v956_v28 = vmul.f32 0.27068216, %v1910_v36  ;;  %v2318_v10 = vpop.permute.xlu0 %718 }
  0xc0   :  { %3047 = vst [vmem:[#allocation31_spill] sm:$0xff] %v2318_v10 }
  0xc2   :  { %v2334_v10 = vpop.permute.xlu1 %736 }
  0xc3   :  { %1002 = vrot.lane.b32.xlu0 %v952_v60, %s1608_s21  ;;  %1012 = vrot.lane.b32.xlu1 %v957_v44, %s1608_s21  ;;  %v958_v60 = vmul.f32 0.27068216, %v1959_v25  ;;  %v963_v44 = vmul.f32 0.27068216, %v1961_v32  ;;  %v2328_v1 = vpop.permute.xlu0 %722  ;;  %3050 = vst [vmem:[#allocation34_spill] sm:$0xff] %v2334_v10 }
  0xc4   :  { %3049 = vst [vmem:[#allocation33_spill] sm:$0xff] %v2328_v1 }
  0xc7   :  { %1006 = vrot.lane.b32.xlu0 %v954_v49, %s1608_s21  ;;  %1016 = vrot.lane.b32.xlu1 %v959_v4, %s1608_s21  ;;  %v960_v49 = vmul.f32 0.27068216, %v2001_v23  ;;  %v965_v4 = vmul.f32 0.27068216, %v2043_v56 }
  0xcb   :  { %1010 = vrot.lane.b32.xlu0 %v956_v28, %s1608_s21  ;;  %1020 = vrot.lane.b32.xlu1 %v961_v59, %s1608_s21  ;;  %v962_v59 = vmul.f32 0.27068216, %v2033_v26  ;;  %v2338_v28 = vpop.permute.xlu0 %726 }
  0xcc   :  { %3051 = vst [vmem:[#allocation35_spill] sm:$0xff] %v2338_v28  ;;  %v2346_v1 = vpop.permute.xlu1 %714 }
  0xcd   :  { %3052 = vst [vmem:[#allocation36_spill] sm:$0xff] %v2346_v1 }
  0xcf   :  { %1014 = vrot.lane.b32.xlu0 %v958_v60, %s1608_s21  ;;  %1024 = vrot.lane.b32.xlu1 %v963_v44, %s1608_s21  ;;  %v964_v60 = vmul.f32 0.27068216, %v2077_v54  ;;  %v969_v44 = vmul.f32 0.27068216, %v2113_v13  ;;  %v2348_v10 = vpop.permute.xlu0 %730 }
  0xd0   :  { %3053 = vst [vmem:[#allocation37_spill] sm:$0xff] %v2348_v10  ;;  %v973_v10 = vmul.f32 0.27068216, %v2151_v55 }
  0xd2   :  { %v2354_v28 = vpop.permute.xlu1 %740 }
  0xd3   :  { %1018 = vrot.lane.b32.xlu0 %v960_v49, %s1608_s21  ;;  %1028 = vrot.lane.b32.xlu1 %v965_v4, %s1608_s21  ;;  %v966_v49 = vmul.f32 0.27068216, %v2111_v9  ;;  %v971_v4 = vmul.f32 0.27068216, %v2134_v5  ;;  %3054 = vst [vmem:[#allocation38_spill] sm:$0xff] %v2354_v28 }
  0xd7   :  { %1022 = vrot.lane.b32.xlu0 %v962_v59, %s1608_s21  ;;  %1032 = vrot.lane.b32.xlu1 %v967_v61, %s1608_s21  ;;  %v968_v61 = vmul.f32 0.27068216, %v2132_v57  ;;  %v2358_v59 = vpop.permute.xlu0 %734 }
  0xd8   :  { %3055 = vst [vmem:[#allocation39_spill] sm:$0xff] %v2358_v59 }
  0xdb   :  { %1026 = vrot.lane.b32.xlu0 %v964_v60, %s1608_s21  ;;  %1036 = vrot.lane.b32.xlu1 %v969_v44, %s1608_s21  ;;  %v970_v60 = vmul.f32 0.27068216, %v2149_v0  ;;  %v2367_v1 = vpop.permute.xlu0 %738 }
  0xdc   :  { %3057 = vst [vmem:[#allocation41_spill] sm:$0xff] %v2367_v1 }
  0xdd   :  { %v2365_v44 = vpop.permute.xlu1 %744 }
  0xde   :  { %3056 = vst [vmem:[#allocation40_spill] sm:$0xff] %v2365_v44 }
  0xdf   :  { %1030 = vrot.lane.b32.xlu0 %v966_v49, %s1608_s21  ;;  %1040 = vrot.lane.b32.xlu1 %v971_v4, %s1608_s21  ;;  %v972_v49 = vmul.f32 0.27068216, %v2166_v16 }
  0xe3   :  { %1034 = vrot.lane.b32.xlu0 %v968_v61, %s1608_s21  ;;  %1044 = vrot.lane.b32.xlu1 %v973_v10, %s1608_s21  ;;  %v2373_v4 = vpop.permute.xlu1 %748  ;;  %v2376_v61 = vpop.permute.xlu0 %742 }
  0xe4   :  { %3058 = vst [vmem:[#allocation42_spill] sm:$0xff] %v2373_v4  ;;  %3059 = vst [vmem:[#allocation43_spill] sm:$0xff] %v2376_v61 }
  0xe7   :  { %1038 = vrot.lane.b32.xlu0 %v970_v60, %s1608_s21  ;;  %1096 = vrot.lane.b32.xlu1 %v2164_v17, %s1609_s22 }
  0xeb   :  { %1042 = vrot.lane.b32.xlu0 %v972_v49, %s1608_s21  ;;  %1100 = vrot.lane.b32.xlu1 %v2171_v18, %s1609_s22 }
  0xec   :  { %v2384_v10 = vpop.permute.xlu1 %752  ;;  %v2386_v60 = vpop.permute.xlu0 %746 }
  0xed   :  { %3060 = vst [vmem:[#allocation44_spill] sm:$0xff] %v2384_v10  ;;  %3061 = vst [vmem:[#allocation45_spill] sm:$0xff] %v2386_v60  ;;  %v3081_v10 = vld [vmem:[#allocation18_spill] sm:$0xff] }
  0xef   :  { %1094 = vrot.lane.b32.xlu0 %v2179_v62, %s1609_s22  ;;  %1104 = vrot.lane.b32.xlu1 %v2184_v22, %s1609_s22 }
  0xf3   :  { %1098 = vrot.lane.b32.xlu0 %v2189_v47, %s1609_s22  ;;  %1108 = vrot.lane.b32.xlu1 %v2194_v38, %s1609_s22 }
  0xf5   :  { %v2392_v17 = vpop.permute.xlu1 %756  ;;  %v2396_v18 = vpop.permute.xlu0 %750 }
  0xf6   :  { %3062 = vst [vmem:[#allocation46_spill] sm:$0xff] %v2396_v18 }
  0xf7   :  { %1102 = vrot.lane.b32.xlu0 %v2199_v14, %s1609_s22  ;;  %1112 = vrot.lane.b32.xlu1 %v2204_v31, %s1609_s22 }
  0xf9   :  { %v2400_v62 = vpop.permute.xlu1 %856 }
  0xfb   :  { %1106 = vrot.lane.b32.xlu0 %v2209_v6, %s1609_s22  ;;  %1116 = vrot.lane.b32.xlu1 %v2214_v63, %s1609_s22 }
  0xfd   :  { %v2406_v22 = vpop.permute.xlu0 %754  ;;  %v2408_v47 = vpop.permute.xlu1 %860 }
  0xff   :  { %1110 = vrot.lane.b32.xlu0 %v2219_v2, %s1609_s22  ;;  %1120 = vrot.lane.b32.xlu1 %v2224_v8, %s1609_s22 }
 0x101   :  { %v2414_v38 = vpop.permute.xlu0 %854  ;;  %v2416_v14 = vpop.permute.xlu1 %864 }
 0x103   :  { %1114 = vrot.lane.b32.xlu0 %v2229_v43, %s1609_s22  ;;  %1124 = vrot.lane.b32.xlu1 %v2234_v30, %s1609_s22 }
 0x105   :  { %v2422_v31 = vpop.permute.xlu0 %858  ;;  %v2424_v6 = vpop.permute.xlu1 %868 }
 0x107   :  { %1118 = vrot.lane.b32.xlu0 %v2239_v41, %s1609_s22  ;;  %1128 = vrot.lane.b32.xlu1 %v2244_v39, %s1609_s22 }
 0x109   :  { %v2430_v63 = vpop.permute.xlu0 %862  ;;  %v2432_v2 = vpop.permute.xlu1 %872 }
 0x10b   :  { %1122 = vrot.lane.b32.xlu0 %v2249_v27, %s1609_s22  ;;  %1132 = vrot.lane.b32.xlu1 %v2254_v35, %s1609_s22 }
 0x10d   :  { %v2438_v8 = vpop.permute.xlu0 %866  ;;  %v2440_v43 = vpop.permute.xlu1 %876 }
 0x10f   :  { %1126 = vrot.lane.b32.xlu0 %v2259_v3, %s1609_s22  ;;  %1136 = vrot.lane.b32.xlu1 %v2264_v7, %s1609_s22 }
 0x111   :  { %v2446_v30 = vpop.permute.xlu0 %870  ;;  %v2448_v41 = vpop.permute.xlu1 %880 }
 0x113   :  { %1130 = vrot.lane.b32.xlu0 %v2269_v53, %s1609_s22  ;;  %1140 = vrot.lane.b32.xlu1 %v2274_v42, %s1609_s22 }
 0x115   :  { %v2454_v39 = vpop.permute.xlu0 %874  ;;  %v2456_v27 = vpop.permute.xlu1 %884 }
 0x116   :  { %3063 = vst [vmem:[#allocation47_spill] sm:$0xff] %v2454_v39  ;;  %3064 = vst [vmem:[#allocation48_spill] sm:$0xff] %v2456_v27 }
 0x117   :  { %1134 = vrot.lane.b32.xlu0 %v2279_v45, %s1609_s22  ;;  %1192 = vrot.lane.b32.xlu1 %v1746_v46, %s1610_s23  ;;  %v3073_v45 = vld [vmem:[#allocation11_spill] sm:$0xff] }
 0x119   :  { %v2462_v35 = vpop.permute.xlu0 %878  ;;  %v2464_v3 = vpop.permute.xlu1 %888 }
 0x11a   :  { %3065 = vst [vmem:[#allocation49_spill] sm:$0xff] %v2462_v35  ;;  %3066 = vst [vmem:[#allocation50_spill] sm:$0xff] %v2464_v3  ;;  %v3094_v35 = vld [vmem:[#allocation24_spill] sm:$0xff] }
 0x11b   :  { %1138 = vrot.lane.b32.xlu0 %v2289_v15, %s1609_s22  ;;  %1196 = vrot.lane.b32.xlu1 %v1718_v12, %s1610_s23 }
 0x11d   :  { %v2470_v7 = vpop.permute.xlu0 %882  ;;  %v2472_v53 = vpop.permute.xlu1 %892 }
 0x11e   :  { %3067 = vst [vmem:[#allocation51_spill] sm:$0xff] %v2470_v7  ;;  %3068 = vst [vmem:[#allocation52_spill] sm:$0xff] %v2472_v53  ;;  %v3085_v53 = vld [vmem:[#allocation20_spill] sm:$0xff]  ;;  %v3088_v7 = vld [vmem:[#allocation9_spill] sm:$0xff] }
 0x11f   :  { %1190 = vrot.lane.b32.xlu0 %v1806_v19, %s1610_s23  ;;  %1200 = vrot.lane.b32.xlu1 %v1773_v34, %s1610_s23  ;;  %v2553_v4 = vmul.f32 0.036632847, %v3088_v7  ;;  %v2573_v7 = vmul.f32 0.036632847, %v1794_v20  ;;  %v2592_v20 = vmul.f32 0.036632847, %v1808_v33 }
 0x120   :  { %v2613_v33 = vmul.f32 0.036632847, %v1910_v36  ;;  %v2630_v36 = vmul.f32 0.036632847, %v1961_v32  ;;  %v2653_v32 = vmul.f32 0.036632847, %v2033_v26 }
 0x121   :  { %v2478_v46 = vpop.permute.xlu0 %886  ;;  %v2480_v42 = vpop.permute.xlu1 %896  ;;  %v2672_v26 = vmul.f32 0.036632847, %v2113_v13  ;;  %v2695_v13 = vmul.f32 0.036632847, %v2132_v57  ;;  %v660_v57 = vmul.f32 0.036632847, %v2166_v16 }
 0x122   :  { %3069 = vst [vmem:[#allocation53_spill] sm:$0xff] %v2478_v46  ;;  %3070 = vst [vmem:[#allocation54_spill] sm:$0xff] %v2480_v42  ;;  %v3079_v42 = vld [vmem:[#allocation16_spill] sm:$0xff] }
 0x123   :  { %1194 = vrot.lane.b32.xlu0 %v2015_v48, %s1610_s23  ;;  %1204 = vrot.lane.b32.xlu1 %v1816_v21, %s1610_s23  ;;  %3107 = vst [vmem:[#allocation57_spill] sm:$0xff] %v2672_v26  ;;  %3111 = vst [vmem:[#allocation61_spill] sm:$0xff] %v2695_v13 }
 0x125   :  { %v2486_v12 = vpop.permute.xlu0 %890  ;;  %v2488_v15 = vpop.permute.xlu1 %900 }
 0x126   :  { %3071 = vst [vmem:[#allocation55_spill] sm:$0xff] %v2486_v12  ;;  %v3077_v12 = vld [vmem:[#allocation14_spill] sm:$0xff] }
 0x127   :  { %1198 = vrot.lane.b32.xlu0 %v1867_v11, %s1610_s23  ;;  %1208 = vrot.lane.b32.xlu1 %v1872_v58, %s1610_s23  ;;  %v3074_v11 = vld [vmem:[#allocation12_spill] sm:$0xff] }
 0x129   :  { %v2494_v34 = vpop.permute.xlu0 %894  ;;  %v2496_v19 = vpop.permute.xlu1 %1000 }
 0x12a   :  { %3072 = vst [vmem:[#allocation56_spill] sm:$0xff] %v2494_v34  ;;  %v3075_v34 = vld [vmem:[#allocation13_spill] sm:$0xff] }
 0x12b   :  { %1202 = vrot.lane.b32.xlu0 %v1919_v52, %s1610_s23  ;;  %1212 = vrot.lane.b32.xlu1 %v1922_v29, %s1610_s23  ;;  %v3076_v52 = vld [vmem:[#allocation15_spill] sm:$0xff] }
 0x12d   :  { %v2502_v21 = vpop.permute.xlu0 %898  ;;  %v2504_v48 = vpop.permute.xlu1 %1004 }
 0x12f   :  { %1206 = vrot.lane.b32.xlu0 %v3073_v45, %s1610_s23  ;;  %1216 = vrot.lane.b32.xlu1 %v3074_v11, %s1610_s23  ;;  %v3078_v45 = vld [vmem:[#allocation17_spill] sm:$0xff] }
 0x131   :  { %v2510_v58 = vpop.permute.xlu0 %998  ;;  %v2512_v49 = vpop.permute.xlu1 %1008 }
 0x133   :  { %1210 = vrot.lane.b32.xlu0 %v3075_v34, %s1610_s23  ;;  %1220 = vrot.lane.b32.xlu1 %v3076_v52, %s1610_s23  ;;  %v3080_v34 = vld [vmem:[#allocation19_spill] sm:$0xff] }
 0x135   :  { %v2518_v29 = vpop.permute.xlu0 %1002  ;;  %v2520_v18 = vpop.permute.xlu1 %1012 }
 0x137   :  { %1214 = vrot.lane.b32.xlu0 %v3077_v12, %s1610_s23  ;;  %1224 = vrot.lane.b32.xlu1 %v3078_v45, %s1610_s23  ;;  %v3082_v12 = vld [vmem:[#allocation21_spill] sm:$0xff] }
 0x139   :  { %v2526_v11 = vpop.permute.xlu0 %1006  ;;  %v2528_v60 = vpop.permute.xlu1 %1016 }
 0x13b   :  { %1218 = vrot.lane.b32.xlu0 %v3079_v42, %s1610_s23  ;;  %1228 = vrot.lane.b32.xlu1 %v3080_v34, %s1610_s23  ;;  %v3086_v42 = vld [vmem:[#allocation23_spill] sm:$0xff] }
 0x13d   :  { %v2534_v52 = vpop.permute.xlu0 %1010  ;;  %v2536_v46 = vpop.permute.xlu1 %1020 }
 0x13f   :  { %1222 = vrot.lane.b32.xlu0 %v3081_v10, %s1610_s23  ;;  %1232 = vrot.lane.b32.xlu1 %v3082_v12, %s1610_s23  ;;  %v3090_v10 = vld [vmem:[#allocation22_spill] sm:$0xff] }
 0x141   :  { %v2542_v45 = vpop.permute.xlu0 %1014  ;;  %v2544_v61 = vpop.permute.xlu1 %1024 }
 0x142   :  { %3083 = vst [vmem:[#allocation11_spill] sm:$0xff] %v2542_v45  ;;  %3084 = vst [vmem:[#allocation12_spill] sm:$0xff] %v2544_v61 }
 0x143   :  { %1226 = vrot.lane.b32.xlu0 %v3085_v53, %s1610_s23  ;;  %1236 = vrot.lane.b32.xlu1 %v3086_v42, %s1610_s23  ;;  %v3092_v53 = vld [vmem:[#allocation8_spill] sm:$0xff] }
 0x144   :  { %v2564_v3 = vmul.f32 0.036632847, %v3092_v53  ;;  %3104 = vst [vmem:[#allocation8_spill] sm:$0xff] %v2653_v32 }
 0x145   :  { %v2550_v34 = vpop.permute.xlu0 %1018  ;;  %v2555_v1 = vpop.permute.xlu1 %1028 }
 0x146   :  { %3087 = vst [vmem:[#allocation13_spill] sm:$0xff] %v2550_v34  ;;  %3089 = vst [vmem:[#allocation15_spill] sm:$0xff] %v2555_v1  ;;  %v3096_v1 = vld [vmem:[#allocation10_spill] sm:$0xff] }
 0x147   :  { %1230 = vrot.lane.b32.xlu0 %v3090_v10, %s1610_s23  ;;  %1312 = vrot.lane.b32.xlu1 %v2553_v4, %s1611_s24  ;;  %v2578_v44 = vmul.f32 0.036632847, %v3096_v1  ;;  %v2601_v1 = vmul.f32 0.036632847, %v1858_v24  ;;  %v2618_v24 = vmul.f32 0.036632847, %v1915_v37 }
 0x148   :  { %v2639_v37 = vmul.f32 0.036632847, %v2001_v23  ;;  %v2658_v23 = vmul.f32 0.036632847, %v2085_v40  ;;  %v2681_v40 = vmul.f32 0.036632847, %v2111_v9 }
 0x149   :  { %v2561_v12 = vpop.permute.xlu0 %1022  ;;  %v2566_v42 = vpop.permute.xlu1 %1032  ;;  %v661_v9 = vmul.f32 0.036632847, %v2151_v55 }
 0x14a   :  { %3091 = vst [vmem:[#allocation14_spill] sm:$0xff] %v2561_v12  ;;  %3093 = vst [vmem:[#allocation17_spill] sm:$0xff] %v2566_v42 }
 0x14b   :  { %1234 = vrot.lane.b32.xlu0 %v3094_v35, %s1610_s23  ;;  %1316 = vrot.lane.b32.xlu1 %v2564_v3, %s1611_s24  ;;  %v2587_v35 = vmul.f32 0.036632847, %v2005_v50  ;;  %v2606_v50 = vmul.f32 0.036632847, %v1861_v51  ;;  %v2627_v51 = vmul.f32 0.036632847, %v1959_v25 }
 0x14c   :  { %3102 = vst [vmem:[#allocation9_spill] sm:$0xff] %v2639_v37  ;;  %v2644_v25 = vmul.f32 0.036632847, %v2043_v56  ;;  %3105 = vst [vmem:[#allocation24_spill] sm:$0xff] %v2658_v23  ;;  %v2667_v56 = vmul.f32 0.036632847, %v2077_v54 }
 0x14d   :  { %v2575_v10 = vpop.permute.xlu0 %1026  ;;  %v2580_v12 = vpop.permute.xlu1 %1036  ;;  %3108 = vst [vmem:[#allocation58_spill] sm:$0xff] %v2681_v40  ;;  %v2686_v54 = vmul.f32 0.036632847, %v2134_v5  ;;  %v2706_v5 = vmul.f32 0.036632847, %v2149_v0  ;;  %v805_v0 = vadd.f32 %v2392_v17, %v661_v9 }
 0x14e   :  { %3095 = vst [vmem:[#allocation16_spill] sm:$0xff] %v2575_v10  ;;  %3097 = vst [vmem:[#allocation19_spill] sm:$0xff] %v2580_v12 }
 0x14f   :  { %1310 = vrot.lane.b32.xlu0 %v2573_v7, %s1611_s24  ;;  %1320 = vrot.lane.b32.xlu1 %v2578_v44, %s1611_s24  ;;  %3103 = vst [vmem:[#allocation22_spill] sm:$0xff] %v2644_v25  ;;  %3106 = vst [vmem:[#allocation10_spill] sm:$0xff] %v2667_v56 }
 0x150   :  { %3109 = vst [vmem:[#allocation59_spill] sm:$0xff] %v2686_v54  ;;  %3114 = vst [vmem:[#allocation64_spill] sm:$0xff] %v2706_v5 }
 0x151   :  { %v2589_v53 = vpop.permute.xlu0 %1030  ;;  %v2594_v10 = vpop.permute.xlu1 %1040 }
 0x152   :  { %3098 = vst [vmem:[#allocation18_spill] sm:$0xff] %v2589_v53  ;;  %3099 = vst [vmem:[#allocation21_spill] sm:$0xff] %v2594_v10 }
 0x153   :  { %1314 = vrot.lane.b32.xlu0 %v2587_v35, %s1611_s24  ;;  %1324 = vrot.lane.b32.xlu1 %v2592_v20, %s1611_s24 }
 0x155   :  { %v2603_v12 = vpop.permute.xlu0 %1034  ;;  %v1045_v53 = vpop.permute.xlu1 %1044 }
 0x156   :  { %3100 = vst [vmem:[#allocation20_spill] sm:$0xff] %v2603_v12 }
 0x157   :  { %1318 = vrot.lane.b32.xlu0 %v2601_v1, %s1611_s24  ;;  %1328 = vrot.lane.b32.xlu1 %v2606_v50, %s1611_s24 }
 0x159   :  { %v2615_v10 = vpop.permute.xlu0 %1038  ;;  %v2620_v42 = vpop.permute.xlu1 %1096 }
 0x15a   :  { %3101 = vst [vmem:[#allocation23_spill] sm:$0xff] %v2615_v10 }
 0x15b   :  { %1322 = vrot.lane.b32.xlu0 %v2613_v33, %s1611_s24  ;;  %1332 = vrot.lane.b32.xlu1 %v2618_v24, %s1611_s24 }
 0x15d   :  { %v1043_v12 = vpop.permute.xlu0 %1042  ;;  %v2632_v34 = vpop.permute.xlu1 %1100 }
 0x15f   :  { %1326 = vrot.lane.b32.xlu0 %v2627_v51, %s1611_s24  ;;  %1336 = vrot.lane.b32.xlu1 %v2630_v36, %s1611_s24 }
 0x161   :  { %v2641_v10 = vpop.permute.xlu0 %1094  ;;  %v2646_v59 = vpop.permute.xlu1 %1104 }
 0x163   :  { %1330 = vrot.lane.b32.xlu0 %v2639_v37, %s1611_s24  ;;  %1340 = vrot.lane.b32.xlu1 %v2644_v25, %s1611_s24 }
 0x165   :  { %v2655_v27 = vpop.permute.xlu0 %1098  ;;  %v2660_v39 = vpop.permute.xlu1 %1108 }
 0x167   :  { %1334 = vrot.lane.b32.xlu0 %v2653_v32, %s1611_s24  ;;  %1344 = vrot.lane.b32.xlu1 %v2658_v23, %s1611_s24 }
 0x169   :  { %v2669_v61 = vpop.permute.xlu0 %1102  ;;  %v2674_v28 = vpop.permute.xlu1 %1112 }
 0x16b   :  { %1338 = vrot.lane.b32.xlu0 %v2667_v56, %s1611_s24  ;;  %1348 = vrot.lane.b32.xlu1 %v2672_v26, %s1611_s24 }
 0x16d   :  { %v2683_v23 = vpop.permute.xlu0 %1106  ;;  %v2688_v32 = vpop.permute.xlu1 %1116 }
 0x16e   :  { %3110 = vst [vmem:[#allocation60_spill] sm:$0xff] %v2688_v32 }
 0x16f   :  { %1342 = vrot.lane.b32.xlu0 %v2681_v40, %s1611_s24  ;;  %1352 = vrot.lane.b32.xlu1 %v2686_v54, %s1611_s24 }
 0x171   :  { %v2697_v26 = vpop.permute.xlu0 %1110  ;;  %v2700_v56 = vpop.permute.xlu1 %1120 }
 0x172   :  { %3112 = vst [vmem:[#allocation62_spill] sm:$0xff] %v2697_v26  ;;  %3113 = vst [vmem:[#allocation63_spill] sm:$0xff] %v2700_v56 }
 0x173   :  { %1346 = vrot.lane.b32.xlu0 %v2695_v13, %s1611_s24  ;;  %1356 = vrot.lane.b32.xlu1 %v661_v9, %s1611_s24 }
 0x175   :  { %v2708_v40 = vpop.permute.xlu0 %1114  ;;  %v2710_v54 = vpop.permute.xlu1 %1124 }
 0x176   :  { %3115 = vst [vmem:[#allocation65_spill] sm:$0xff] %v2708_v40  ;;  %3116 = vst [vmem:[#allocation66_spill] sm:$0xff] %v2710_v54 }
 0x177   :  { %1350 = vrot.lane.b32.xlu0 %v2706_v5, %s1611_s24  ;;  %v949_v5 = vadd.f32 %v2488_v15, %v805_v0 }
 0x179   :  { %v2715_v55 = vpop.permute.xlu0 %1118  ;;  %v2717_v56 = vpop.permute.xlu1 %1128  ;;  %v1093_v25 = vadd.f32 %v1045_v53, %v949_v5 }
 0x17a   :  { %3117 = vst [vmem:[#allocation67_spill] sm:$0xff] %v2715_v55  ;;  %3118 = vst [vmem:[#allocation68_spill] sm:$0xff] %v2717_v56  ;;  %v804_v56 = vadd.f32 %v2406_v22, %v660_v57 }
 0x17b   :  { %1354 = vrot.lane.b32.xlu0 %v660_v57, %s1611_s24 }
 0x17d   :  { %v2720_v13 = vpop.permute.xlu0 %1122  ;;  %v2722_v26 = vpop.permute.xlu1 %1132 }
 0x17e   :  { %3119 = vst [vmem:[#allocation69_spill] sm:$0xff] %v2720_v13  ;;  %3120 = vst [vmem:[#allocation70_spill] sm:$0xff] %v2722_v26  ;;  %v948_v26 = vadd.f32 %v2502_v21, %v804_v56 }
 0x180   :  { %v1092_v17 = vadd.f32 %v1043_v12, %v948_v26 }
 0x181   :  { %v2725_v40 = vpop.permute.xlu0 %1126  ;;  %v2727_v54 = vpop.permute.xlu1 %1136 }
 0x182   :  { %3121 = vst [vmem:[#allocation71_spill] sm:$0xff] %v2725_v40  ;;  %3122 = vst [vmem:[#allocation72_spill] sm:$0xff] %v2727_v54 }
 0x185   :  { %v2730_v16 = vpop.permute.xlu0 %1130  ;;  %v1141_v55 = vpop.permute.xlu1 %1140 }
 0x186   :  { %3123 = vst [vmem:[#allocation73_spill] sm:$0xff] %v2730_v16  ;;  %v2732_v45 = vadd.f32 %v1141_v55, %v1093_v25 }
 0x188   :  { %3124 = vst [vmem:[#allocation74_spill] sm:$0xff] %v2732_v45 }
 0x189   :  { %v2735_v37 = vpop.permute.xlu0 %1134  ;;  %v1193_v13 = vpop.permute.xlu1 %1192 }
 0x18a   :  { %3125 = vst [vmem:[#allocation75_spill] sm:$0xff] %v2735_v37  ;;  %v3136_v37 = vld [vmem:[#allocation27_spill] sm:$0xff] }
 0x18b   :  { %v783_v45 = vadd.f32 %v3136_v37, %v2553_v4  ;;  %v3140_v4 = vld [vmem:[#allocation29_spill] sm:$0xff] }
 0x18c   :  { %v782_v37 = vadd.f32 %v3140_v4, %v2573_v7  ;;  %v3145_v4 = vld [vmem:[#allocation30_spill] sm:$0xff] }
 0x18d   :  { %v1139_v9 = vpop.permute.xlu0 %1138  ;;  %v1197_v54 = vpop.permute.xlu1 %1196 }
 0x18e   :  { %v2738_v40 = vadd.f32 %v1139_v9, %v1092_v17 }
 0x190   :  { %3126 = vst [vmem:[#allocation76_spill] sm:$0xff] %v2738_v40 }
 0x191   :  { %v1191_v32 = vpop.permute.xlu0 %1190  ;;  %v1201_v15 = vpop.permute.xlu1 %1200 }
 0x195   :  { %v2740_v53 = vpop.permute.xlu0 %1194  ;;  %v2742_v5 = vpop.permute.xlu1 %1204 }
 0x199   :  { %v2744_v25 = vpop.permute.xlu0 %1198  ;;  %v2746_v55 = vpop.permute.xlu1 %1208 }
 0x19d   :  { %v2748_v22 = vpop.permute.xlu0 %1202  ;;  %v2750_v57 = vpop.permute.xlu1 %1212 }
 0x19e   :  { %3127 = vst [vmem:[#allocation77_spill] sm:$0xff] %v2750_v57 }
 0x1a1   :  { %v2752_v21 = vpop.permute.xlu0 %1206  ;;  %v2754_v12 = vpop.permute.xlu1 %1216 }
 0x1a2   :  { %3128 = vst [vmem:[#allocation78_spill] sm:$0xff] %v2752_v21  ;;  %3129 = vst [vmem:[#allocation79_spill] sm:$0xff] %v2754_v12  ;;  %v927_v12 = vadd.f32 %v2400_v62, %v783_v45 }
 0x1a5   :  { %v2756_v56 = vpop.permute.xlu0 %1210  ;;  %v2758_v26 = vpop.permute.xlu1 %1220 }
 0x1a6   :  { %3130 = vst [vmem:[#allocation80_spill] sm:$0xff] %v2756_v56  ;;  %3131 = vst [vmem:[#allocation81_spill] sm:$0xff] %v2758_v26  ;;  %v3139_v56 = vld [vmem:[#allocation25_spill] sm:$0xff] }
 0x1a7   :  { %v785_v26 = vadd.f32 %v3139_v56, %v2564_v3 }
 0x1a9   :  { %v2760_v0 = vpop.permute.xlu0 %1214  ;;  %v2762_v17 = vpop.permute.xlu1 %1224 }
 0x1aa   :  { %3132 = vst [vmem:[#allocation82_spill] sm:$0xff] %v2760_v0  ;;  %3133 = vst [vmem:[#allocation83_spill] sm:$0xff] %v2762_v17  ;;  %v1071_v0 = vadd.f32 %v2496_v19, %v927_v12  ;;  %v926_v19 = vadd.f32 %v2414_v38, %v782_v37  ;;  %v791_v37 = vadd.f32 %v3145_v4, %v2606_v50  ;;  %v3158_v4 = vld [vmem:[#allocation47_spill] sm:$0xff] }
 0x1ac   :  { %v1070_v7 = vadd.f32 %v2510_v58, %v926_v19 }
 0x1ad   :  { %v2764_v9 = vpop.permute.xlu0 %1218  ;;  %v2766_v40 = vpop.permute.xlu1 %1228 }
 0x1ae   :  { %3134 = vst [vmem:[#allocation84_spill] sm:$0xff] %v2764_v9  ;;  %3135 = vst [vmem:[#allocation85_spill] sm:$0xff] %v2766_v40  ;;  %v929_v40 = vadd.f32 %v2408_v47, %v785_v26  ;;  %v1167_v9 = vadd.f32 %v2620_v42, %v1071_v0  ;;  %v3142_v42 = vld [vmem:[#allocation36_spill] sm:$0xff] }
 0x1af   :  { %v784_v0 = vadd.f32 %v3142_v42, %v2587_v35 }
 0x1b0   :  { %v1073_v62 = vadd.f32 %v2504_v48, %v929_v40  ;;  %v1263_v45 = vadd.f32 %v1193_v13, %v1167_v9  ;;  %v3144_v9 = vld [vmem:[#allocation31_spill] sm:$0xff] }
 0x1b1   :  { %v2770_v16 = vpop.permute.xlu0 %1222  ;;  %v2772_v21 = vpop.permute.xlu1 %1232  ;;  %v928_v38 = vadd.f32 %v2422_v31, %v784_v0 }
 0x1b2   :  { %3137 = vst [vmem:[#allocation27_spill] sm:$0xff] %v2770_v16  ;;  %3138 = vst [vmem:[#allocation86_spill] sm:$0xff] %v2772_v21  ;;  %v3141_v21 = vld [vmem:[#allocation26_spill] sm:$0xff]  ;;  %v1169_v47 = vadd.f32 %v2632_v34, %v1073_v62 }
 0x1b3   :  { %v787_v16 = vadd.f32 %v3141_v21, %v2578_v44  ;;  %v3143_v44 = vld [vmem:[#allocation28_spill] sm:$0xff] }
 0x1b4   :  { %v789_v21 = vadd.f32 %v3143_v44, %v2592_v20  ;;  %v1265_v40 = vadd.f32 %v1197_v54, %v1169_v47  ;;  %v786_v20 = vadd.f32 %v3144_v9, %v2601_v1  ;;  %v935_v1 = vadd.f32 %v2432_v2, %v791_v37 }
 0x1b5   :  { %v2778_v57 = vpop.permute.xlu0 %1226  ;;  %v2780_v17 = vpop.permute.xlu1 %1236  ;;  %v931_v56 = vadd.f32 %v2416_v14, %v787_v16  ;;  %v1166_v14 = vadd.f32 %v2641_v10, %v1070_v7 }
 0x1b6   :  { %v933_v16 = vadd.f32 %v2424_v6, %v789_v21  ;;  %v930_v6 = vadd.f32 %v2430_v63, %v786_v20  ;;  %v3147_v63 = vld [vmem:[#allocation32_spill] sm:$0xff] }
 0x1b7   :  { %v1075_v48 = vadd.f32 %v2512_v49, %v931_v56  ;;  %v1072_v49 = vadd.f32 %v2518_v29, %v928_v38  ;;  %v1262_v54 = vadd.f32 %v1191_v32, %v1166_v14  ;;  %v793_v56 = vadd.f32 %v3147_v63, %v2618_v24  ;;  %v3148_v24 = vld [vmem:[#allocation35_spill] sm:$0xff] }
 0x1b8   :  { %v1077_v62 = vadd.f32 %v2520_v18, %v933_v16  ;;  %v1074_v18 = vadd.f32 %v2526_v11, %v930_v6  ;;  %v790_v7 = vadd.f32 %v3148_v24, %v2627_v51 }
 0x1b9   :  { %v2789_v3 = vpop.permute.xlu0 %1230  ;;  %v1313_v12 = vpop.permute.xlu1 %1312  ;;  %v1171_v35 = vadd.f32 %v2646_v59, %v1075_v48  ;;  %v1168_v59 = vadd.f32 %v2655_v27, %v1072_v49  ;;  %v1079_v27 = vadd.f32 %v2528_v60, %v935_v1  ;;  %v3157_v49 = vld [vmem:[#allocation77_spill] sm:$0xff] }
 0x1ba   :  { %v1383_v26 = vadd.f32 %v1313_v12, %v1263_v45  ;;  %v1173_v29 = vadd.f32 %v2660_v39, %v1077_v62  ;;  %v3146_v12 = vld [vmem:[#allocation33_spill] sm:$0xff]  ;;  %v3159_v62 = vld [vmem:[#allocation62_spill] sm:$0xff] }
 0x1bb   :  { %v1267_v31 = vadd.f32 %v1201_v15, %v1171_v35  ;;  %v788_v50 = vadd.f32 %v3146_v12, %v2613_v33  ;;  %v1264_v15 = vadd.f32 %v2740_v53, %v1168_v59  ;;  %v1170_v33 = vadd.f32 %v2669_v61, %v1074_v18  ;;  %v3160_v59 = vld [vmem:[#allocation48_spill] sm:$0xff] }
 0x1bc   :  { %1432 = vrot.lane.b32.xlu1 %v1383_v26, %s1610_s23  ;;  %v1269_v47 = vadd.f32 %v2742_v5, %v1173_v29  ;;  %v937_v53 = vadd.f32 %v2440_v43, %v793_v56  ;;  %v1175_v42 = vadd.f32 %v2674_v28, %v1079_v27  ;;  %v934_v28 = vadd.f32 %v2446_v30, %v790_v7  ;;  %v3155_v30 = vld [vmem:[#allocation38_spill] sm:$0xff]  ;;  %v3162_v29 = vld [vmem:[#allocation8_spill] sm:$0xff] }
 0x1bd   :  { %v2800_v13 = vpop.permute.xlu0 %1234  ;;  %v1317_v34 = vpop.permute.xlu1 %1316  ;;  %v932_v39 = vadd.f32 %v2438_v8, %v788_v50  ;;  %v1266_v5 = vadd.f32 %v2744_v25, %v1170_v33  ;;  %v3149_v8 = vld [vmem:[#allocation34_spill] sm:$0xff]  ;;  %v3164_v50 = vld [vmem:[#allocation13_spill] sm:$0xff]  ;;  %v3166_v56 = vld [vmem:[#allocation24_spill] sm:$0xff] }
 0x1be   :  { %v1385_v58 = vadd.f32 %v1317_v34, %v1265_v40  ;;  %v795_v44 = vadd.f32 %v3149_v8, %v2630_v36  ;;  %v1081_v61 = vadd.f32 %v2536_v46, %v937_v53  ;;  %v1271_v21 = vadd.f32 %v2746_v55, %v1175_v42  ;;  %v3150_v40 = vld [vmem:[#allocation60_spill] sm:$0xff]  ;;  %v3151_v34 = vld [vmem:[#allocation9_spill] sm:$0xff]  ;;  %v3153_v46 = vld [vmem:[#allocation11_spill] sm:$0xff] }
 0x1bf   :  { %v1076_v60 = vadd.f32 %v2534_v52, %v932_v39  ;;  %v3152_v36 = vld [vmem:[#allocation37_spill] sm:$0xff]  ;;  %v1078_v35 = vadd.f32 %v3153_v46, %v934_v28  ;;  %v3167_v27 = vld [vmem:[#allocation40_spill] sm:$0xff]  ;;  %v3169_v33 = vld [vmem:[#allocation79_spill] sm:$0xff] }
 0x1c0   :  { %1436 = vrot.lane.b32.xlu1 %v1385_v58, %s1610_s23  ;;  %v939_v25 = vadd.f32 %v2448_v41, %v795_v44  ;;  %v1177_v38 = vadd.f32 %v3150_v40, %v1081_v61  ;;  %v792_v16 = vadd.f32 %v3152_v36, %v3151_v34  ;;  %v3154_v58 = vld [vmem:[#allocation22_spill] sm:$0xff]  ;;  %v3170_v53 = vld [vmem:[#allocation49_spill] sm:$0xff] }
 0x1c1   :  { %v1311_v45 = vpop.permute.xlu0 %1310  ;;  %v1321_v19 = vpop.permute.xlu1 %1320  ;;  %v1172_v51 = vadd.f32 %v2683_v23, %v1076_v60  ;;  %v797_v9 = vadd.f32 %v3155_v30, %v3154_v58  ;;  %v3156_v23 = vld [vmem:[#allocation12_spill] sm:$0xff]  ;;  %v3173_v44 = vld [vmem:[#allocation66_spill] sm:$0xff]  ;;  %v3175_v28 = vld [vmem:[#allocation41_spill] sm:$0xff] }
 0x1c2   :  { %v1382_v10 = vadd.f32 %v1311_v45, %v1262_v54  ;;  %v1387_v32 = vadd.f32 %v1321_v19, %v1267_v31  ;;  %v1083_v20 = vadd.f32 %v3156_v23, %v939_v25  ;;  %v1273_v54 = vadd.f32 %v3157_v49, %v1177_v38  ;;  %v3177_v25 = vld [vmem:[#allocation80_spill] sm:$0xff]  ;;  %v3178_v38 = vld [vmem:[#allocation57_spill] sm:$0xff]  ;;  %v3182_v58 = vld [vmem:[#allocation51_spill] sm:$0xff] }
 0x1c3   :  { %v1268_v55 = vadd.f32 %v2748_v22, %v1172_v51  ;;  %v936_v37 = vadd.f32 %v3158_v4, %v792_v16  ;;  %v1174_v31 = vadd.f32 %v3159_v62, %v1078_v35  ;;  %v941_v22 = vadd.f32 %v3160_v59, %v797_v9  ;;  %v3180_v36 = vld [vmem:[#allocation17_spill] sm:$0xff]  ;;  %v3183_v9 = vld [vmem:[#allocation67_spill] sm:$0xff]  ;;  %v3185_v4 = vld [vmem:[#allocation68_spill] sm:$0xff] }
 0x1c4   :  { %1430 = vrot.lane.b32.xlu0 %v1382_v10, %s1610_s23  ;;  %1440 = vrot.lane.b32.xlu1 %v1387_v32, %s1610_s23  ;;  %v3161_v10 = vld [vmem:[#allocation63_spill] sm:$0xff]  ;;  %v3181_v46 = vld [vmem:[#allocation81_spill] sm:$0xff]  ;;  %v3188_v59 = vld [vmem:[#allocation16_spill] sm:$0xff] }
 0x1c5   :  { %v1315_v2 = vpop.permute.xlu0 %1314  ;;  %v1325_v11 = vpop.permute.xlu1 %1324  ;;  %v1179_v19 = vadd.f32 %v3161_v10, %v1083_v20  ;;  %v3163_v32 = vld [vmem:[#allocation39_spill] sm:$0xff]  ;;  %v1080_v18 = vadd.f32 %v3164_v50, %v936_v37  ;;  %v3189_v10 = vld [vmem:[#allocation82_spill] sm:$0xff] }
 0x1c6   :  { %v1384_v26 = vadd.f32 %v1315_v2, %v1264_v15  ;;  %v1389_v0 = vadd.f32 %v1325_v11, %v1269_v47  ;;  %v794_v12 = vadd.f32 %v3163_v32, %v3162_v29  ;;  %v3165_v15 = vld [vmem:[#allocation78_spill] sm:$0xff]  ;;  %v799_v47 = vadd.f32 %v3167_v27, %v3166_v56  ;;  %v3168_v2 = vld [vmem:[#allocation15_spill] sm:$0xff]  ;;  %v3191_v29 = vld [vmem:[#allocation44_spill] sm:$0xff] }
 0x1c7   :  { %v1270_v63 = vadd.f32 %v3165_v15, %v1174_v31  ;;  %v1085_v39 = vadd.f32 %v3168_v2, %v941_v22  ;;  %v3186_v31 = vld [vmem:[#allocation58_spill] sm:$0xff]  ;;  %v3194_v56 = vld [vmem:[#allocation53_spill] sm:$0xff] }
 0x1c8   :  { %1434 = vrot.lane.b32.xlu0 %v1384_v26, %s1610_s23  ;;  %1444 = vrot.lane.b32.xlu1 %v1389_v0, %s1610_s23  ;;  %v1275_v26 = vadd.f32 %v3169_v33, %v1179_v19  ;;  %v938_v42 = vadd.f32 %v3170_v53, %v794_v12  ;;  %v3171_v0 = vld [vmem:[#allocation65_spill] sm:$0xff]  ;;  %v3192_v12 = vld [vmem:[#allocation19_spill] sm:$0xff]  ;;  %v3197_v53 = vld [vmem:[#allocation70_spill] sm:$0xff] }
 0x1c9   :  { %v1319_v43 = vpop.permute.xlu0 %1318  ;;  %v1329_v52 = vpop.permute.xlu1 %1328  ;;  %v1176_v24 = vadd.f32 %v3171_v0, %v1080_v18  ;;  %v1181_v61 = vadd.f32 %v3173_v44, %v1085_v39  ;;  %v3193_v18 = vld [vmem:[#allocation83_spill] sm:$0xff]  ;;  %v3201_v44 = vld [vmem:[#allocation84_spill] sm:$0xff] }
 0x1ca   :  { %v1386_v48 = vadd.f32 %v1319_v43, %v1266_v5  ;;  %v1391_v14 = vadd.f32 %v1329_v52, %v1271_v21  ;;  %v3172_v5 = vld [vmem:[#allocation50_spill] sm:$0xff] }
 0x1cb   :  { %v943_v8 = vadd.f32 %v3172_v5, %v799_v47  ;;  %v3174_v43 = vld [vmem:[#allocation10_spill] sm:$0xff]  ;;  %v1272_v40 = vadd.f32 %v3177_v25, %v1176_v24  ;;  %v1277_v35 = vadd.f32 %v3181_v46, %v1181_v61  ;;  %v3195_v47 = vld [vmem:[#allocation69_spill] sm:$0xff] }
 0x1cc   :  { %1438 = vrot.lane.b32.xlu0 %v1386_v48, %s1610_s23  ;;  %1448 = vrot.lane.b32.xlu1 %v1391_v14, %s1610_s23  ;;  %v796_v51 = vadd.f32 %v3175_v28, %v3174_v43  ;;  %v3176_v48 = vld [vmem:[#allocation14_spill] sm:$0xff]  ;;  %v3198_v24 = vld [vmem:[#allocation61_spill] sm:$0xff] }
 0x1cd   :  { %v1323_v41 = vpop.permute.xlu0 %1322  ;;  %v1333_v6 = vpop.permute.xlu1 %1332  ;;  %v1082_v52 = vadd.f32 %v3176_v48, %v938_v42  ;;  %v3179_v14 = vld [vmem:[#allocation42_spill] sm:$0xff]  ;;  %v1087_v16 = vadd.f32 %v3180_v36, %v943_v8  ;;  %v3203_v28 = vld [vmem:[#allocation85_spill] sm:$0xff]  ;;  %v3206_v36 = vld [vmem:[#allocation72_spill] sm:$0xff] }
 0x1ce   :  { %v1388_v45 = vadd.f32 %v1323_v41, %v1268_v55  ;;  %v1393_v1 = vadd.f32 %v1333_v6, %v1273_v54  ;;  %v801_v34 = vadd.f32 %v3179_v14, %v3178_v38  ;;  %v940_v30 = vadd.f32 %v3182_v58, %v796_v51  ;;  %v3184_v54 = vld [vmem:[#allocation52_spill] sm:$0xff]  ;;  %v3200_v5 = vld [vmem:[#allocation18_spill] sm:$0xff] }
 0x1cf   :  { %v1178_v23 = vadd.f32 %v3183_v9, %v1082_v52  ;;  %v1183_v37 = vadd.f32 %v3185_v4, %v1087_v16  ;;  %v3204_v52 = vld [vmem:[#allocation55_spill] sm:$0xff]  ;;  %v3212_v4 = vld [vmem:[#allocation56_spill] sm:$0xff] }
 0x1d0   :  { %1442 = vrot.lane.b32.xlu0 %v1388_v45, %s1610_s23  ;;  %1452 = vrot.lane.b32.xlu1 %v1393_v1, %s1610_s23  ;;  %v945_v41 = vadd.f32 %v3184_v54, %v801_v34  ;;  %v3187_v45 = vld [vmem:[#allocation43_spill] sm:$0xff]  ;;  %v1084_v22 = vadd.f32 %v3188_v59, %v940_v30  ;;  %v3209_v30 = vld [vmem:[#allocation20_spill] sm:$0xff] }
 0x1d1   :  { %v1327_v11 = vpop.permute.xlu0 %1326  ;;  %v1337_v60 = vpop.permute.xlu1 %1336  ;;  %v798_v6 = vadd.f32 %v3187_v45, %v3186_v31  ;;  %v1274_v19 = vadd.f32 %v3189_v10, %v1178_v23  ;;  %v3190_v1 = vld [vmem:[#allocation59_spill] sm:$0xff]  ;;  %v1279_v15 = vadd.f32 %v3193_v18, %v1183_v37 }
 0x1d2   :  { %v1390_v7 = vadd.f32 %v1327_v11, %v1270_v63  ;;  %v1395_v21 = vadd.f32 %v1337_v60, %v1275_v26  ;;  %v803_v32 = vadd.f32 %v3191_v29, %v3190_v1  ;;  %v1089_v50 = vadd.f32 %v3192_v12, %v945_v41  ;;  %v3196_v26 = vld [vmem:[#allocation54_spill] sm:$0xff]  ;;  %v3210_v23 = vld [vmem:[#allocation27_spill] sm:$0xff] }
 0x1d3   :  { %v942_v27 = vadd.f32 %v3194_v56, %v798_v6  ;;  %v1180_v2 = vadd.f32 %v3195_v47, %v1084_v22  ;;  %v3214_v22 = vld [vmem:[#allocation23_spill] sm:$0xff]  ;;  %v3215_v1 = vld [vmem:[#allocation74_spill] sm:$0xff]  ;;  %v3217_v47 = vld [vmem:[#allocation76_spill] sm:$0xff] }
 0x1d4   :  { %1446 = vrot.lane.b32.xlu0 %v1390_v7, %s1610_s23  ;;  %1456 = vrot.lane.b32.xlu1 %v1395_v21, %s1610_s23  ;;  %v947_v11 = vadd.f32 %v3196_v26, %v803_v32  ;;  %v1185_v42 = vadd.f32 %v3197_v53, %v1089_v50  ;;  %v3199_v7 = vld [vmem:[#allocation45_spill] sm:$0xff]  ;;  %v1285_v29 = vadd.f32 %v2780_v17, %v3215_v1  ;;  %v3216_v12 = vld [vmem:[#allocation75_spill] sm:$0xff] }
 0x1d5   :  { %v1331_v55 = vpop.permute.xlu0 %1330  ;;  %v1341_v49 = vpop.permute.xlu1 %1340  ;;  %v800_v60 = vadd.f32 %v3199_v7, %v3198_v24  ;;  %v1086_v8 = vadd.f32 %v3200_v5, %v942_v27  ;;  %v1276_v61 = vadd.f32 %v3201_v44, %v1180_v2  ;;  %v3202_v21 = vld [vmem:[#allocation21_spill] sm:$0xff]  ;;  %v1284_v2 = vadd.f32 %v2800_v13, %v3217_v47 }
 0x1d6   :  { %v1392_v20 = vadd.f32 %v1331_v55, %v1272_v40  ;;  %v1397_v62 = vadd.f32 %v1341_v49, %v1277_v35  ;;  %v1091_v43 = vadd.f32 %v3202_v21, %v947_v11  ;;  %v1281_v51 = vadd.f32 %v3203_v28, %v1185_v42  ;;  %v3205_v40 = vld [vmem:[#allocation71_spill] sm:$0xff]  ;;  %v3207_v35 = vld [vmem:[#allocation64_spill] sm:$0xff]  ;;  %v3208_v55 = vld [vmem:[#allocation46_spill] sm:$0xff] }
 0x1d7   :  { %v944_v25 = vadd.f32 %v3204_v52, %v800_v60  ;;  %v1182_v38 = vadd.f32 %v3205_v40, %v1086_v8  ;;  %v802_v58 = vadd.f32 %v3208_v55, %v3207_v35  ;;  %v3211_v49 = vld [vmem:[#allocation86_spill] sm:$0xff] }
 0x1d8   :  { %1450 = vrot.lane.b32.xlu0 %v1392_v20, %s1610_s23  ;;  %1460 = vrot.lane.b32.xlu1 %v1397_v62, %s1610_s23  ;;  %v1187_v16 = vadd.f32 %v3206_v36, %v1091_v43  ;;  %v3213_v62 = vld [vmem:[#allocation73_spill] sm:$0xff] }
 0x1d9   :  { %v1335_v63 = vpop.permute.xlu0 %1334  ;;  %v1345_v33 = vpop.permute.xlu1 %1344  ;;  %v1088_v9 = vadd.f32 %v3209_v30, %v944_v25  ;;  %v1278_v20 = vadd.f32 %v3210_v23, %v1182_v38  ;;  %v946_v37 = vadd.f32 %v3212_v4, %v802_v58 }
 0x1da   :  { %v1394_v39 = vadd.f32 %v1335_v63, %v1274_v19  ;;  %v1399_v0 = vadd.f32 %v1345_v33, %v1279_v15  ;;  %v1283_v54 = vadd.f32 %v3211_v49, %v1187_v16 }
 0x1db   :  { %v1184_v31 = vadd.f32 %v3213_v62, %v1088_v9  ;;  %v1090_v10 = vadd.f32 %v3214_v22, %v946_v37 }
 0x1dc   :  { %1454 = vrot.lane.b32.xlu0 %v1394_v39, %s1610_s23  ;;  %1464 = vrot.lane.b32.xlu1 %v1399_v0, %s1610_s23 }
 0x1dd   :  { %v1339_v48 = vpop.permute.xlu0 %1338  ;;  %v1349_v34 = vpop.permute.xlu1 %1348  ;;  %v1280_v19 = vadd.f32 %v2778_v57, %v1184_v31  ;;  %v1186_v50 = vadd.f32 %v3216_v12, %v1090_v10 }
 0x1de   :  { %v1396_v14 = vadd.f32 %v1339_v48, %v1276_v61  ;;  %v1401_v46 = vadd.f32 %v1349_v34, %v1281_v51 }
 0x1df   :  { %v1282_v56 = vadd.f32 %v2789_v3, %v1186_v50 }
 0x1e0   :  { %1458 = vrot.lane.b32.xlu0 %v1396_v14, %s1610_s23  ;;  %1468 = vrot.lane.b32.xlu1 %v1401_v46, %s1610_s23 }
 0x1e1   :  { %v1343_v41 = vpop.permute.xlu0 %1342  ;;  %v1353_v6 = vpop.permute.xlu1 %1352 }
 0x1e2   :  { %v1398_v45 = vadd.f32 %v1343_v41, %v1278_v20  ;;  %v1403_v59 = vadd.f32 %v1353_v6, %v1283_v54 }
 0x1e4   :  { %1462 = vrot.lane.b32.xlu0 %v1398_v45, %s1610_s23  ;;  %1472 = vrot.lane.b32.xlu1 %v1403_v59, %s1610_s23 }
 0x1e5   :  { %v1347_v32 = vpop.permute.xlu0 %1346  ;;  %v1357_v15 = vpop.permute.xlu1 %1356 }
 0x1e6   :  { %v1400_v18 = vadd.f32 %v1347_v32, %v1280_v19  ;;  %v1405_v63 = vadd.f32 %v1357_v15, %v1285_v29 }
 0x1e8   :  { %1466 = vrot.lane.b32.xlu0 %v1400_v18, %s1610_s23  ;;  %1476 = vrot.lane.b32.xlu1 %v1405_v63, %s1610_s23 }
 0x1e9   :  { %v1351_v27 = vpop.permute.xlu0 %1350 }
 0x1ea   :  { %v1402_v57 = vadd.f32 %v1351_v27, %v1282_v56 }
 0x1ec   :  { %1470 = vrot.lane.b32.xlu0 %v1402_v57, %s1610_s23 }
 0x1ed   :  { %v1355_v17 = vpop.permute.xlu0 %1354 }
 0x1ee   :  { %v1404_v39 = vadd.f32 %v1355_v17, %v1284_v2 }
 0x1f0   :  { %1474 = vrot.lane.b32.xlu0 %v1404_v39, %s1610_s23 }
 0x22e   :  { %v1433_v33 = vpop.permute.xlu1 %1432 }
 0x22f   :  { %1505 = vst.msk [vmem:[#allocation5 + $0x3] sm:$0x7] %vm1504_vm3, %v1433_v33 }
 0x232   :  { %v1437_v3 = vpop.permute.xlu1 %1436 }
 0x233   :  { %1507 = vst.msk [vmem:[#allocation5 + $0xb] sm:$0x7] %vm1504_vm3, %v1437_v3 }
 0x236   :  { %v1431_v26 = vpop.permute.xlu0 %1430  ;;  %v1441_v11 = vpop.permute.xlu1 %1440 }
 0x237   :  { %1503 = vst.msk [vmem:[#allocation5 - $0x5] sm:$0xe0] %vm1502_vm4, %v1431_v26 }
 0x238   :  { %1509 = vst.msk [vmem:[#allocation5 + $0x13] sm:$0x7] %vm1504_vm3, %v1441_v11 }
 0x23a   :  { %v1435_v13 = vpop.permute.xlu0 %1434  ;;  %v1445_v53 = vpop.permute.xlu1 %1444 }
 0x23b   :  { %1506 = vst.msk [vmem:[#allocation5 + $0x3] sm:$0xe0] %vm1502_vm4, %v1435_v13 }
 0x23c   :  { %1511 = vst.msk [vmem:[#allocation5 + $0x1b] sm:$0x7] %vm1504_vm3, %v1445_v53 }
 0x23e   :  { %v1439_v42 = vpop.permute.xlu0 %1438  ;;  %v1449_v0 = vpop.permute.xlu1 %1448 }
 0x23f   :  { %1508 = vst.msk [vmem:[#allocation5 + $0xb] sm:$0xe0] %vm1502_vm4, %v1439_v42 }
 0x240   :  { %1513 = vst.msk [vmem:[#allocation5 + $0x23] sm:$0x7] %vm1504_vm3, %v1449_v0 }
 0x242   :  { %v1443_v24 = vpop.permute.xlu0 %1442  ;;  %v1453_v7 = vpop.permute.xlu1 %1452 }
 0x243   :  { %1510 = vst.msk [vmem:[#allocation5 + $0x13] sm:$0xe0] %vm1502_vm4, %v1443_v24 }
 0x244   :  { %1515 = vst.msk [vmem:[#allocation5 + $0x2b] sm:$0x7] %vm1504_vm3, %v1453_v7 }
 0x246   :  { %v1447_v60 = vpop.permute.xlu0 %1446  ;;  %v1457_v5 = vpop.permute.xlu1 %1456 }
 0x247   :  { %1512 = vst.msk [vmem:[#allocation5 + $0x1b] sm:$0xe0] %vm1502_vm4, %v1447_v60 }
 0x248   :  { %1517 = vst.msk [vmem:[#allocation5 + $0x33] sm:$0x7] %vm1504_vm3, %v1457_v5 }
 0x24a   :  { %v1451_v8 = vpop.permute.xlu0 %1450  ;;  %v1461_v44 = vpop.permute.xlu1 %1460 }
 0x24b   :  { %1514 = vst.msk [vmem:[#allocation5 + $0x23] sm:$0xe0] %vm1502_vm4, %v1451_v8 }
 0x24c   :  { %1519 = vst.msk [vmem:[#allocation5 + $0x3b] sm:$0x7] %vm1504_vm3, %v1461_v44 }
 0x24e   :  { %v1455_v61 = vpop.permute.xlu0 %1454  ;;  %v1465_v21 = vpop.permute.xlu1 %1464 }
 0x24f   :  { %1516 = vst.msk [vmem:[#allocation5 + $0x2b] sm:$0xe0] %vm1502_vm4, %v1455_v61 }
 0x250   :  { %1521 = vst.msk [vmem:[#allocation5 + $0x43] sm:$0x7] %vm1504_vm3, %v1465_v21 }
 0x252   :  { %v1459_v43 = vpop.permute.xlu0 %1458  ;;  %v1469_v28 = vpop.permute.xlu1 %1468 }
 0x253   :  { %1518 = vst.msk [vmem:[#allocation5 + $0x33] sm:$0xe0] %vm1502_vm4, %v1459_v43 }
 0x254   :  { %1523 = vst.msk [vmem:[#allocation5 + $0x4b] sm:$0x7] %vm1504_vm3, %v1469_v28 }
 0x256   :  { %v1463_v51 = vpop.permute.xlu0 %1462  ;;  %v1473_v48 = vpop.permute.xlu1 %1472 }
 0x257   :  { %1520 = vst.msk [vmem:[#allocation5 + $0x3b] sm:$0xe0] %vm1502_vm4, %v1463_v51 }
 0x258   :  { %1525 = vst.msk [vmem:[#allocation5 + $0x53] sm:$0x7] %vm1504_vm3, %v1473_v48 }
 0x25a   :  { %v1467_v52 = vpop.permute.xlu0 %1466  ;;  %v1477_v25 = vpop.permute.xlu1 %1476 }
 0x25b   :  { %1522 = vst.msk [vmem:[#allocation5 + $0x43] sm:$0xe0] %vm1502_vm4, %v1467_v52 }
 0x25c   :  { %1527 = vst.msk [vmem:[#allocation5 + $0x5b] sm:$0x7] %vm1504_vm3, %v1477_v25 }
 0x25e   :  { %v1471_v40 = vpop.permute.xlu0 %1470 }
 0x25f   :  { %1524 = vst.msk [vmem:[#allocation5 + $0x4b] sm:$0xe0] %vm1502_vm4, %v1471_v40 }
 0x262   :  { %v1475_v38 = vpop.permute.xlu0 %1474 }
 0x263   :  { %1526 = vst.msk [vmem:[#allocation5 + $0x53] sm:$0xe0] %vm1502_vm4, %v1475_v38 }
 0x264   :  { %1588 = shalt.err (!%p1585_p12)
}
 0x265   :  { %s1589_s30 = scalar_lea.hbm %s2976_s1, 1536 }
 0x266   :  { %p1590_p13 = scmp.ne.s32.totalorder %s2976_s1, %s1589_s30  ;;  %p1593_p0 = scmp.lt.u32.totalorder %s1589_s30, %s2976_s1 }
 0x268   :  { %p1595_p1 = pnand %p1593_p0, %p1590_p13 }
 0x26a   :  { %1598 = shalt.err (!%p1595_p1)
}
 0x26b   :  { %1539 = dma.vmem_to_hbm [thread:$0]  %s1534_s26, 1536, %s2976_s1, [#allocation4], %s1604_s16, %s1604_s16, %s1605_s17  }
 0x26c   :  { %1601 = dma.done.wait [#allocation4], 1536  }
 0x26d   :  { %1602 = vsyncadd [#allocation4], 4294965760 }
 0x26e   :  { %1543 = vsyncpa [#allocation3], 1 }
 0x26f   :  { %1544 = vsyncpa [#allocation4], 1 }

// kernel: custom-call.155
= control target key start
LH: loop header
LB: loop body
LE: loop exit
PB: predicated region body
PF: predicated region fallthrough
CT: control target
= control target key end

     0   :  { %v152_v0 = vmov 0.0   ;;  %vm38_vm0 = vcmask 7168   ;;  %vm56_vm1 = vcmask 15368   ;;  %vm73_vm2 = vcmask 1047553   ;;  %s169_s0 = inlined_call_operand.vmem [shape: f32[3,3], index: 0, kind: input, shape index: {}]   ;;  %s170_s1 = inlined_call_operand.vmem [shape: f32[3,3], index: 1, kind: output, shape index: {}]  }
   0x1   :  { %37 = vst [vmem:[#allocation2] sm:$0xff] %v152_v0  ;;  %v17_v2 = vld [vmem:[%s169_s0] sm:$0xf]  ;;  %vm74_vm3 = vmand %vm56_vm1, %vm73_vm2  ;;  %vm78_vm4 = vcmask 23568   ;;  %vm95_vm5 = vcmask 1047554  }
   0x2   :  { %18 = vst [vmem:[#allocation1] sm:$0xf] %v17_v2  ;;  %vm96_vm6 = vmand %vm78_vm4, %vm95_vm5 }
   0x8   :  { %v39_v1 = vld [vmem:[#allocation2] ss:$0 sm:$0xff] }
   0x9   :  { %v41_v3 = vmul.f32 %v39_v1, %v39_v1  ;;  %v48_v4 = vmul.f32 0.0, %v39_v1  ;;  %v35_v5 = vld [vmem:[#allocation1] sm:$0xf] }
   0xa   :  { %36 = vst [vmem:[#allocation0] sm:$0xf] %v35_v5 }
   0xb   :  { %42 = vadd.xlane.f32.xlu0 %v41_v3 }
   0xf   :  { %49 = vadd.xlane.f32.xlu0 %v48_v4 }
  0x11   :  { %v40_v6 = vld [vmem:[#allocation0] ss:$0 sm:$0xff]  ;;  %v60_v18 = vld [vmem:[#allocation0 + $0x1] ss:$0 sm:$0xff]  ;;  %v82_v30 = vld [vmem:[#allocation0 + $0x2] ss:$0 sm:$0xff] }
  0x12   :  { %v46_v10 = vld [vmem:[#allocation0] sm:$0xff] }
  0x98   :  { %v43_v7 = vpop.xlane.xlu0 %42 }
  0x99   :  { %v44_v8 = vsub.f32 %v40_v6, %v43_v7 }
  0x9b   :  { %146 = vrsqrt.f32 %v44_v8 }
  0x9c   :  { %v50_v9 = vpop.xlane.xlu0 %49 }
  0x9d   :  { %v51_v11 = vsub.f32 %v46_v10, %v50_v9 }
  0xa5   :  { %v147_v12 = vpop.eup %146 }
  0xa6   :  { %v52_v13 = vmul.f32 %v147_v12, %v51_v11 }
  0xa8   :  { %v53_v14 = vsel %vm38_vm0, %v52_v13, 0.0 }
  0xa9   :  { %55 = vst [vmem:[#allocation2] sm:$0xff] %v53_v14 }
  0xb0   :  { %v58_v15 = vld [vmem:[#allocation2 + $0x1] ss:$0 sm:$0xff] }
  0xb1   :  { %v61_v16 = vmul.f32 %v58_v15, %v58_v15  ;;  %v68_v17 = vmul.f32 %v58_v15, %v53_v14 }
  0xb3   :  { %62 = vadd.xlane.f32.xlu1 %v61_v16 }
  0xb7   :  { %69 = vadd.xlane.f32.xlu1 %v68_v17 }
 0x140   :  { %v63_v19 = vpop.xlane.xlu1 %62 }
 0x141   :  { %v64_v20 = vsub.f32 %v60_v18, %v63_v19 }
 0x143   :  { %148 = vrsqrt.f32 %v64_v20 }
 0x144   :  { %v70_v21 = vpop.xlane.xlu1 %69 }
 0x145   :  { %v71_v22 = vsub.f32 %v46_v10, %v70_v21 }
 0x14d   :  { %v149_v23 = vpop.eup %148 }
 0x14e   :  { %v72_v24 = vmul.f32 %v149_v23, %v71_v22 }
 0x150   :  { %v75_v25 = vsel %vm74_vm3, %v72_v24, 0.0 }
 0x151   :  { %v76_v26 = vadd.f32 %v75_v25, %v53_v14 }
 0x153   :  { %77 = vst [vmem:[#allocation2] sm:$0xff] %v76_v26 }
 0x15a   :  { %v80_v27 = vld [vmem:[#allocation2 + $0x2] ss:$0 sm:$0xff] }
 0x15b   :  { %v90_v28 = vmul.f32 %v80_v27, %v76_v26  ;;  %v83_v29 = vmul.f32 %v80_v27, %v80_v27 }
 0x15d   :  { %91 = vadd.xlane.f32.xlu1 %v90_v28  ;;  %84 = vadd.xlane.f32.xlu0 %v83_v29 }
 0x1ea   :  { %v85_v31 = vpop.xlane.xlu0 %84  ;;  %v92_v33 = vpop.xlane.xlu1 %91 }
 0x1eb   :  { %v86_v32 = vsub.f32 %v82_v30, %v85_v31  ;;  %v93_v34 = vsub.f32 %v46_v10, %v92_v33 }
 0x1ed   :  { %150 = vrsqrt.f32 %v86_v32 }
 0x1f7   :  { %v151_v35 = vpop.eup %150 }
 0x1f8   :  { %v94_v36 = vmul.f32 %v151_v35, %v93_v34 }
 0x1fa   :  { %v97_v37 = vsel %vm96_vm6, %v94_v36, 0.0 }
 0x1fb   :  { %v98_v38 = vadd.f32 %v97_v37, %v76_v26 }
 0x1fd   :  { %99 = vst [vmem:[#allocation2] sm:$0xff] %v98_v38 }
 0x204   :  { %v103_v39 = vld [vmem:[#allocation2] sm:$0xf] }
 0x205   :  { %105 = vst [vmem:[#allocation3] sm:$0xf] %v103_v39 }
 0x20c   :  { %v121_v40 = vld [vmem:[#allocation3] sm:$0xf] }
 0x20d   :  { %122 = vst [vmem:[%s170_s1] sm:$0xf] %v121_v40 }

// kernel: custom-call.156
= control target key start
LH: loop header
LB: loop body
LE: loop exit
PB: predicated region body
PF: predicated region fallthrough
CT: control target
= control target key end

     0   :  { %v37_v1 = vlaneseq  ;;  %v138_v11 = vmov -1.0   ;;  %s155_s0 = inlined_call_operand.vmem [shape: f32[1,3,3], index: 0, kind: input, shape index: {}]   ;;  %s156_s1 = inlined_call_operand.vmem [shape: f32[1,3,3], index: 1, kind: output, shape index: {}]  }
   0x1   :  { %v17_v0 = vld [vmem:[%s155_s0] sm:$0xf] }
   0x2   :  { %18 = vst [vmem:[#allocation1] sm:$0xf] %v17_v0  ;;  %v38_v3 = vand.u32 127, %v37_v1  ;;  %v41_v4 = vshrl.u32 %v37_v1, 7 }
   0x4   :  { %vm39_vm0 = vcmp.lt.s32.totalorder %v38_v3, 3  ;;  %vm48_vm1 = vcmp.ge.s32.totalorder %v41_v4, %v38_v3  ;;  %vm43_vm2 = vcmp.eq.s32.totalorder %v41_v4, %v38_v3  ;;  %vm62_vm4 = vcmp.eq.s32.totalorder %v38_v3, 0 }
   0x5   :  { %vm49_vm3 = vmand %vm48_vm1, %vm39_vm0  ;;  %vm59_vm5 = vcmp.eq.s32.totalorder %v38_v3, %v41_v4  ;;  %v63_v12 = vsel %vm62_vm4, 1.0, %v138_v11  ;;  %vm70_vm6 = vcmp.eq.s32.totalorder %v38_v3, 1  ;;  %vm80_vm7 = vcmp.eq.s32.totalorder %v38_v3, 2 }
   0x6   :  { %v64_v13 = vsel %vm59_vm5, %v63_v12, 0.0 }
   0x9   :  { %v35_v2 = vld [vmem:[#allocation1] sm:$0xf] }
   0xa   :  { %36 = vst [vmem:[#allocation0] sm:$0xf] %v35_v2 }
  0x11   :  { %v44_v5 = vld [vmem:[#allocation0] sm:$0xff] }
  0x12   :  { %v45_v6 = vsel %vm43_vm2, %v44_v5, 0.0  ;;  %v50_v7 = vsel %vm49_vm3, %v44_v5, 0.0 }
  0x13   :  { %46 = vadd.xlane.f32.xlu0 %v45_v6 }
  0xa0   :  { %v47_v8 = vpop.xlane.xlu0 %46 }
  0xa1   :  { %136 = vrcp.f32 %v47_v8  ;;  %vm87_vm8 = vweird.f32 %v47_v8 }
  0xab   :  { %v137_v9 = vpop.eup %136 }
  0xac   :  { %v52_v10 = vmul.f32 %v137_v9, %v50_v7 }
  0xae   :  { %53 = vst [vmem:[#allocation4] sm:$0xff] %v52_v10 }
  0xb5   :  { %v66_v14 = vld [vmem:[#allocation4 + $0x1] ss:$0 sm:$0xff]  ;;  %v76_v17 = vld [vmem:[#allocation4 + $0x2] ss:$0 sm:$0xff] }
  0xb6   :  { %v67_v15 = vxor.u32 2147483648, %v66_v14  ;;  %v77_v19 = vxor.u32 2147483648, %v76_v17 }
  0xb8   :  { %v71_v16 = vmul.f32 %v67_v15, %v64_v13 }
  0xba   :  { %72 = vadd.xlane.f32.xlu0 %v71_v16 }
 0x147   :  { %v73_v18 = vpop.xlane.xlu0 %72 }
 0x148   :  { %v74_v20 = vsel %vm70_vm6, %v73_v18, %v64_v13 }
 0x149   :  { %v81_v21 = vmul.f32 %v77_v19, %v74_v20 }
 0x14b   :  { %82 = vadd.xlane.f32.xlu1 %v81_v21 }
 0x1d8   :  { %v83_v22 = vpop.xlane.xlu1 %82 }
 0x1d9   :  { %v84_v23 = vsel %vm80_vm7, %v83_v22, %v74_v20 }
 0x1da   :  { %v86_v24 = vmul.f32 %v137_v9, %v84_v23 }
 0x1dc   :  { %v88_v25 = vsel %vm87_vm8, %v84_v23, %v86_v24 }
 0x1dd   :  { %89 = vst [vmem:[#allocation2] sm:$0xff] %v88_v25 }
 0x1e4   :  { %v93_v26 = vld [vmem:[#allocation2] sm:$0xf] }
 0x1e5   :  { %95 = vst [vmem:[#allocation3] sm:$0xf] %v93_v26 }
 0x1ec   :  { %v111_v27 = vld [vmem:[#allocation3] sm:$0xf] }
 0x1ed   :  { %112 = vst [vmem:[%s156_s1] sm:$0xf] %v111_v27 }

// kernel: custom-call.100
= control target key start
LH: loop header
LB: loop body
LE: loop exit
PB: predicated region body
PF: predicated region fallthrough
CT: control target
= control target key end

     0   :  { %v292_v3 = vlaneseq  ;;  %v1743_v5 = vmov 0.0   ;;  %s281_s17 = smov [#allocation22]  ;;  %s284_s18 = smov [#allocation23]  ;;  %s2025_s0 = inlined_call_operand.vmem [shape: f32[2,2], index: 0, kind: input, shape index: {}]   ;;  %s2026_s1 = inlined_call_operand.vmem [shape: f32[2,2], index: 1, kind: input, shape index: {}]   ;;  %s2027_s2 = inlined_call_operand.vmem [shape: f32[2,2], index: 2, kind: input, shape index: {}]   ;;  %s2028_s3 = inlined_call_operand.vmem [shape: f32[2,2], index: 3, kind: input, shape index: {}]   ;;  %s2029_s4 = inlined_call_operand.vmem [shape: f32[2], index: 4, kind: output, shape index: {0}]   ;;  %s2030_s5 = inlined_call_operand.vmem [shape: f32[2], index: 5, kind: output, shape index: {1}]   ;;  %s2031_s6 = inlined_call_operand.vmem [shape: f32[2,2], index: 6, kind: output, shape index: {2}]   ;;  %s2032_s7 = inlined_call_operand.vmem [shape: f32[2,2], index: 7, kind: output, shape index: {3}]   ;;  %s2033_s8 = inlined_call_operand.vmem [shape: f32[2,2], index: 8, kind: output, shape index: {4}]   ;;  %s2034_s9 = inlined_call_operand.vmem [shape: f32[2,2], index: 9, kind: output, shape index: {5}]  }
   0x1   :  { %v71_v0 = vld [vmem:[%s2025_s0] sm:$0x3]  ;;  %287 = vst [vmem:[#allocation12] sm:$0xff] %v1743_v5  ;;  %288 = vst [vmem:[#allocation14] sm:$0xff] %v1743_v5  ;;  %s291_s0 = smov [#allocation12]  ;;  %s1441_s19 = smov [#allocation20] }
   0x2   :  { %v133_v1 = vld [vmem:[%s2026_s1] sm:$0x3]  ;;  %72 = vst [vmem:[#allocation1] sm:$0x3] %v71_v0  ;;  %289 = vst [vmem:[#allocation16] sm:$0xff] %v1743_v5  ;;  %v1808_v6 = vand.u32 127, %v292_v3 }
   0x3   :  { %v195_v2 = vld [vmem:[%s2027_s2] sm:$0x3]  ;;  %134 = vst [vmem:[#allocation3] sm:$0x3] %v133_v1  ;;  %290 = vst [vmem:[#allocation18] sm:$0xff] %v1743_v5  ;;  %v1810_v7 = vshrl.u32 %v292_v3, 7 }
   0x4   :  { %196 = vst [vmem:[#allocation5] sm:$0x3] %v195_v2  ;;  %v257_v4 = vld [vmem:[%s2028_s3] sm:$0x3]  ;;  %v294_v6 = vmov %v1808_v6  ;;  %s304_s1 = smov [#allocation18]  ;;  %s275_s2 = smov [#allocation20] }
   0x5   :  { %258 = vst [vmem:[#allocation7] sm:$0x3] %v257_v4  ;;  %v297_v7 = vmov %v1810_v7  ;;  %v307_v6 = vmov %v1808_v6  ;;  %s278_s3 = smov [#allocation21]  ;;  %vm1445_vm2 = vcmp.lt.s32.totalorder %v1808_v6, 2  ;;  %s1458_s20 = smov [#allocation21] }
   0x6   :  { %v310_v7 = vmov %v1810_v7  ;;  %vm301_vm0 = vcmp.eq.s32.totalorder %v297_v7, %v294_v6  ;;  %s1475_s21 = smov [#allocation22]  ;;  %s1492_s22 = smov [#allocation23] }
   0x7   :  { %vm314_vm1 = vcmp.eq.s32.totalorder %v310_v7, %v307_v6  ;;  %v1437_v6 = vmov %v1808_v6  ;;  %v1440_v7 = vmov %v1810_v7 }
   0x8   :  { %v298_v12 = vld [vmem:[%s291_s0] sm:$0x3]  ;;  %vm1450_vm3 = vcmp.eq.s32.totalorder %v1440_v7, %v1437_v6  ;;  %v1488_v6 = vmov %v1808_v6  ;;  %v1457_v7 = vmov %v1810_v7 }
   0x9   :  { %v261_v8 = vld [vmem:[#allocation1] sm:$0x3]  ;;  %v302_v14 = vsel %vm301_vm0, 1.0, %v298_v12  ;;  %v1454_v6 = vmov %v1808_v6  ;;  %v1491_v7 = vmov %v1810_v7 }
   0xa   :  { %v265_v9 = vld [vmem:[#allocation3] sm:$0x3]  ;;  %262 = vst [vmem:[#allocation0] sm:$0x3] %v261_v8  ;;  %v311_v13 = vld [vmem:[%s304_s1] sm:$0x3]  ;;  %v1471_v6 = vmov %v1808_v6  ;;  %v1474_v7 = vmov %v1810_v7  ;;  %vm1501_vm4 = vcmp.eq.s32.totalorder %v1491_v7, %v1488_v6 }
   0xb   :  { %v269_v10 = vld [vmem:[#allocation5] sm:$0x3]  ;;  %266 = vst [vmem:[#allocation2] sm:$0x3] %v265_v9  ;;  %v315_v15 = vsel %vm314_vm1, 1.0, %v311_v13  ;;  %303 = vst [vmem:[%s291_s0] sm:$0x3] %v302_v14 }
   0xc   :  { %270 = vst [vmem:[#allocation4] sm:$0x3] %v269_v10  ;;  %v273_v11 = vld [vmem:[#allocation7] sm:$0x3]  ;;  %316 = vst [vmem:[%s304_s1] sm:$0x3] %v315_v15 }
   0xd   :  { %274 = vst [vmem:[#allocation6] sm:$0x3] %v273_v11 }
  0x11   :  { %v276_v16 = vld [vmem:[#allocation0] sm:$0xff] }
  0x12   :  { %v279_v17 = vld [vmem:[#allocation2] sm:$0xff]  ;;  %277 = vst [vmem:[%s275_s2] sm:$0xff] %v276_v16 }
  0x13   :  { %v282_v18 = vld [vmem:[#allocation4] sm:$0xff]  ;;  %280 = vst [vmem:[%s278_s3] sm:$0xff] %v279_v17 }
  0x14   :  { %283 = vst [vmem:[%s281_s17] sm:$0xff] %v282_v18  ;;  %v285_v19 = vld [vmem:[#allocation6] sm:$0xff] }
  0x15   :  { %286 = vst [vmem:[%s284_s18] sm:$0xff] %v285_v19 }
  0x19   :  { %v1447_v20 = vld [vmem:[%s1441_s19] sm:$0x3] }
  0x1a   :  { %v1464_v21 = vld [vmem:[%s1458_s20] sm:$0x3]  ;;  %v1448_v22 = vsel %vm1445_vm2, %v1447_v20, 0.0 }
  0x1b   :  { %v1465_v23 = vsel %vm1445_vm2, %v1464_v21, 0.0  ;;  %v1481_v24 = vld [vmem:[%s1475_s21] sm:$0x3]  ;;  %v1449_v26 = vmul.f32 %v1448_v22, %v1448_v22 }
  0x1c   :  { %v1498_v25 = vld [vmem:[%s1492_s22] sm:$0x3]  ;;  %v1466_v27 = vmul.f32 %v1465_v23, %v1465_v23  ;;  %v1482_v28 = vsel %vm1445_vm2, %v1481_v24, 0.0 }
  0x1d   :  { %v1499_v29 = vsel %vm1445_vm2, %v1498_v25, 0.0  ;;  %v1483_v30 = vmul.f32 %v1482_v28, %v1482_v28  ;;  %v1451_v33 = vsel %vm1450_vm3, 0.0, %v1449_v26 }
  0x1e   :  { %v1468_v31 = vadd.f32 %v1466_v27, %v1449_v26  ;;  %v1500_v32 = vmul.f32 %v1499_v29, %v1499_v29  ;;  %v1467_v34 = vadd.f32 %v1466_v27, %v1451_v33 }
  0x20   :  { %v1485_v35 = vadd.f32 %v1483_v30, %v1468_v31  ;;  %v1484_v36 = vadd.f32 %v1483_v30, %v1467_v34  ;;  %v1502_v37 = vsel %vm1501_vm4, 0.0, %v1500_v32 }
  0x22   :  { %v1504_v38 = vadd.f32 %v1500_v32, %v1485_v35  ;;  %v1503_v39 = vadd.f32 %v1502_v37, %v1484_v36 }
  0x24   :  { %1505 = vadd.xlane.f32.xlu0 %v1504_v38 }
  0x28   :  { %1513 = vadd.xlane.f32.xlu0 %v1503_v39 }
  0xb1   :  { %v1506_v40 = vpop.xlane.xlu0 %1505 }
  0xb2   :  { %v1507_v41 = vrot.slane %v1506_v40, 4 }
  0xb4   :  { %v1508_v42 = vadd.f32 %v1507_v41, %v1506_v40 }
  0xb5   :  { %v1514_v43 = vpop.xlane.xlu0 %1513 }
  0xb6   :  { %v1509_v44 = vrot.slane %v1508_v42, 2  ;;  %v1515_v45 = vrot.slane %v1514_v43, 4 }
  0xb8   :  { %v1516_v46 = vadd.f32 %v1515_v45, %v1514_v43  ;;  %v1510_v47 = vadd.f32 %v1509_v44, %v1508_v42 }
  0xba   :  { %v1517_v48 = vrot.slane %v1516_v46, 2  ;;  %v1511_v50 = vrot.slane %v1510_v47, 1 }
  0xbc   :  { %v1518_v49 = vadd.f32 %v1517_v48, %v1516_v46  ;;  %v1512_v53 = vadd.f32 %v1511_v50, %v1510_v47 }
  0xbe   :  { %v1519_v51 = vrot.slane %v1518_v49, 1 }
  0xc0   :  { %v1520_v52 = vadd.f32 %v1519_v51, %v1518_v49 }
  0xc2   :  { %1692 = vpush %v1520_v52 }
  0xc3   :  { %1694 = vpush %v1512_v53 }
  0xf3   :  { %s1693_s23 = spop %1692 }
  0xf4   :  { %s1695_s24 = spop %1694 }
  0xf5   :  { %s1523_s25 = smul.f32 1e-10, %s1695_s24 }
  0xf7   :  { %p1524_p0 = scmp.le.f32.partialorder %s1693_s23, %s1523_s25 }
  0xf8   :  { %s1834_s26 = smov (!%p1524_p0), 0  }
  0xf9   :  { %1527 = sbr.rel (%p1524_p0) target bundleno = 931 (0x3a3), region = 440 }
 0x100 LB: > { %s1839_s27 = smov 0   ;;  %s1737_s26 = sphi %s1834_s26, %s2035_s26  }
 0x101 LB: >> { %s421_s28 = smov [#allocation20]  ;;  %v425_v6 = vmov %v1808_v6  ;;  %v428_v7 = vmov %v1810_v7  ;;  %s441_s29 = smov [#allocation21]  ;;  %vm744_vm14 = vcmp.eq.s32.totalorder %v1810_v7, 0  ;;  %vm756_vm15 = vcmp.eq.s32.totalorder %v1810_v7, 1  ;;  %s1741_s27 = sphi %s1839_s27, %s420_s27  }
 0x102   : >> { %v445_v6 = vmov %v1808_v6  ;;  %v448_v7 = vmov %v1810_v7  ;;  %v429_v54 = vld [vmem:[%s421_s28] sm:$0x3]  ;;  %vm432_vm5 = vcmp.eq.s32.totalorder %v428_v7, %v425_v6  ;;  %s461_s30 = smov [#allocation23]  ;;  %s422_s10 = smov [#allocation24] }
 0x103   : >> { %vm452_vm6 = vcmp.eq.s32.totalorder %v448_v7, %v445_v6  ;;  %v465_v6 = vmov %v1808_v6  ;;  %v468_v7 = vmov %v1810_v7  ;;  %v433_v55 = vsel %vm432_vm5, %v429_v54, 0.0  ;;  %v449_v56 = vld [vmem:[%s441_s29] sm:$0x3]  ;;  %s442_s11 = smov [#allocation25]  ;;  %s462_s12 = smov [#allocation26] }
 0x104   : >> { %vm472_vm7 = vcmp.eq.s32.totalorder %v468_v7, %v465_v6  ;;  %v434_v57 = vrot.slane %v433_v55, 4  ;;  %v453_v58 = vsel %vm452_vm6, %v449_v56, 0.0  ;;  %v469_v59 = vld [vmem:[%s461_s30] sm:$0x3]  ;;  %s485_s13 = smov [#allocation25]  ;;  %s483_s14 = smov [#allocation24]  ;;  %v534_v6 = vmov %v1808_v6 }
 0x105   : >> { %v454_v60 = vrot.slane %v453_v58, 4  ;;  %v473_v61 = vsel %vm472_vm7, %v469_v59, 0.0  ;;  %s487_s15 = smov [#allocation26]  ;;  %s522_s16 = smov [#allocation27]  ;;  %v537_v7 = vmov %v1810_v7  ;;  %v549_v6 = vmov %v1808_v6 }
 0x106   : >> { %v435_v62 = vadd.f32 %v434_v57, %v433_v55  ;;  %v474_v63 = vrot.slane %v473_v61, 4  ;;  %s524_s0 = smov [#allocation28]  ;;  %s481_s1 = smov [#allocation29]  ;;  %v552_v7 = vmov %v1810_v7  ;;  %vm539_vm12 = vcmp.eq.s32.totalorder %v537_v7, %v534_v6 }
 0x107   : >> { %v455_v0 = vadd.f32 %v454_v60, %v453_v58  ;;  %s482_s2 = smov [#allocation30]  ;;  %s526_s1 = smov %s481_s1  ;;  %vm554_vm13 = vcmp.eq.s32.totalorder %v552_v7, %v549_v6  ;;  %v647_v6 = vmov %v1808_v6  ;;  %v650_v7 = vmov %v1810_v7 }
 0x108   : >> { %v436_v1 = vrot.slane %v435_v62, 2  ;;  %v475_v2 = vadd.f32 %v474_v63, %v473_v61  ;;  %s528_s2 = smov %s482_s2  ;;  %s530_s3 = smov [#allocation29]  ;;  %v661_v6 = vmov %v1808_v6  ;;  %v664_v7 = vmov %v1810_v7 }
 0x109   : >> { %v456_v3 = vrot.slane %v455_v0, 2  ;;  %s545_s17 = smov [#allocation30]  ;;  %s543_s18 = smov [#allocation31]  ;;  %vm654_vm0 = vcmp.eq.s32.totalorder %v650_v7, %v647_v6  ;;  %v620_v6 = vmov %v1808_v6  ;;  %v623_v7 = vmov %v1810_v7 }
 0x10a   : >> { %v437_v4 = vadd.f32 %v436_v1, %v435_v62  ;;  %v476_v5 = vrot.slane %v475_v2, 2  ;;  %s560_s19 = smov [#allocation31]  ;;  %s1854_s20 = smov [#allocation20]  ;;  %v634_v6 = vmov %v1808_v6  ;;  %v637_v7 = vmov %v1810_v7 }
 0x10b   : >> { %v457_v8 = vadd.f32 %v456_v3, %v455_v0  ;;  %s558_s21 = smov [#allocation32]  ;;  %s1856_s22 = smov [#allocation21]  ;;  %v568_v53 = vld [vmem:[%s1854_s20] sm:$0x3]  ;;  %vm669_vm1 = vcmp.eq.s32.totalorder %v664_v7, %v661_v6  ;;  %vm628_vm3 = vcmp.eq.s32.totalorder %v623_v7, %v620_v6  ;;  %vm641_vm4 = vcmp.eq.s32.totalorder %v637_v7, %v634_v6 }
 0x10c   : >> { %v438_v9 = vrot.slane %v437_v4, 1  ;;  %v477_v10 = vadd.f32 %v476_v5, %v475_v2  ;;  %s1858_s23 = smov [#allocation22]  ;;  %s1860_s24 = smov [#allocation23]  ;;  %v569_v54 = vld [vmem:[%s1856_s22] sm:$0x3]  ;;  %vm683_vm5 = vcmp.eq.s32.totalorder %v1808_v6, 0 }
 0x10d   : >> { %v458_v11 = vrot.slane %v457_v8, 1  ;;  %s1862_s25 = smov [#allocation12]  ;;  %s1864_s28 = smov [#allocation14]  ;;  %v570_v55 = vld [vmem:[%s1858_s23] sm:$0x3]  ;;  %vm687_vm6 = vcmp.eq.s32.totalorder %v1808_v6, 1 }
 0x10e   : >> { %v439_v12 = vadd.f32 %v438_v9, %v437_v4  ;;  %v478_v13 = vrot.slane %v477_v10, 1  ;;  %s1866_s29 = smov [#allocation16]  ;;  %s784_s30 = smov [#allocation31]  ;;  %v571_v56 = vld [vmem:[%s1860_s24] sm:$0x3] }
 0x10f   : >> { %v459_v14 = vadd.f32 %v458_v11, %v457_v8  ;;  %v792_v57 = vld [vmem:[%s1862_s25] sm:$0x3]  ;;  %s420_s27 = sadd.s32 1, %s1741_s27  }
 0x110   : >> { %440 = vst [vmem:[%s422_s10] sm:$0x1] %v439_v12  ;;  %v479_v15 = vadd.f32 %v478_v13, %v477_v10  ;;  %s1870_s10 = smov [#allocation18]  ;;  %v793_v58 = vld [vmem:[%s1864_s28] sm:$0x3]  ;;  %p417_p1 = scmp.ge.s32.totalorder %s420_s27, 3  }
 0x111   : >> { %460 = vst [vmem:[%s442_s11] sm:$0x1] %v459_v14  ;;  %v794_v59 = vld [vmem:[%s1866_s29] sm:$0x3]  ;;  %s562_s11 = smov [#allocation32]  ;;  %v321_v6 = vmov (%p417_p1), %v1808_v6  ;;  %v324_v7 = vmov (%p417_p1), %v1810_v7 }
 0x112   : >> { %480 = vst [vmem:[%s462_s12] sm:$0x1] %v479_v15  ;;  %v795_v61 = vld [vmem:[%s1870_s10] sm:$0x3]  ;;  %s786_s12 = smov [#allocation32]  ;;  %v374_v6 = vmov (%p417_p1), %v1808_v6  ;;  %vm336_vm7 = vcmp.eq.s32.totalorder (%p417_p1), %v324_v7, %v321_v6  ;;  %v377_v7 = vmov (%p417_p1), %v1810_v7 }
 0x113   : > { %v340_v6 = vmov (%p417_p1), %v1808_v6  ;;  %v343_v7 = vmov (%p417_p1), %v1810_v7 }
 0x114   : > { %v357_v6 = vmov (%p417_p1), %v1808_v6  ;;  %v360_v7 = vmov (%p417_p1), %v1810_v7 }
 0x117   : >> { %v484_v18 = vld [vmem:[%s483_s14] sm:$0xff]  ;;  %s590_s14 = smov [#allocation30] }
 0x118   : >> { %v486_v16 = vld [vmem:[%s485_s13] sm:$0xff]  ;;  %v507_v31 = vand.u32 2147483647, %v484_v18  ;;  %s588_s13 = smov [#allocation29] }
 0x119   : >> { %v490_v17 = vmul.f32 2.0, %v486_v16  ;;  %v488_v19 = vld [vmem:[%s487_s15] sm:$0xff]  ;;  %v508_v36 = vand.u32 2147483647, %v486_v16  ;;  %s1886_s15 = smov [#allocation12] }
 0x11a   : >> { %v489_v20 = vsub.f32 %v488_v19, %v484_v18  ;;  %v509_v32 = vand.u32 2147483647, %v488_v19 }
 0x11b   : >> { %1719 = vrcp.f32 %v490_v17 }
 0x11c   : >> { %v510_v35 = vmin.f32 %v507_v31, %v509_v32 }
 0x11e   : >> { %v511_v37 = vmul.f32 1.1920929e-08, %v510_v35 }
 0x120   : >> { %vm512_vm11 = vcmp.le.f32.partialorder %v508_v36, %v511_v37 }
 0x125   : >> { %v1720_v21 = vpop.eup %1719 }
 0x126   : >> { %v492_v22 = vmul.f32 %v1720_v21, %v489_v20 }
 0x128   : >> { %v494_v23 = vmul.f32 %v492_v22, %v492_v22  ;;  %vm493_vm10 = vcmp.ge.f32.partialorder %v492_v22, 0.0 }
 0x12a   : >> { %v495_v24 = vadd.f32 1.0, %v494_v23 }
 0x12c   : >> { %1721 = vrsqrt.f32 %v495_v24  ;;  %vm498_vm8 = vcmp.eq.f32.partialorder %v495_v24, inf  ;;  %v501_v26 = vand.u32 2147483648, %v495_v24  ;;  %vm500_vm9 = vcmp.eq.f32.partialorder %v495_v24, 0.0 }
 0x136   : >> { %v1722_v25 = vpop.eup %1721 }
 0x137   : >> { %v497_v27 = vmul.f32 %v1722_v25, %v495_v24 }
 0x139   : >> { %v499_v28 = vsel %vm498_vm8, %v495_v24, %v497_v27  ;;  %vm389_vm8 = vcmp.eq.s32.totalorder (%p417_p1), %v377_v7, %v374_v6 }
 0x13a   : >> { %v502_v29 = vsel %vm500_vm9, %v501_v26, %v499_v28 }
 0x13b   : >> { %v503_v30 = vxor.u32 2147483648, %v502_v29 }
 0x13d   : >> { %v504_v33 = vsel %vm493_vm10, %v502_v29, %v503_v30 }
 0x13e   : >> { %v505_v34 = vadd.f32 %v504_v33, %v492_v22 }
 0x140   : >> { %1723 = vrcp.f32 %v505_v34 }
 0x14a   : >> { %v1724_v38 = vpop.eup %1723 }
 0x14b   : >> { %v513_v39 = vsel %vm512_vm11, 0.0, %v1724_v38 }
 0x14c   : >> { %v514_v40 = vmul.f32 %v513_v39, %v513_v39  ;;  %v518_v41 = vmul.f32 %v513_v39, %v486_v16 }
 0x14e   : >> { %v515_v42 = vadd.f32 1.0, %v514_v40  ;;  %v519_v43 = vsub.f32 %v484_v18, %v518_v41  ;;  %v521_v44 = vadd.f32 %v518_v41, %v488_v19 }
 0x150   : >> { %1725 = vrsqrt.f32 %v515_v42  ;;  %523 = vst [vmem:[%s522_s16] sm:$0xff] %v519_v43  ;;  %525 = vst [vmem:[%s524_s0] sm:$0xff] %v521_v44  ;;  %s1888_s16 = smov [#allocation22]  ;;  %s1890_s0 = smov [#allocation23] }
 0x15a   : >> { %v1726_v45 = vpop.eup %1725 }
 0x15b   : >> { %527 = vst [vmem:[%s526_s1] sm:$0xff] %v1726_v45  ;;  %v517_v46 = vmul.f32 %v1726_v45, %v513_v39  ;;  %s1892_s1 = smov [#allocation20] }
 0x15d   : >> { %529 = vst [vmem:[%s528_s2] sm:$0xff] %v517_v46  ;;  %s1894_s2 = smov [#allocation16] }
 0x162   : >> { %v531_v47 = vld [vmem:[%s530_s3] ss:$0 sm:$0xff]  ;;  %s1896_s3 = smov [#allocation14] }
 0x163   : >> { %v540_v48 = vsel %vm539_vm12, %v531_v47, 0.0  ;;  %v589_v27 = vld [vmem:[%s588_s13] ss:$0 sm:$0xff]  ;;  %s760_s13 = smov [#allocation21] }
 0x164   : >> { %541 = vadd.xlane.f32.xlu0 %v540_v48  ;;  %v546_v49 = vld [vmem:[%s545_s17] ss:$0 sm:$0xff]  ;;  %s1900_s17 = smov [#allocation18] }
 0x165   : >> { %v555_v50 = vsel %vm554_vm13, %v546_v49, 0.0  ;;  %v591_v28 = vld [vmem:[%s590_s14] ss:$0 sm:$0xff]  ;;  %s737_s14 = smov [#allocation22] }
 0x168   : >> { %556 = vadd.xlane.f32.xlu0 %v555_v50 }
 0x1f1   : >> { %v542_v51 = vpop.xlane.xlu0 %541 }
 0x1f2   : >> { %544 = vst [vmem:[%s543_s18] sm:$0xff] %v542_v51  ;;  %s1902_s18 = smov [#allocation21] }
 0x1f5   : >> { %v557_v52 = vpop.xlane.xlu0 %556 }
 0x1f6   : >> { %559 = vst [vmem:[%s558_s21] sm:$0xff] %v557_v52  ;;  %s657_s21 = smov [#allocation23] }
 0x1f9   : >> { %v561_v60 = vld [vmem:[%s560_s19] sm:$0xff]  ;;  %s658_s19 = smov [#allocation28] }
 0x1fa   : >> { %v785_v62 = vld [vmem:[%s784_s30] sm:$0xff]  ;;  %v572_v63 = vmul.f32 %v568_v53, %v561_v60  ;;  %v575_v0 = vmul.f32 %v569_v54, %v561_v60  ;;  %v579_v1 = vmul.f32 %v570_v55, %v561_v60  ;;  %v582_v2 = vmul.f32 %v571_v56, %v561_v60  ;;  %s673_s30 = smov [#allocation21] }
 0x1fb   : >> { %v796_v3 = vmul.f32 %v792_v57, %v785_v62  ;;  %v799_v4 = vmul.f32 %v793_v58, %v785_v62  ;;  %v803_v5 = vmul.f32 %v794_v59, %v785_v62  ;;  %v806_v8 = vmul.f32 %v795_v61, %v785_v62 }
 0x1fd   : >> { %v563_v9 = vld [vmem:[%s562_s11] sm:$0xff]  ;;  %s1947_s11 = smov [#allocation23] }
 0x1fe   : >> { %v787_v10 = vld [vmem:[%s786_s12] sm:$0xff]  ;;  %v573_v11 = vmul.f32 %v570_v55, %v563_v9  ;;  %v576_v12 = vmul.f32 %v571_v56, %v563_v9  ;;  %v578_v13 = vmul.f32 %v568_v53, %v563_v9  ;;  %v581_v14 = vmul.f32 %v569_v54, %v563_v9  ;;  %s736_s12 = smov [#allocation20] }
 0x1ff   : >> { %v797_v15 = vmul.f32 %v794_v59, %v787_v10  ;;  %v800_v16 = vmul.f32 %v795_v61, %v787_v10  ;;  %v802_v17 = vmul.f32 %v792_v57, %v787_v10  ;;  %v805_v18 = vmul.f32 %v793_v58, %v787_v10  ;;  %v665_v59 = vld [vmem:[%s658_s19] ss:$0 sm:$0xff] }
 0x200   : >> { %v574_v19 = vsub.f32 %v572_v63, %v573_v11  ;;  %v577_v20 = vsub.f32 %v575_v0, %v576_v12  ;;  %v580_v21 = vadd.f32 %v579_v1, %v578_v13  ;;  %v583_v22 = vadd.f32 %v582_v2, %v581_v14 }
 0x201   : >> { %v798_v23 = vsub.f32 %v796_v3, %v797_v15  ;;  %v801_v24 = vsub.f32 %v799_v4, %v800_v16  ;;  %v804_v25 = vadd.f32 %v803_v5, %v802_v17  ;;  %v807_v26 = vadd.f32 %v806_v8, %v805_v18 }
 0x202   : >> { %585 = vst [vmem:[%s1856_s22] sm:$0x3] %v577_v20  ;;  %587 = vst [vmem:[%s1860_s24] sm:$0x3] %v583_v22  ;;  %s617_s22 = smov [#allocation27]  ;;  %s631_s24 = smov [#allocation21] }
 0x203   : >> { %584 = vst [vmem:[%s1854_s20] sm:$0x3] %v574_v19  ;;  %586 = vst [vmem:[%s1858_s23] sm:$0x3] %v580_v21  ;;  %s644_s20 = smov [#allocation22]  ;;  %s616_s23 = smov [#allocation20]  ;;  %v624_v63 = vld [vmem:[%s617_s22] ss:$0 sm:$0xff] }
 0x204   : >> { %808 = vst [vmem:[%s1862_s25] sm:$0x3] %v798_v23  ;;  %809 = vst [vmem:[%s1864_s28] sm:$0x3] %v801_v24  ;;  %s1944_s25 = smov [#allocation22]  ;;  %s1744_s28 = smov 1  }
 0x205   : >> { %810 = vst [vmem:[%s1866_s29] sm:$0x3] %v804_v25  ;;  %811 = vst [vmem:[%s1870_s10] sm:$0x3] %v807_v26  ;;  %s672_s29 = smov [#allocation20]  ;;  %s1745_s10 = smov 127  }
 0x209   : >> { %v599_v30 = vld [vmem:[%s1890_s0] sm:$0x3] }
 0x20a   : >> { %v598_v29 = vld [vmem:[%s1888_s16] sm:$0x3]  ;;  %v607_v36 = vmul.f32 %v599_v30, %v591_v28  ;;  %v610_v42 = vmul.f32 %v599_v30, %v589_v27 }
 0x20b   : >> { %v596_v31 = vld [vmem:[%s1892_s1] sm:$0x3]  ;;  %v606_v35 = vmul.f32 %v598_v29, %v589_v27  ;;  %v609_v37 = vmul.f32 %v598_v29, %v591_v28 }
 0x20c   : >> { %v814_v32 = vld [vmem:[%s1886_s15] ss:$0 sm:$0xff]  ;;  %v1667_v34 = vld [vmem:[%s1886_s15 + $0x1] ss:$0 sm:$0xff]  ;;  %v600_v48 = vmul.f32 %v596_v31, %v589_v27  ;;  %v603_v49 = vmul.f32 %v596_v31, %v591_v28 }
 0x20d   : >> { %v1666_v33 = vld [vmem:[%s1886_s15 - $0x1] sm:$0x2]  ;;  %v1669_v40 = vld [vmem:[%s1894_s2 + $0x1] sm:$0x1]  ;;  %v608_v47 = vsub.f32 %v606_v35, %v607_v36  ;;  %v611_v53 = vadd.f32 %v610_v42, %v609_v37 }
 0x20e   : >> { %v821_v38 = vsel %vm744_vm14, %v814_v32, %v1666_v33  ;;  %v825_v39 = vld [vmem:[%s1894_s2] ss:$0 sm:$0xff]  ;;  %v833_v43 = vsel %vm756_vm15, %v1667_v34, %v1669_v40  ;;  %v1671_v45 = vld [vmem:[%s1896_s3 + $0x1] ss:$0 sm:$0xff] }
 0x20f   : >> { %v838_v41 = vld [vmem:[%s1896_s3] ss:$0 sm:$0xff]  ;;  %824 = vst [vmem:[%s1886_s15] sm:$0x3] %v821_v38  ;;  %835 = vst [vmem:[%s1894_s2] sm:$0x3] %v833_v43  ;;  %v1673_v51 = vld [vmem:[%s1900_s17 + $0x1] sm:$0x1] }
 0x210   : >> { %v1670_v44 = vld [vmem:[%s1896_s3 - $0x1] sm:$0x2]  ;;  %1668 = vst [vmem:[%s1886_s15 + $0x1] sm:$0x1] %v825_v39  ;;  %v857_v54 = vsel %vm756_vm15, %v1671_v45, %v1673_v51  ;;  %614 = vst [vmem:[%s1888_s16] sm:$0x3] %v608_v47  ;;  %s761_s15 = smov [#allocation23] }
 0x211   : >> { %v849_v46 = vld [vmem:[%s1900_s17] ss:$0 sm:$0xff]  ;;  %v845_v50 = vsel %vm744_vm14, %v838_v41, %v1670_v44  ;;  %615 = vst [vmem:[%s1890_s0] sm:$0x3] %v611_v53  ;;  %s860_s16 = sadd.s32 (%p417_p1), 1, %s1737_s26   ;;  %s325_s0 = smov (%p417_p1), [#allocation20] }
 0x212   : >> { %v597_v52 = vld [vmem:[%s1902_s18] sm:$0x3]  ;;  %848 = vst [vmem:[%s1896_s3] sm:$0x3] %v845_v50  ;;  %859 = vst [vmem:[%s1900_s17] sm:$0x3] %v857_v54  ;;  %s361_s2 = smov (%p417_p1), [#allocation22]  ;;  %p413_p2 = scmp.ge.s32.totalorder (%p417_p1), %s860_s16, 15 }
 0x213   : >> { %v601_v55 = vmul.f32 %v597_v52, %v591_v28  ;;  %v604_v56 = vmul.f32 %v597_v52, %v589_v27  ;;  %1672 = vst [vmem:[%s1896_s3 + $0x1] sm:$0x1] %v849_v46  ;;  %s378_s3 = smov (%p417_p1), [#allocation23]  ;;  %s2035_s26 = smov (%p417_p1), %s860_s16 }
 0x215   : >> { %v602_v57 = vsub.f32 %v600_v48, %v601_v55  ;;  %v605_v58 = vadd.f32 %v604_v56, %v603_v49 }
 0x217   : >> { %612 = vst [vmem:[%s1892_s1] sm:$0x3] %v602_v57  ;;  %613 = vst [vmem:[%s1902_s18] sm:$0x3] %v605_v58  ;;  %v651_v60 = vld [vmem:[%s644_s20] sm:$0x3]  ;;  %s344_s1 = smov (%p417_p1), [#allocation21] }
 0x218   : >> { %v655_v61 = vsel %vm654_vm0, 0.0, %v651_v60  ;;  %v666_v62 = vld [vmem:[%s657_s21] sm:$0x3] }
 0x219   : >> { %656 = vst [vmem:[%s644_s20] sm:$0x3] %v655_v61  ;;  %v670_v0 = vsel %vm669_vm1, %v665_v59, %v666_v62 }
 0x21a   : >> { %671 = vst [vmem:[%s657_s21] sm:$0x3] %v670_v0 }
 0x21e   : >> { %v625_v1 = vld [vmem:[%s616_s23] sm:$0x3] }
 0x21f   : >> { %v638_v2 = vld [vmem:[%s631_s24] sm:$0x3]  ;;  %v629_v3 = vsel %vm628_vm3, %v624_v63, %v625_v1 }
 0x220   : >> { %v642_v4 = vsel %vm641_vm4, 0.0, %v638_v2  ;;  %630 = vst [vmem:[%s616_s23] sm:$0x3] %v629_v3  ;;  %v710_v5 = vld [vmem:[%s1944_s25] sm:$0x3] }
 0x221   : >> { %643 = vst [vmem:[%s631_s24] sm:$0x3] %v642_v4  ;;  %711 = vrot.lane.b32.xlu0 %v710_v5, %s1744_s28  ;;  %v706_v11 = vld [vmem:[%s1947_s11] sm:$0x3] }
 0x222   : >> { %v727_v12 = vld [vmem:[%s1947_s11] sm:$0x3] }
 0x223   : >> { %v709_v30 = vld [vmem:[%s1944_s25] sm:$0x3] }
 0x227   : >> { %v678_v8 = vld [vmem:[%s672_s29] sm:$0x3] }
 0x228   : >> { %679 = vrot.lane.b32.xlu1 %v678_v8, %s1744_s28  ;;  %v674_v9 = vld [vmem:[%s673_s30] sm:$0x3] }
 0x229   : >> { %v695_v10 = vld [vmem:[%s673_s30] sm:$0x3] }
 0x22a   : >> { %v677_v18 = vld [vmem:[%s672_s29] sm:$0x3] }
 0x22c   : >> { %675 = vrot.lane.b32.xlu1 %v674_v9, %s1744_s28 }
 0x230   : >> { %696 = vrot.lane.b32.xlu1 %v695_v10, %s1745_s10 }
 0x234   : >> { %707 = vrot.lane.b32.xlu1 %v706_v11, %s1744_s28 }
 0x238   : >> { %728 = vrot.lane.b32.xlu1 %v727_v12, %s1745_s10 }
 0x293   : >> { %v712_v20 = vpop.permute.xlu0 %711 }
 0x294   : >> { %v716_v22 = vsel %vm683_vm5, %v710_v5, %v712_v20 }
 0x29a   : >> { %v680_v13 = vpop.permute.xlu1 %679 }
 0x29b   : >> { %v684_v14 = vsel %vm683_vm5, %v678_v8, %v680_v13 }
 0x29e   : >> { %v676_v15 = vpop.permute.xlu1 %675 }
 0x29f   : >> { %v688_v16 = vsel %vm687_vm6, %v676_v15, %v684_v14 }
 0x2a0   : >> { %v694_v17 = vsel %vm1445_vm2, %v688_v16, 0.0 }
 0x2a1   : >> { %702 = vst [vmem:[%s672_s29] sm:$0x3] %v694_v17 }
 0x2a2   : >> { %v697_v19 = vpop.permute.xlu1 %696 }
 0x2a3   : >> { %v701_v21 = vsel %vm687_vm6, %v677_v18, %v697_v19 }
 0x2a4   : >> { %703 = vst [vmem:[%s673_s30] sm:$0x3] %v701_v21 }
 0x2a6   : >> { %v708_v23 = vpop.permute.xlu1 %707 }
 0x2a7   : >> { %v720_v24 = vsel %vm687_vm6, %v708_v23, %v716_v22 }
 0x2a8   : >> { %v738_v25 = vld [vmem:[%s736_s12] ss:$0 sm:$0xff]  ;;  %v1659_v27 = vld [vmem:[%s736_s12 + $0x1] ss:$0 sm:$0xff]  ;;  %v726_v29 = vsel %vm1445_vm2, %v720_v24, 0.0 }
 0x2a9   : >> { %v1658_v26 = vld [vmem:[%s736_s12 - $0x1] sm:$0x2]  ;;  %734 = vst [vmem:[%s1944_s25] sm:$0x3] %v726_v29 }
 0x2aa   : >> { %v745_v28 = vsel %vm744_vm14, %v738_v25, %v1658_v26  ;;  %v729_v31 = vpop.permute.xlu1 %728 }
 0x2ab   : >> { %748 = vst [vmem:[%s736_s12] sm:$0x3] %v745_v28  ;;  %v762_v32 = vld [vmem:[%s760_s13] ss:$0 sm:$0xff]  ;;  %v1663_v34 = vld [vmem:[%s760_s13 + $0x1] ss:$0 sm:$0xff]  ;;  %v733_v35 = vsel %vm687_vm6, %v709_v30, %v729_v31 }
 0x2ac   : >> { %v1662_v33 = vld [vmem:[%s760_s13 - $0x1] sm:$0x2]  ;;  %735 = vst [vmem:[%s1947_s11] sm:$0x3] %v733_v35 }
 0x2ad   : >> { %v769_v36 = vsel %vm744_vm14, %v762_v32, %v1662_v33 }
 0x2ae   : >> { %772 = vst [vmem:[%s760_s13] sm:$0x3] %v769_v36 }
 0x2b0   : >> { %v749_v37 = vld [vmem:[%s737_s14] ss:$0 sm:$0xff]  ;;  %v1661_v38 = vld [vmem:[%s737_s14 + $0x1] sm:$0x1] }
 0x2b1   : >> { %1660 = vst [vmem:[%s736_s12 + $0x1] sm:$0x1] %v749_v37  ;;  %v757_v39 = vsel %vm756_vm15, %v1659_v27, %v1661_v38  ;;  %419 = sbr.rel (!%p417_p1) target bundleno = 257 (0x101), region = 435 }
 0x2b2   : >> { %759 = vst [vmem:[%s737_s14] sm:$0x3] %v757_v39 }
 0x2b3   : >> { %v773_v40 = vld [vmem:[%s761_s15] ss:$0 sm:$0xff]  ;;  %v1665_v41 = vld [vmem:[%s761_s15 + $0x1] sm:$0x1] }
 0x2b4   : >> { %1664 = vst [vmem:[%s760_s13 + $0x1] sm:$0x1] %v773_v40  ;;  %v781_v42 = vsel %vm756_vm15, %v1663_v34, %v1665_v41 }
 0x2b5   : >> { %783 = vst [vmem:[%s761_s15] sm:$0x3] %v781_v42 }
 0x2b8   : > { %v331_v43 = vld [vmem:[%s325_s0] sm:$0x3] }
 0x2b9   : > { %v332_v45 = vsel %vm1445_vm2, %v331_v43, 0.0  ;;  %v367_v47 = vld [vmem:[%s361_s2] sm:$0x3] }
 0x2ba   : > { %v333_v49 = vmul.f32 %v332_v45, %v332_v45  ;;  %v368_v51 = vsel %vm1445_vm2, %v367_v47, 0.0 }
 0x2bb   : > { %v350_v44 = vld [vmem:[%s344_s1] sm:$0x3]  ;;  %v369_v53 = vmul.f32 %v368_v51, %v368_v51 }
 0x2bc   : > { %v351_v46 = vsel %vm1445_vm2, %v350_v44, 0.0  ;;  %v384_v48 = vld [vmem:[%s378_s3] sm:$0x3]  ;;  %v337_v56 = vsel %vm336_vm7, 0.0, %v333_v49 }
 0x2bd   : > { %v352_v50 = vmul.f32 %v351_v46, %v351_v46  ;;  %v385_v52 = vsel %vm1445_vm2, %v384_v48, 0.0 }
 0x2be   : > { %v386_v55 = vmul.f32 %v385_v52, %v385_v52 }
 0x2bf   : > { %v354_v54 = vadd.f32 %v352_v50, %v333_v49  ;;  %v353_v57 = vadd.f32 %v352_v50, %v337_v56 }
 0x2c0   : > { %v390_v60 = vsel %vm389_vm8, 0.0, %v386_v55 }
 0x2c1   : > { %v371_v58 = vadd.f32 %v369_v53, %v354_v54  ;;  %v370_v59 = vadd.f32 %v369_v53, %v353_v57 }
 0x2c3   : > { %v392_v61 = vadd.f32 %v386_v55, %v371_v58  ;;  %v391_v62 = vadd.f32 %v390_v60, %v370_v59 }
 0x2c5   : > { %393 = vadd.xlane.f32.xlu0 %v392_v61 }
 0x2c9   : > { %401 = vadd.xlane.f32.xlu0 %v391_v62 }
 0x352   : > { %v394_v63 = vpop.xlane.xlu0 %393 }
 0x353   : > { %v395_v0 = vrot.slane %v394_v63, 4 }
 0x355   : > { %v396_v1 = vadd.f32 %v395_v0, %v394_v63 }
 0x356   : > { %v402_v2 = vpop.xlane.xlu0 %401 }
 0x357   : > { %v397_v3 = vrot.slane %v396_v1, 2  ;;  %v403_v4 = vrot.slane %v402_v2, 4 }
 0x359   : > { %v404_v5 = vadd.f32 %v403_v4, %v402_v2  ;;  %v398_v8 = vadd.f32 %v397_v3, %v396_v1 }
 0x35b   : > { %v405_v9 = vrot.slane %v404_v5, 2  ;;  %v399_v11 = vrot.slane %v398_v8, 1 }
 0x35d   : > { %v406_v10 = vadd.f32 %v405_v9, %v404_v5  ;;  %v400_v14 = vadd.f32 %v399_v11, %v398_v8 }
 0x35f   : > { %v407_v12 = vrot.slane %v406_v10, 1 }
 0x361   : > { %v408_v13 = vadd.f32 %v407_v12, %v406_v10 }
 0x363   : > { %1696 = vpush %v408_v13 }
 0x364   : > { %1698 = vpush %v400_v14 }
 0x394   : > { %s1697_s27 = spop %1696 }
 0x395   : > { %s1699_s17 = spop %1698 }
 0x396   : > { %s411_s18 = smul.f32 1e-10, %s1699_s17 }
 0x398   : > { %p412_p3 = scmp.le.f32.partialorder %s1697_s27, %s411_s18 }
 0x39a   : > { %p414_p4 = por %p413_p2, %p412_p3 }
 0x39c   :  { %862 = sbr.rel (!%p414_p4) target bundleno = 256 (0x100), region = 446 }
 0x3a3 PF:  { %s863_s19 = smov [#allocation20]  ;;  %v867_v6 = vmov %v1808_v6  ;;  %v870_v7 = vmov %v1810_v7  ;;  %v918_v15 = vld [vmem:[#allocation12] sm:$0x3]  ;;  %v924_v16 = vld [vmem:[#allocation14] sm:$0x3]  ;;  %s883_s20 = smov [#allocation23] }
 0x3a4   :  { %v887_v6 = vmov %v1808_v6  ;;  %v890_v7 = vmov %v1810_v7  ;;  %v871_v17 = vld [vmem:[%s863_s19] sm:$0x3]  ;;  %vm874_vm9 = vcmp.eq.s32.totalorder %v870_v7, %v867_v6  ;;  %920 = vst [vmem:[#allocation13] sm:$0x3] %v918_v15  ;;  %926 = vst [vmem:[#allocation15] sm:$0x3] %v924_v16 }
 0x3a5   :  { %vm894_vm10 = vcmp.eq.s32.totalorder %v890_v7, %v887_v6  ;;  %v930_v18 = vld [vmem:[#allocation16] sm:$0x3]  ;;  %v875_v19 = vsel %vm874_vm9, %v871_v17, 0.0  ;;  %v891_v20 = vld [vmem:[%s883_s20] sm:$0x3]  ;;  %s864_s30 = smov [#allocation8] }
 0x3a6   :  { %932 = vst [vmem:[#allocation17] sm:$0x3] %v930_v18  ;;  %v936_v21 = vld [vmem:[#allocation18] sm:$0x3]  ;;  %v876_v22 = vrot.slane %v875_v19, 4  ;;  %v895_v23 = vsel %vm894_vm10, %v891_v20, 0.0 }
 0x3a7   :  { %938 = vst [vmem:[#allocation19] sm:$0x3] %v936_v21  ;;  %v896_v24 = vrot.slane %v895_v23, 4 }
 0x3a8   :  { %v877_v25 = vadd.f32 %v876_v22, %v875_v19 }
 0x3a9   :  { %v897_v26 = vadd.f32 %v896_v24, %v895_v23 }
 0x3aa   :  { %v878_v27 = vrot.slane %v877_v25, 2 }
 0x3ab   :  { %v898_v28 = vrot.slane %v897_v26, 2  ;;  %v1127_v29 = vld [vmem:[#allocation13] sm:$0x3]  ;;  %v1189_v30 = vld [vmem:[#allocation15] sm:$0x3] }
 0x3ac   :  { %v879_v31 = vadd.f32 %v878_v27, %v877_v25  ;;  %1128 = vst [vmem:[%s2031_s6] sm:$0x3] %v1127_v29  ;;  %1190 = vst [vmem:[%s2032_s7] sm:$0x3] %v1189_v30  ;;  %s884_s6 = smov [#allocation10] }
 0x3ad   :  { %v1251_v6 = vld [vmem:[#allocation17] sm:$0x3]  ;;  %v899_v7 = vadd.f32 %v898_v28, %v897_v26 }
 0x3ae   :  { %1252 = vst [vmem:[%s2033_s8] sm:$0x3] %v1251_v6  ;;  %v1313_v32 = vld [vmem:[#allocation19] sm:$0x3]  ;;  %v880_v33 = vrot.slane %v879_v31, 1 }
 0x3af   :  { %1314 = vst [vmem:[%s2034_s9] sm:$0x3] %v1313_v32  ;;  %v900_v34 = vrot.slane %v899_v7, 1 }
 0x3b0   :  { %v881_v35 = vadd.f32 %v880_v33, %v879_v31 }
 0x3b1   :  { %v901_v36 = vadd.f32 %v900_v34, %v899_v7 }
 0x3b2   :  { %882 = vst [vmem:[%s864_s30] sm:$0x1] %v881_v35 }
 0x3b3   :  { %902 = vst [vmem:[%s884_s6] sm:$0x1] %v901_v36 }
 0x3b9   :  { %v906_v37 = vld [vmem:[#allocation8] sm:$0x1] }
 0x3ba   :  { %908 = vst [vmem:[#allocation9] sm:$0x1] %v906_v37  ;;  %v912_v38 = vld [vmem:[#allocation10] sm:$0x1] }
 0x3bb   :  { %914 = vst [vmem:[#allocation11] sm:$0x1] %v912_v38 }
 0x3c1   :  { %v1001_v39 = vld [vmem:[#allocation9] sm:$0x1] }
 0x3c2   :  { %1002 = vst [vmem:[%s2029_s4] sm:$0x1] %v1001_v39  ;;  %v1065_v40 = vld [vmem:[#allocation11] sm:$0x1] }
 0x3c3   :  { %1066 = vst [vmem:[%s2030_s5] sm:$0x1] %v1065_v40 }

// kernel: reverse.3
= control target key start
LH: loop header
LB: loop body
LE: loop exit
PB: predicated region body
PF: predicated region fallthrough
CT: control target
= control target key end

     0   :  { %v2_v0 = vlaneseq  ;;  %s123_s0 = inlined_call_operand.vmem [shape: f32[3], index: 0, kind: input, shape index: {}]   ;;  %s124_s1 = inlined_call_operand.vmem [shape: f32[3], index: 1, kind: output, shape index: {}]  }
   0x2   :  { %v3_v1 = vsub.s32 2, %v2_v0 }
   0x4   :  { %4 = vset.pattern.permute.xlu0 %v3_v1 }
   0x5   :  { %v43_v2 = vld [vmem:[#allocation1] sm:$0x1]  ;;  %v21_v3 = vld [vmem:[%s123_s0] sm:$0x1]  ;;  %v58_v10 = vshrl.u32 %v2_v0, 7 }
   0x6   :  { %44 = vst [vmem:[#allocation0] sm:$0x1] %v43_v2  ;;  %22 = vst [vmem:[#allocation1 + $0x1] sm:$0x1] %v21_v3 }
   0x7   :  { %vm59_vm0 = vcmp.lt.s32.totalorder %v58_v10, 1 }
   0xd   :  { %v46_v4 = vld [vmem:[#allocation0 + $0x7] ss:$-1 sm:$0xff]  ;;  %v40_v5 = vld [vmem:[#allocation1 + $0x1] sm:$0x1] }
   0xe   :  { %v47_v6 = vrot.slane %v46_v4, 7  ;;  %42 = vst [vmem:[#allocation0 + $0x8] sm:$0x1] %v40_v5 }
  0x10   :  { %48 = vperm.xlu0 %4, %v47_v6  }
  0x15   :  { %v53_v7 = vld [vmem:[#allocation0 + $0xf] ss:$-1 sm:$0xff] }
  0x16   :  { %v54_v8 = vrot.slane %v53_v7, 7 }
  0x18   :  { %55 = vperm.xlu0 %4, %v54_v8  }
  0x8f   :  { %v49_v9 = vpop.permute.xlu0 %48 }
  0x90   :  { %50 = vst [vmem:[#allocation2] sm:$0xff] %v49_v9 }
  0x97   :  { %v56_v11 = vpop.permute.xlu0 %55 }
  0x98   :  { %60 = vst.msk [vmem:[#allocation2] sm:$0xff] %vm59_vm0, %v56_v11 }
  0x9f   :  { %v64_v12 = vld [vmem:[#allocation2] sm:$0x1] }
  0xa0   :  { %66 = vst [vmem:[#allocation3] sm:$0x1] %v64_v12 }
  0xa7   :  { %v82_v13 = vld [vmem:[#allocation3] sm:$0x1] }
  0xa8   :  { %83 = vst [vmem:[%s124_s1] sm:$0x1] %v82_v13 }

// kernel: custom-call.53
= control target key start
LH: loop header
LB: loop body
LE: loop exit
PB: predicated region body
PF: predicated region fallthrough
CT: control target
= control target key end

     0   :  { %v329_v1 = vmov 0.0   ;;  %s349_s11 = smov 0   ;;  %s405_s0 = inlined_call_operand.vmem [shape: f32[3,3], index: 0, kind: input, shape index: {}]   ;;  %s406_s1 = inlined_call_operand.vmem [shape: f32[3,3], index: 1, kind: output, shape index: {0}]   ;;  %s407_s2 = inlined_call_operand.vmem [shape: f32[3], index: 2, kind: output, shape index: {1}]  }
   0x1   :  { %v19_v0 = vld [vmem:[%s405_s0] sm:$0xf]  ;;  %41 = vst [vmem:[#allocation4] sm:$0x1] %v329_v1 }
   0x2   :  { %20 = vst [vmem:[#allocation1] sm:$0xf] %v19_v0 }
   0x9   :  { %v37_v2 = vld [vmem:[#allocation1] sm:$0xf] }
   0xa   :  { %38 = vst [vmem:[#allocation0] sm:$0xf] %v37_v2 }
  0x11   :  { %v39_v3 = vld [vmem:[#allocation0] sm:$0xff] }
  0x12   :  { %40 = vst [vmem:[#allocation2] sm:$0xff] %v39_v3 }
  0x13 LB: > { %v49_v4 = vlaneseq  ;;  %v358_v6 = vstv %s327_s11  ;;  %s76_s0 = scalar_lea.vmem [#allocation2], %s327_s11  ;;  %s112_s12 = smov [#allocation2]  ;;  %v330_v60 = vmov 1.0   ;;  %v147_v61 = vld [vmem:[#allocation4] ss:$0 sm:$0xff]  ;;  %s327_s11 = sphi %s349_s11, %s47_s11  }
  0x14   : > { %s134_s13 = scalar_lea.vmem [#allocation6], %s327_s11  ;;  %s150_s14 = smov [#allocation2] }
  0x15   : > { %v355_v5 = vshrl.u32 %v49_v4, 7  ;;  %v128_v49 = vand.u32 127, %v49_v4  ;;  %s151_s15 = smov [#allocation6] }
  0x17   : > { %vm53_vm0 = vcmp.gt.s32.totalorder %v355_v5, %v358_v6  ;;  %vm54_vm1 = vcmp.lt.s32.totalorder %v355_v5, 3  ;;  %v115_v5 = vmov %v355_v5  ;;  %vm373_vm12 = vcmp.eq.s32.totalorder %v128_v49, %v358_v6 }
  0x18   : > { %vm55_vm2 = vmand %vm53_vm0, %vm54_vm1  ;;  %vm119_vm9 = vcmp.gt.s32.totalorder %v115_v5, %v358_v6  ;;  %vm120_vm10 = vcmp.lt.s32.totalorder %v115_v5, 3  ;;  %v154_v5 = vmov %v355_v5  ;;  %vm180_vm15 = vcmp.gt.s32.totalorder %v128_v49, %v358_v6 }
  0x19   : > { %v48_v7 = vld [vmem:[#allocation2] sm:$0xff]  ;;  %v77_v16 = vld [vmem:[%s76_s0] ss:$0 sm:$0xff]  ;;  %vm121_vm11 = vmand %vm119_vm9, %vm120_vm10  ;;  %vm159_vm13 = vcmp.lt.s32.totalorder %v154_v5, 3  ;;  %v171_v5 = vmov %v355_v5 }
  0x1a   : > { %v56_v8 = vsel %vm55_vm2, %v48_v7, 0.0  ;;  %v78_v17 = vand.u32 2147483647, %v77_v16  ;;  %vm103_vm8 = vcmp.lt.f32.partialorder %v77_v16, 0.0  ;;  %v116_v46 = vld [vmem:[%s112_s12] sm:$0xff]  ;;  %vm188_vm14 = vcmp.ge.s32.totalorder %v171_v5, %v358_v6 }
  0x1b   : > { %v57_v9 = vmul.f32 %v56_v8, %v56_v8  ;;  %v122_v50 = vsel %vm121_vm11, %v116_v46, 0.0  ;;  %v157_v0 = vld [vmem:[%s150_s14] sm:$0xff]  ;;  %s167_s14 = smov %s150_s14  ;;  %vm189_vm0 = vmand %vm373_vm12, %vm188_vm14 }
  0x1c   : > { %v79_v22 = vmax.f32 %v78_v17, 0.0  ;;  %s192_s16 = scalar_lea.vmem %s167_s14, %s327_s11  ;;  %s47_s11 = sadd.s32 1, %s327_s11  }
  0x1d   : > { %v58_v10 = vrot.slane %v57_v9, 4  ;;  %p44_p0 = scmp.ge.s32.totalorder %s47_s11, 3  }
  0x1f   : > { %v59_v11 = vadd.f32 %v58_v10, %v57_v9 }
  0x21   : > { %v60_v12 = vrot.slane %v59_v11, 2 }
  0x23   : > { %v61_v13 = vadd.f32 %v60_v12, %v59_v11 }
  0x25   : > { %v62_v14 = vrot.slane %v61_v13, 1 }
  0x27   : > { %v63_v15 = vadd.f32 %v62_v14, %v61_v13  ;;  %v178_v14 = vld [vmem:[%s167_s14] sm:$0xff] }
  0x29   : > { %311 = vrsqrt.f32 %v63_v15  ;;  %vm66_vm3 = vcmp.eq.f32.partialorder %v63_v15, inf  ;;  %v69_v19 = vand.u32 2147483648, %v63_v15  ;;  %vm68_vm4 = vcmp.eq.f32.partialorder %v63_v15, 0.0 }
  0x33   : > { %v312_v18 = vpop.eup %311 }
  0x34   : > { %v65_v20 = vmul.f32 %v312_v18, %v63_v15 }
  0x36   : > { %v67_v21 = vsel %vm66_vm3, %v63_v15, %v65_v20 }
  0x37   : > { %v70_v23 = vsel %vm68_vm4, %v69_v19, %v67_v21 }
  0x38   : > { %v80_v24 = vand.u32 2147483647, %v70_v23 }
  0x3a   : > { %v81_v25 = vmax.f32 %v79_v22, %v80_v24 }
  0x3c   : > { %313 = vrcp.f32 %v81_v25  ;;  %vm93_vm7 = vcmp.eq.f32.partialorder %v81_v25, 0.0 }
  0x46   : > { %v314_v26 = vpop.eup %313 }
  0x47   : > { %v83_v27 = vmul.f32 %v314_v26, %v78_v17  ;;  %v86_v28 = vmul.f32 0.0, %v314_v26  ;;  %v90_v29 = vmul.f32 %v314_v26, %v80_v24 }
  0x49   : > { %v84_v30 = vmul.f32 %v83_v27, %v83_v27  ;;  %v87_v31 = vmul.f32 %v86_v28, %v86_v28  ;;  %v91_v32 = vmul.f32 %v90_v29, %v90_v29 }
  0x4b   : > { %v88_v33 = vadd.f32 %v87_v31, %v84_v30 }
  0x4d   : > { %v92_v34 = vadd.f32 %v91_v32, %v88_v33 }
  0x4f   : > { %315 = vrsqrt.f32 %v92_v34  ;;  %vm96_vm5 = vcmp.eq.f32.partialorder %v92_v34, inf  ;;  %v99_v36 = vand.u32 2147483648, %v92_v34  ;;  %vm98_vm6 = vcmp.eq.f32.partialorder %v92_v34, 0.0 }
  0x59   : > { %v316_v35 = vpop.eup %315 }
  0x5a   : > { %v95_v37 = vmul.f32 %v316_v35, %v92_v34 }
  0x5c   : > { %v97_v38 = vsel %vm96_vm5, %v92_v34, %v95_v37 }
  0x5d   : > { %v100_v39 = vsel %vm98_vm6, %v99_v36, %v97_v38 }
  0x5e   : > { %v101_v40 = vmul.f32 %v100_v39, %v81_v25 }
  0x60   : > { %v102_v41 = vsel %vm93_vm7, 0.0, %v101_v40 }
  0x61   : > { %v104_v42 = vxor.u32 2147483648, %v102_v41 }
  0x63   : > { %v105_v43 = vsel %vm103_vm8, %v102_v41, %v104_v42 }
  0x64   : > { %v366_v44 = vsel %vm68_vm4, %v77_v16, %v105_v43  ;;  %317 = vrcp.f32 %v105_v43  ;;  %v106_v47 = vsub.f32 %v105_v43, %v77_v16 }
  0x65   : > { %v111_v45 = vsub.f32 %v77_v16, %v366_v44 }
  0x67   : > { %319 = vrcp.f32 %v111_v45 }
  0x6e   : > { %v318_v48 = vpop.eup %317 }
  0x6f   : > { %v108_v51 = vmul.f32 %v318_v48, %v106_v47 }
  0x71   : > { %v320_v52 = vpop.eup %319  ;;  %v110_v56 = vsel %vm68_vm4, 0.0, %v108_v51 }
  0x72   : > { %v124_v53 = vmul.f32 %v320_v52, %v122_v50  ;;  %v140_v58 = vsel %vm373_vm12, %v110_v56, 0.0 }
  0x74   : > { %v125_v55 = vsel %vm68_vm4, 0.0, %v124_v53 }
  0x75   : > { %v130_v57 = vsel %vm373_vm12, %v125_v55, 0.0 }
  0x76   : > { %131 = vadd.xlane.f32.xlu0 %v130_v57 }
  0x7a   : > { %141 = vadd.xlane.f32.xlu0 %v140_v58 }
 0x103   : > { %v132_v59 = vpop.xlane.xlu0 %131 }
 0x104   : > { %133 = vst [vmem:[#allocation6] sm:$0xff] %v132_v59 }
 0x105   : > { %135 = vst [vmem:[%s134_s13] sm:$0x1] %v330_v60 }
 0x107   : > { %v142_v62 = vpop.xlane.xlu0 %141 }
 0x108   : > { %v148_v63 = vsel %vm373_vm12, %v142_v62, %v147_v61 }
 0x109   : > { %149 = vst [vmem:[#allocation4] sm:$0x1] %v148_v63 }
 0x10c   : > { %v156_v1 = vld [vmem:[%s151_s15] sm:$0xff]  ;;  %s168_s15 = smov %s151_s15 }
 0x10d   : > { %v158_v2 = vmul.f32 %v157_v0, %v156_v1  ;;  %v176_v13 = vld [vmem:[%s168_s15] sm:$0xff] }
 0x10f   : > { %v160_v3 = vsel %vm159_vm13, %v158_v2, 0.0 }
 0x110   : > { %v161_v4 = vrot.slane %v160_v3, 4  ;;  %v209_v6 = vld [vmem:[#allocation4] sm:$0x1] (%p44_p0) }
 0x111   :  { %211 = vst [vmem:[#allocation5] sm:$0x1] (%p44_p0), %v209_v6 }
 0x112   : > { %v162_v7 = vadd.f32 %v161_v4, %v160_v3 }
 0x114   : > { %v163_v8 = vrot.slane %v162_v7, 2 }
 0x116   : > { %v164_v9 = vadd.f32 %v163_v8, %v162_v7 }
 0x118   : > { %v165_v10 = vrot.slane %v164_v9, 1  ;;  %v260_v22 = vld [vmem:[#allocation5] sm:$0x1] (%p44_p0) }
 0x119   :  { %261 = vst [vmem:[%s407_s2] sm:$0x1] (%p44_p0), %v260_v22 }
 0x11a   : > { %v166_v11 = vadd.f32 %v165_v10, %v164_v9 }
 0x11c   : > { %v172_v12 = vmul.f32 %v166_v11, %v142_v62 }
 0x11e   : > { %v177_v15 = vmul.f32 %v176_v13, %v172_v12 }
 0x120   : > { %v181_v16 = vsub.f32 %v178_v14, %v177_v15 }
 0x122   : > { %v182_v17 = vsel %vm180_vm15, %v181_v16, %v178_v14 }
 0x123   : > { %v190_v18 = vsel %vm189_vm0, %v176_v13, %v182_v17 }
 0x124   : > { %191 = vst [vmem:[%s167_s14] sm:$0xff] %v190_v18 }
 0x127   :  { %46 = sbr.rel (!%p44_p0) target bundleno = 19 (0x13), region = 131 }
 0x12b   : > { %v193_v19 = vld [vmem:[%s192_s16] ss:$0 sm:$0xff] }
 0x12c   : > { %v198_v20 = vsel %vm373_vm12, %v366_v44, %v193_v19 }
 0x12d   : > { %199 = vst [vmem:[%s192_s16] sm:$0x1] %v198_v20 }
 0x134   :  { %v203_v5 = vld [vmem:[#allocation2] sm:$0xf] }
 0x135   :  { %205 = vst [vmem:[#allocation3] sm:$0xf] %v203_v5 }
 0x13c   :  { %v227_v21 = vld [vmem:[#allocation3] sm:$0xf] }
 0x13d   :  { %228 = vst [vmem:[%s406_s1] sm:$0xf] %v227_v21 }

// kernel: _forward.3
= control target key start
LH: loop header
LB: loop body
LE: loop exit
PB: predicated region body
PF: predicated region fallthrough
CT: control target
= control target key end

     0   :  { %s2456_s0 = inlined_call_operand.hbm [shape: f32[2,3,3], index: 0, kind: input, shape index: {}]   ;;  %s2457_s1 = inlined_call_operand.hbm [shape: f32[2,3,128,128], index: 1, kind: input, shape index: {}]   ;;  %s2458_s2 = inlined_call_operand.hbm [shape: f32[2,3,128,128], index: 2, kind: input, shape index: {}]   ;;  %s2459_s3 = inlined_call_operand.hbm [shape: f32[2,1,128,128], index: 3, kind: input, shape index: {}]   ;;  %s2460_s4 = inlined_call_operand.hbm [shape: f32[2,1,128], index: 4, kind: output, shape index: {}]  }
   0x1   :  { %2551 = sst [smem:[#allocation79_spill]] %s2457_s1 }
   0x2   :  { %2552 = sst [smem:[#allocation80_spill]] %s2458_s2 }
   0x3   :  { %9 = vsyncpa [#allocation6], 0 }
   0x4   :  { %10 = vsyncpa [#allocation4], 0 }
   0x5   :  { %12 = vsyncpa [#allocation4 + $0x1], 0 }
   0x6   :  { %13 = vsyncpa [#allocation9], 0 }
   0x7   :  { %15 = vsyncpa [#allocation9 + $0x1], 0 }
   0x8   :  { %16 = vsyncpa [#allocation5], 0 }
   0x9   :  { %18 = vsyncpa [#allocation5 + $0x1], 0  ;;  %s1558_s15 = smov 0   ;;  %s1560_s16 = smov 0  }
   0xa   :  { %s1562_s17 = smov 0   ;;  %s1564_s18 = smov 0  }
   0xb   :  { %s1566_s19 = smov 0   ;;  %s1568_s20 = smov 0  }
   0xc LB: > { %2553 = sst [smem:[#allocation16_spill]] %s1510_s17  ;;  %s36_s21 = sadd.s32 1, %s1518_s19  ;;  %s1522_s20 = sphi %s1568_s20, %s24_s20   ;;  %s1518_s19 = sphi %s1566_s19, %s2724_s19   ;;  %s1514_s18 = sphi %s1564_s18, %s2723_s18   ;;  %s1510_s17 = sphi %s1562_s17, %s2719_s17   ;;  %s1506_s16 = sphi %s1560_s16, %s2722_s16   ;;  %s1502_s15 = sphi %s1558_s15, %s2721_s15  }
   0xd   : > { %2554 = sst [smem:[#allocation17_spill]] %s1522_s20  ;;  %s66_s22 = sadd.s32 1, %s1510_s17 }
   0xe   : > { %p38_p0 = scmp.ge.s32.totalorder %s36_s21, 2  ;;  %p2461_p1 = scmp.ne.s32.totalorder %s1510_s17, %s1506_s16 }
   0xf   : > { %p74_p2 = scmp.eq.s32.totalorder %s1522_s20, 0  ;;  %p1273_p5 = scmp.lt.s32.totalorder %s1522_s20, 2 }
  0x10   : > { %s2726_s21 = smov (%p38_p0, %s36_s21), 0  ;;  %s1603_s24 = sand.u32 1, %s1510_s17  }
  0x11   : > { %2555 = sst [smem:[#allocation18_spill]] %s2726_s21  ;;  %p75_p4 = por %p74_p2, %p2461_p1 }
  0x12   : > { %s61_s23 = ssub.s32 %s1518_s19, %s2726_s21  ;;  %s1235_s25 = smul.u32 384, %s1603_s24 }
  0x13   : > { %p64_p6 = scmp.eq.s32.totalorder %s61_s23, 0  ;;  %s1236_s26 = smul.u32 6144, %s1518_s19 }
  0x14   : > { %p1607_p7 = pnand %p1273_p5, %p75_p4  ;;  %s219_s29 = sand.u32 1, %s1522_s20  }
  0x15   : > { %s1612_s28 = scalar_select %p64_p6, %s1510_s17, %s66_s22  }
  0x16   : > { %s2558_s2 = sld [smem:[#allocation80_spill]]  ;;  %s223_s7 = scalar_lea.vmem [#allocation8], %s1235_s25 }
  0x17   : > { %2557 = sst [smem:[#allocation19_spill]] %s1612_s28  ;;  %s232_s8 = sshll.u32 %s223_s7, 4  ;;  %s1624_s8 = int_to_ptr.vmem [resolvable:$true] %s232_s8 }
  0x18   : > { %s1626_s9 = scalar_lea.sflag [#allocation9], %s219_s29  ;;  %p1632_p9 = pneg %p1607_p7 }
  0x1c   : > { %s1620_s6 = scalar_lea.hbm %s2558_s2, %s1236_s26  ;;  %s1334_s14 = scalar_lea.hbm %s2558_s2, 12288 }
  0x1d   : > { %s1329_s10 = scalar_lea.hbm %s1620_s6, 6144  ;;  %p1335_p12 = scmp.lt.u32.totalorder %s1620_s6, %s2558_s2 }
  0x1e   : > { %p1330_p8 = scmp.ne.s32.totalorder %s1620_s6, %s1329_s10  ;;  %p1336_p13 = scmp.lt.u32.totalorder %s1334_s14, %s1329_s10 }
  0x1f   : > { %p1338_p2 = scmp.lt.u32.totalorder %s1329_s10, %s1620_s6 }
  0x20   : > { %p1332_p10 = pnand %p1632_p9, %p1330_p8  ;;  %p1337_p0 = por %p1336_p13, %p1335_p12 }
  0x22   : > { %p1333_p11 = pneg %p1332_p10  ;;  %p1339_p4 = por %p1338_p2, %p1337_p0 }
  0x24   : > { %p1340_p5 = pnand %p1339_p4, %p1333_p11 }
  0x26   : > { %1343 = shalt.err (!%p1340_p5)
}
  0x27   : > { %s1344_s29 = scalar_lea.vmem %s1624_s8, 6144  ;;  %s1524_s30 = smov [#allocation8]  }
  0x28   : > { %p1345_p6 = scmp.ne.s32.totalorder %s1624_s8, %s1344_s29  ;;  %s1349_s5 = sshll.u32 %s1524_s30, 4  ;;  %s1350_s5 = int_to_ptr.vmem [resolvable:$false] %s1349_s5 }
  0x29   : > { %s1351_s7 = scalar_lea.vmem %s1350_s5, 12288  ;;  %p1352_p3 = scmp.lt.s32.totalorder %s1624_s8, %s1350_s5 }
  0x2a   : > { %p1347_p8 = pnand %p1345_p6, %p1632_p9  ;;  %p1353_p1 = scmp.lt.s32.totalorder %s1351_s7, %s1344_s29 }
  0x2c   : > { %p1348_p10 = pneg %p1347_p8  ;;  %p1354_p12 = por %p1353_p1, %p1352_p3 }
  0x2e   : > { %p1355_p13 = pnand %p1354_p12, %p1348_p10 }
  0x30   : > { %1358 = shalt.err (!%p1355_p13)
}
  0x31   : > { %s2462_s10 = smov 128   ;;  %s2464_s12 = smov 8  }
  0x32   : > { %1264 = dma.hbm_to_vmem [thread:$0]  (!%p1607_p7), %s1620_s6, 6144, %s1624_s8, %s1626_s9, %s2462_s10, %s2462_s10, %s2464_s12  }
  0x33   : > { %s1660_s13 = sadd.s32 4294967295, %s1522_s20   ;;  %s1144_s14 = sadd.s32 4294967294, %s1522_s20  }
  0x34   : > { %p79_p1 = scmp.ne.s32.totalorder %s1506_s16, %s1502_s15  ;;  %p2467_p3 = scmp.eq.s32.totalorder %s1660_s13, 0 }
  0x35   : > { %p159_p11 = scmp.eq.s32.totalorder %s1660_s13, 1  ;;  %p165_p0 = scmp.eq.s32.totalorder %s1144_s14, 1 }
  0x36   : > { %p1145_p2 = scmp.ge.s32.totalorder %s1522_s20, 1  ;;  %p1670_p4 = por %p2467_p3, %p79_p1 }
  0x37   : > { %p2561_p5 = scmp.ne.s32.totalorder %s1510_s17, %s1506_s16  ;;  %p1681_p8 = por %p165_p0, %p79_p1 }
  0x38   : > { %s2560_s22 = scalar_select %p1670_p4, 1, 0 }
  0x39   : > { %p1677_p6 = por %p159_p11, %p2561_p5  ;;  %p172_p10 = scmp.lt.s32.totalorder %s1522_s20, 3 }
  0x3a   : > { %s2563_s8 = scalar_select %p1681_p8, 1, 0 }
  0x3b   : > { %s2562_s6 = scalar_select %p1677_p6, 1, 0 }
  0x3c   : > { %p1686_p12 = pnand %p1145_p2, %p172_p10  ;;  %s2565_s1 = sld [smem:[#allocation79_spill]] }
  0x3d   : > { %s200_s7 = scalar_lea.vmem [#allocation7], %s1235_s25  ;;  %s197_s12 = scalar_lea.sflag [#allocation4], %s1603_s24 }
  0x3e   : > { %s2564_s23 = scalar_select %p1686_p12, 1, 0 }
  0x3f   : > { %p1254_p13 = pneg %p1686_p12  ;;  %s209_s14 = sshll.u32 %s200_s7, 4  ;;  %s1707_s14 = int_to_ptr.vmem [resolvable:$true] %s209_s14 }
  0x41   : > { %p1703_p1 = pnand %p1254_p13, %p2467_p3 }
  0x42   : > { %s1697_s5 = scalar_lea.hbm %s2565_s1, %s1236_s26  ;;  %s1364_s30 = scalar_lea.hbm %s2565_s1, 12288 }
  0x43   : > { %s2566_s10 = scalar_select %p1703_p1, 1, 0 }
  0x44   : > { %s1359_s2 = scalar_lea.hbm %s1697_s5, 6144  ;;  %p1365_p5 = scmp.lt.u32.totalorder %s1697_s5, %s2565_s1 }
  0x45   : > { %p1360_p11 = scmp.ne.s32.totalorder %s1697_s5, %s1359_s2  ;;  %p1366_p10 = scmp.lt.u32.totalorder %s1364_s30, %s1359_s2 }
  0x46   : > { %p1368_p3 = scmp.lt.u32.totalorder %s1359_s2, %s1697_s5 }
  0x47   : > { %p1362_p0 = pnand %p1360_p11, %p1632_p9  ;;  %p1367_p13 = por %p1366_p10, %p1365_p5 }
  0x49   : > { %p1363_p2 = pneg %p1362_p0  ;;  %p1369_p8 = por %p1368_p3, %p1367_p13 }
  0x4b   : > { %p1370_p6 = pnand %p1369_p8, %p1363_p2 }
  0x4d   : > { %1373 = shalt.err (!%p1370_p6)
}
  0x4e   : > { %s1374_s7 = scalar_lea.vmem %s1707_s14, 6144  ;;  %s1527_s26 = smov [#allocation7]  }
  0x4f   : > { %p1375_p11 = scmp.ne.s32.totalorder %s1707_s14, %s1374_s7  ;;  %s1379_s29 = sshll.u32 %s1527_s26, 4  ;;  %s1380_s29 = int_to_ptr.vmem [resolvable:$false] %s1379_s29 }
  0x50   : > { %s1381_s21 = scalar_lea.vmem %s1380_s29, 12288  ;;  %p1382_p12 = scmp.lt.s32.totalorder %s1707_s14, %s1380_s29 }
  0x51   : > { %p1377_p0 = pnand %p1375_p11, %p1632_p9  ;;  %p1383_p1 = scmp.lt.s32.totalorder %s1381_s21, %s1374_s7 }
  0x53   : > { %p1378_p4 = pneg %p1377_p0  ;;  %p1384_p5 = por %p1383_p1, %p1382_p12 }
  0x55   : > { %p1385_p10 = pnand %p1384_p5, %p1378_p4 }
  0x57   : > { %1388 = shalt.err (!%p1385_p10)
}
  0x58   : > { %s2567_s2 = smov 8   ;;  %s2568_s30 = smov 128  }
  0x59   : > { %1261 = dma.hbm_to_vmem [thread:$0]  (!%p1607_p7), %s1697_s5, 6144, %s1707_s14, %s197_s12, %s2568_s30, %s2568_s30, %s2567_s2  }
  0x5a   : > { %s1150_s25 = sshll.u32 %s1603_s24, 7  ;;  %s1389_s7 = scalar_lea.hbm %s2456_s0, 128 }
  0x5b   : > { %p1390_p3 = scmp.ne.s32.totalorder %s2456_s0, %s1389_s7  ;;  %p2569_p4 = scmp.ne.s32.totalorder %s2566_s10, 0 }
  0x5c   : > { %p1396_p1 = scmp.lt.u32.totalorder %s1389_s7, %s2456_s0 }
  0x5d   : > { %p1391_p6 = pneg %p2569_p4 }
  0x5f   : > { %p1392_p8 = pnand %p1391_p6, %p1390_p3 }
  0x61   : > { %p1393_p12 = pneg %p1392_p8 }
  0x63   : > { %p1398_p2 = pnand %p1396_p1, %p1393_p12 }
  0x65   : > { %1401 = shalt.err (!%p1398_p2)
}
  0x66   : > { %s1528_s12 = smov [#allocation3]   ;;  %s1529_s1 = smov 64  }
  0x67   : > { %s1530_s24 = smov 4   ;;  %s1227_s26 = sshll.u32 %s1518_s19, 11 }
  0x68   : > { %1257 = dma.hbm_to_smem (!%p2569_p4), %s2456_s0, 128, %s1528_s12, [#allocation6], %s1529_s1, %s1529_s1, %s1530_s24  }
  0x69   : > { %s1757_s20 = scalar_lea.hbm %s2459_s3, %s1227_s26  ;;  %s246_s17 = scalar_lea.vmem [#allocation10], %s1150_s25 }
  0x6a   : > { %s255_s28 = sshll.u32 %s246_s17, 4  ;;  %s1402_s7 = scalar_lea.hbm %s1757_s20, 2048  ;;  %s1759_s28 = int_to_ptr.vmem [resolvable:$true] %s255_s28 }
  0x6b   : > { %p1403_p13 = scmp.ne.s32.totalorder %s1757_s20, %s1402_s7  ;;  %s1407_s1 = scalar_lea.hbm %s2459_s3, 4096 }
  0x6c   : > { %p1408_p5 = scmp.lt.u32.totalorder %s1757_s20, %s2459_s3  ;;  %p1409_p10 = scmp.lt.u32.totalorder %s1407_s1, %s1402_s7 }
  0x6d   : > { %p1405_p11 = pnand %p1403_p13, %p1632_p9  ;;  %p1411_p4 = scmp.lt.u32.totalorder %s1402_s7, %s1757_s20 }
  0x6e   : > { %p1410_p3 = por %p1409_p10, %p1408_p5 }
  0x6f   : > { %p1406_p0 = pneg %p1405_p11 }
  0x70   : > { %p1412_p6 = por %p1411_p4, %p1410_p3 }
  0x72   : > { %p1413_p8 = pnand %p1412_p6, %p1406_p0 }
  0x74   : > { %1416 = shalt.err (!%p1413_p8)
}
  0x75   : > { %s1417_s25 = scalar_lea.vmem %s1759_s28, 2048  ;;  %s1531_s14 = smov [#allocation10]  }
  0x76   : > { %p1418_p12 = scmp.ne.s32.totalorder %s1759_s28, %s1417_s25  ;;  %s1422_s26 = sshll.u32 %s1531_s14, 4  ;;  %s1423_s26 = int_to_ptr.vmem [resolvable:$false] %s1422_s26 }
  0x77   : > { %s1424_s29 = scalar_lea.vmem %s1423_s26, 4096  ;;  %p1425_p13 = scmp.lt.s32.totalorder %s1759_s28, %s1423_s26 }
  0x78   : > { %p1420_p1 = pnand %p1418_p12, %p1632_p9  ;;  %p1426_p11 = scmp.lt.s32.totalorder %s1424_s29, %s1417_s25 }
  0x7a   : > { %p1421_p2 = pneg %p1420_p1  ;;  %p1427_p5 = por %p1426_p11, %p1425_p13 }
  0x7c   : > { %p1428_p10 = pnand %p1427_p5, %p1421_p2 }
  0x7e   : > { %1431 = shalt.err (!%p1428_p10)
}
  0x7f   : > { %1267 = dma.hbm_to_vmem [thread:$0]  (!%p1607_p7), %s1757_s20, 2048, %s1759_s28, %s1626_s9, %s2568_s30, %s2568_s30, %s2567_s2  }
  0x80   : > { %p2570_p9 = scmp.ne.s32.totalorder %s2564_s23, 0 }
  0x82   : > { %267 = sbr.rel (%p2570_p9) target bundleno = 494 (0x1ee), region = 36 }
  0x89   : > { %p2571_p0 = scmp.eq.s32.totalorder %s1660_s13, 0 }
  0x8b   : > { %1485 = dma.done.wait (%p2571_p0), [#allocation6], 128   ;;  %p2572_p3 = pmov %p2571_p0 }
  0x8c   : > { %s1793_s11 = sand.u32 1, %s1506_s16   ;;  %p2573_p7 = scmp.ne.s32.totalorder %s2560_s22, 0 }
  0x8d   : > { %1487 = vsyncadd (%p2572_p3), [#allocation6], 4294967168  ;;  %s1239_s27 = smul.u32 384, %s1793_s11  ;;  %s274_s21 = scalar_lea.sflag [#allocation4], %s1793_s11 }
  0x8f   : > { %s1797_s17 = scalar_lea.vmem [#allocation7], %s1239_s27 }
  0x90   : > { %1489 = dma.done.wait (%p2573_p7), %s274_s21, 6144  }
  0x91   : > { %1491 = vsyncadd (%p2573_p7), %s274_s21, 4294961152  ;;  %s282_s20 = sand.u32 1, %s1660_s13   ;;  %s1804_s23 = scalar_lea.vmem [#allocation8], %s1239_s27 }
  0x92   : > { %s283_s9 = scalar_lea.sflag [#allocation9], %s282_s20 }
  0x93   : > { %1493 = dma.done.wait (%p2573_p7), %s283_s9, 8192  }
  0x94   : > { %1495 = vsyncadd (%p2573_p7), %s283_s9, 4294959104  ;;  %s1155_s2 = sshll.u32 %s1793_s11, 7 }
  0x95   : > { %s1811_s30 = scalar_lea.vmem [#allocation10], %s1155_s2 }
  0x96   : > { %300 = sfence }
  0x97   : > { %s1814_s13 = sshll.u32 %s1514_s18, 9  ;;  %v1824_v0 = vld [vmem:[%s1797_s17] sm:$0xff]  ;;  %v1827_v1 = vld [vmem:[%s1797_s17 + $0x8] sm:$0xff]  ;;  %v1830_v2 = vld [vmem:[%s1797_s17 + $0x10] sm:$0xff]  ;;  %s329_s2 = scalar_lea.vmem [#allocation11], %s1793_s11 }
  0x98   : > { %s421_s22 = sld [smem:[#allocation3 + %s1814_s13]]  ;;  %s1818_s28 = sadd.s32 128, %s1814_s13  ;;  %v1833_v3 = vld [vmem:[%s1797_s17 + $0x18] sm:$0xff]  ;;  %v1836_v4 = vld [vmem:[%s1797_s17 + $0x20] sm:$0xff]  ;;  %v1839_v5 = vld [vmem:[%s1797_s17 + $0x28] sm:$0xff] }
  0x99   : > { %s1821_s7 = sld [smem:[#allocation3 + %s1818_s28]]  ;;  %2574 = vst [vmem:[#allocation20_spill] sm:$0xff] %v1833_v3  ;;  %2575 = vst [vmem:[#allocation21_spill] sm:$0xff] %v1836_v4  ;;  %v1842_v6 = vld [vmem:[%s1797_s17 + $0x30] sm:$0xff]  ;;  %v1845_v7 = vld [vmem:[%s1797_s17 + $0x38] sm:$0xff]  ;;  %s1866_s10 = sadd.s32 256, %s1814_s13 }
  0x9a   : > { %2576 = vst [vmem:[#allocation22_spill] sm:$0xff] %v1839_v5  ;;  %2577 = vst [vmem:[#allocation23_spill] sm:$0xff] %v1842_v6  ;;  %v1848_v9 = vld [vmem:[%s1797_s17 + $0x40] sm:$0xff]  ;;  %v1851_v10 = vld [vmem:[%s1797_s17 + $0x48] sm:$0xff]  ;;  %s1905_s12 = sld [smem:[#allocation3 + %s1866_s10]]  ;;  %s575_s1 = sadd.s32 1, %s1814_s13 }
  0x9b   : > { %2578 = vst [vmem:[#allocation24_spill] sm:$0xff] %v1845_v7  ;;  %2579 = vst [vmem:[#allocation25_spill] sm:$0xff] %v1848_v9  ;;  %v1854_v11 = vld [vmem:[%s1797_s17 + $0x50] sm:$0xff]  ;;  %v1857_v12 = vld [vmem:[%s1797_s17 + $0x58] sm:$0xff]  ;;  %s2023_s24 = sld [smem:[#allocation3 + %s575_s1]]  ;;  %s594_s5 = sadd.s32 1, %s1818_s28 }
  0x9c   : > { %2580 = vst [vmem:[#allocation26_spill] sm:$0xff] %v1851_v10  ;;  %2581 = vst [vmem:[#allocation27_spill] sm:$0xff] %v1854_v11  ;;  %v1860_v13 = vld [vmem:[%s1797_s17 + $0x60] sm:$0xff]  ;;  %v1863_v14 = vld [vmem:[%s1797_s17 + $0x68] sm:$0xff]  ;;  %s629_s25 = sadd.s32 1, %s1866_s10  ;;  %s729_s14 = sadd.s32 2, %s1814_s13 }
  0x9d   : > { %2582 = vst [vmem:[#allocation28_spill] sm:$0xff] %v1857_v12  ;;  %2583 = vst [vmem:[#allocation29_spill] sm:$0xff] %v1860_v13  ;;  %v1869_v15 = vld [vmem:[%s1797_s17 + $0x70] sm:$0xff]  ;;  %v1872_v16 = vld [vmem:[%s1797_s17 + $0x78] sm:$0xff]  ;;  %s2050_s26 = sld [smem:[#allocation3 + %s594_s5]]  ;;  %s748_s21 = sadd.s32 2, %s1818_s28 }
  0x9e   : > { %v422_v8 = vstv %s421_s22  ;;  %2584 = vst [vmem:[#allocation30_spill] sm:$0xff] %v1863_v14  ;;  %2585 = vst [vmem:[#allocation31_spill] sm:$0xff] %v1869_v15  ;;  %v1875_v17 = vld [vmem:[%s1797_s17 + $0x80] sm:$0xff]  ;;  %v1879_v19 = vld [vmem:[%s1797_s17 + $0x88] sm:$0xff]  ;;  %s2056_s29 = sld [smem:[#allocation3 + %s629_s25]]  ;;  %s783_s20 = sadd.s32 2, %s1866_s10 }
  0x9f   : > { %2586 = vst [vmem:[#allocation32_spill] sm:$0xff] %v1872_v16  ;;  %2587 = vst [vmem:[#allocation33_spill] sm:$0xff] %v1875_v17  ;;  %v423_v18 = vmul.f32 %v422_v8, %v1824_v0  ;;  %v1882_v20 = vld [vmem:[%s1797_s17 + $0x90] sm:$0xff]  ;;  %v1885_v21 = vld [vmem:[%s1797_s17 + $0x98] sm:$0xff]  ;;  %v424_v22 = vmul.f32 %v422_v8, %v1827_v1  ;;  %v425_v23 = vmul.f32 %v422_v8, %v1830_v2  ;;  %v442_v32 = vstv %s1821_s7  ;;  %s2058_s27 = sld [smem:[#allocation3 + %s729_s14]]  ;;  %s993_s10 = scalar_lea.sflag [#allocation5], %s1793_s11 }
  0xa0   : > { %2588 = vst [vmem:[#allocation34_spill] sm:$0xff] %v1879_v19  ;;  %2589 = vst [vmem:[#allocation35_spill] sm:$0xff] %v1882_v20  ;;  %v426_v24 = vmul.f32 %v422_v8, %v1833_v3  ;;  %v427_v25 = vmul.f32 %v422_v8, %v1836_v4  ;;  %v1892_v26 = vld [vmem:[%s1797_s17 + $0xa0] sm:$0xff]  ;;  %v1895_v27 = vld [vmem:[%s1797_s17 + $0xa8] sm:$0xff]  ;;  %v428_v29 = vmul.f32 %v422_v8, %v1839_v5  ;;  %s2172_s9 = sld [smem:[#allocation3 + %s783_s20]]  ;;  %p2714_p6 = scmp.ne.s32.totalorder %s2562_s6, 0 }
  0xa1   : > { %2590 = vst [vmem:[#allocation36_spill] sm:$0xff] %v1885_v21  ;;  %2591 = vst [vmem:[#allocation37_spill] sm:$0xff] %v1892_v26  ;;  %v1898_v28 = vld [vmem:[%s1797_s17 + $0xb0] sm:$0xff]  ;;  %v429_v30 = vmul.f32 %v422_v8, %v1842_v6  ;;  %v430_v31 = vmul.f32 %v422_v8, %v1845_v7  ;;  %v1908_v33 = vld [vmem:[%s1797_s17 + $0xb8] sm:$0xff]  ;;  %v431_v36 = vmul.f32 %v422_v8, %v1848_v9 }
  0xa2   : > { %2592 = vst [vmem:[#allocation38_spill] sm:$0xff] %v1895_v27  ;;  %2593 = vst [vmem:[#allocation39_spill] sm:$0xff] %v1898_v28  ;;  %v1911_v34 = vld [vmem:[%s1797_s17 + $0xc0] sm:$0xff]  ;;  %v1914_v35 = vld [vmem:[%s1797_s17 + $0xc8] sm:$0xff]  ;;  %v432_v37 = vmul.f32 %v422_v8, %v1851_v10  ;;  %v433_v38 = vmul.f32 %v422_v8, %v1854_v11  ;;  %v434_v39 = vmul.f32 %v422_v8, %v1857_v12 }
  0xa3   : > { %2594 = vst [vmem:[#allocation40_spill] sm:$0xff] %v1908_v33  ;;  %2595 = vst [vmem:[#allocation41_spill] sm:$0xff] %v1911_v34  ;;  %v1921_v40 = vld [vmem:[%s1797_s17 + $0xd0] sm:$0xff]  ;;  %v1924_v41 = vld [vmem:[%s1797_s17 + $0xd8] sm:$0xff]  ;;  %v435_v43 = vmul.f32 %v422_v8, %v1860_v13  ;;  %v436_v44 = vmul.f32 %v422_v8, %v1863_v14  ;;  %v437_v45 = vmul.f32 %v422_v8, %v1869_v15 }
  0xa4   : > { %2596 = vst [vmem:[#allocation42_spill] sm:$0xff] %v1914_v35  ;;  %2597 = vst [vmem:[#allocation43_spill] sm:$0xff] %v1921_v40  ;;  %v1927_v42 = vld [vmem:[%s1797_s17 + $0xe0] sm:$0xff]  ;;  %v438_v46 = vmul.f32 %v422_v8, %v1872_v16  ;;  %v1934_v47 = vld [vmem:[%s1797_s17 + $0xe8] sm:$0xff]  ;;  %v443_v50 = vmul.f32 %v1875_v17, %v442_v32  ;;  %v444_v51 = vmul.f32 %v1879_v19, %v442_v32 }
  0xa5   : > { %2598 = vst [vmem:[#allocation44_spill] sm:$0xff] %v1924_v41  ;;  %2599 = vst [vmem:[#allocation45_spill] sm:$0xff] %v1927_v42  ;;  %v1937_v48 = vld [vmem:[%s1797_s17 + $0xf0] sm:$0xff]  ;;  %v1940_v49 = vld [vmem:[%s1797_s17 + $0xf8] sm:$0xff]  ;;  %v445_v52 = vmul.f32 %v1882_v20, %v442_v32  ;;  %v446_v53 = vmul.f32 %v1885_v21, %v442_v32  ;;  %v447_v54 = vmul.f32 %v1892_v26, %v442_v32  ;;  %v478_v20 = vstv %s1905_s12 }
  0xa6   : > { %2600 = vst [vmem:[#allocation46_spill] sm:$0xff] %v1934_v47  ;;  %2601 = vst [vmem:[#allocation47_spill] sm:$0xff] %v1937_v48  ;;  %v448_v55 = vmul.f32 %v1895_v27, %v442_v32  ;;  %v449_v56 = vmul.f32 %v1898_v28, %v442_v32  ;;  %v450_v57 = vmul.f32 %v1908_v33, %v442_v32  ;;  %v1965_v28 = vld [vmem:[%s1797_s17 + $0x110] sm:$0xff]  ;;  %v1999_v17 = vld [vmem:[%s1797_s17 + $0x168] sm:$0xff] }
  0xa7   : > { %2602 = vst [vmem:[#allocation48_spill] sm:$0xff] %v1940_v49  ;;  %v451_v58 = vmul.f32 %v1911_v34, %v442_v32  ;;  %v452_v59 = vmul.f32 %v1914_v35, %v442_v32  ;;  %v453_v60 = vmul.f32 %v1921_v40, %v442_v32  ;;  %v454_v61 = vmul.f32 %v1924_v41, %v442_v32  ;;  %v1959_v34 = vld [vmem:[%s1797_s17 + $0x100] sm:$0xff]  ;;  %v1962_v35 = vld [vmem:[%s1797_s17 + $0x108] sm:$0xff]  ;;  %v1978_v19 = vld [vmem:[%s1797_s17 + $0x130] sm:$0xff] }
  0xa8   : > { %v455_v62 = vmul.f32 %v1927_v42, %v442_v32  ;;  %v456_v63 = vmul.f32 %v1934_v47, %v442_v32  ;;  %v457_v8 = vmul.f32 %v1937_v48, %v442_v32  ;;  %v458_v33 = vmul.f32 %v1940_v49, %v442_v32  ;;  %2603 = vst [vmem:[#allocation49_spill] sm:$0xff] %v1965_v28  ;;  %v1968_v47 = vld [vmem:[%s1797_s17 + $0x118] sm:$0xff]  ;;  %v1971_v48 = vld [vmem:[%s1797_s17 + $0x120] sm:$0xff]  ;;  %v1974_v32 = vld [vmem:[%s1797_s17 + $0x128] sm:$0xff] }
  0xa9   : > { %v459_v40 = vadd.f32 %v443_v50, %v423_v18  ;;  %v460_v41 = vadd.f32 %v444_v51, %v424_v22  ;;  %v461_v27 = vadd.f32 %v445_v52, %v425_v23  ;;  %v462_v42 = vadd.f32 %v446_v53, %v426_v24  ;;  %2604 = vst [vmem:[#allocation50_spill] sm:$0xff] %v1968_v47  ;;  %v1981_v18 = vld [vmem:[%s1797_s17 + $0x138] sm:$0xff]  ;;  %v1984_v22 = vld [vmem:[%s1797_s17 + $0x140] sm:$0xff]  ;;  %v1987_v52 = vld [vmem:[%s1797_s17 + $0x148] sm:$0xff] }
  0xaa   : > { %2605 = vst [vmem:[#allocation51_spill] sm:$0xff] %v1971_v48  ;;  %2606 = vst [vmem:[#allocation52_spill] sm:$0xff] %v1974_v32  ;;  %v463_v49 = vadd.f32 %v447_v54, %v427_v25  ;;  %v464_v26 = vadd.f32 %v448_v55, %v428_v29  ;;  %v465_v21 = vadd.f32 %v449_v56, %v429_v30  ;;  %v1990_v25 = vld [vmem:[%s1797_s17 + $0x150] sm:$0xff]  ;;  %v1993_v29 = vld [vmem:[%s1797_s17 + $0x158] sm:$0xff] }
  0xab   : > { %2607 = vst [vmem:[#allocation53_spill] sm:$0xff] %v1978_v19  ;;  %2608 = vst [vmem:[#allocation54_spill] sm:$0xff] %v1981_v18  ;;  %v466_v23 = vadd.f32 %v450_v57, %v430_v31  ;;  %v467_v24 = vadd.f32 %v451_v58, %v431_v36  ;;  %v468_v50 = vadd.f32 %v452_v59, %v432_v37  ;;  %v1996_v56 = vld [vmem:[%s1797_s17 + $0x160] sm:$0xff]  ;;  %v2002_v31 = vld [vmem:[%s1797_s17 + $0x170] sm:$0xff] }
  0xac   : > { %2609 = vst [vmem:[#allocation55_spill] sm:$0xff] %v1984_v22  ;;  %v469_v51 = vadd.f32 %v453_v60, %v433_v38  ;;  %2610 = vst [vmem:[#allocation56_spill] sm:$0xff] %v1987_v52  ;;  %v470_v30 = vadd.f32 %v454_v61, %v434_v39  ;;  %v471_v53 = vadd.f32 %v455_v62, %v435_v43  ;;  %v2009_v58 = vld [vmem:[%s1797_s17 + $0x178] sm:$0xff]  ;;  %s2147_s17 = sld [smem:[#allocation3 + %s748_s21]] }
  0xad   : > { %2611 = vst [vmem:[#allocation57_spill] sm:$0xff] %v1990_v25  ;;  %2612 = vst [vmem:[#allocation58_spill] sm:$0xff] %v1993_v29  ;;  %v472_v54 = vadd.f32 %v456_v63, %v436_v44  ;;  %v473_v55 = vadd.f32 %v457_v8, %v437_v45  ;;  %v474_v36 = vadd.f32 %v458_v33, %v438_v46 }
  0xae   : > { %2613 = vst [vmem:[#allocation59_spill] sm:$0xff] %v1996_v56  ;;  %2614 = vst [vmem:[#allocation60_spill] sm:$0xff] %v1999_v17  ;;  %v479_v37 = vmul.f32 %v1959_v34, %v478_v20  ;;  %v480_v38 = vmul.f32 %v1962_v35, %v478_v20  ;;  %v481_v57 = vmul.f32 %v1965_v28, %v478_v20  ;;  %v515_v28 = vld [vmem:[%s1804_s23 + $0x20] sm:$0xff] }
  0xaf   : > { %2615 = vst [vmem:[#allocation61_spill] sm:$0xff] %v2002_v31  ;;  %2616 = vst [vmem:[#allocation62_spill] sm:$0xff] %v2009_v58  ;;  %v482_v39 = vmul.f32 %v1968_v47, %v478_v20  ;;  %v483_v43 = vmul.f32 %v1971_v48, %v478_v20  ;;  %v484_v44 = vmul.f32 %v1974_v32, %v478_v20 }
  0xb0   : > { %v485_v45 = vmul.f32 %v1978_v19, %v478_v20  ;;  %v486_v33 = vmul.f32 %v1981_v18, %v478_v20  ;;  %v487_v46 = vmul.f32 %v1984_v22, %v478_v20  ;;  %v488_v59 = vmul.f32 %v1987_v52, %v478_v20  ;;  %v511_v19 = vld [vmem:[%s1804_s23] sm:$0xff] }
  0xb1   : > { %v489_v60 = vmul.f32 %v1990_v25, %v478_v20  ;;  %v490_v61 = vmul.f32 %v1993_v29, %v478_v20  ;;  %v491_v62 = vmul.f32 %v1996_v56, %v478_v20  ;;  %v492_v63 = vmul.f32 %v1999_v17, %v478_v20  ;;  %v512_v29 = vld [vmem:[%s1804_s23 + $0x8] sm:$0xff]  ;;  %v513_v17 = vld [vmem:[%s1804_s23 + $0x10] sm:$0xff] }
  0xb2   : > { %v493_v8 = vmul.f32 %v2002_v31, %v478_v20  ;;  %v494_v18 = vmul.f32 %v2009_v58, %v478_v20  ;;  %v495_v22 = vadd.f32 %v479_v37, %v459_v40  ;;  %v496_v52 = vadd.f32 %v480_v38, %v460_v41  ;;  %v514_v31 = vld [vmem:[%s1804_s23 + $0x18] sm:$0xff]  ;;  %v516_v37 = vld [vmem:[%s1804_s23 + $0x28] sm:$0xff]  ;;  %v517_v38 = vld [vmem:[%s1804_s23 + $0x30] sm:$0xff] }
  0xb3   : > { %v497_v25 = vadd.f32 %v481_v57, %v461_v27  ;;  %v498_v32 = vadd.f32 %v482_v39, %v462_v42  ;;  %v499_v56 = vadd.f32 %v483_v43, %v463_v49  ;;  %v500_v48 = vadd.f32 %v484_v44, %v464_v26  ;;  %v518_v57 = vld [vmem:[%s1804_s23 + $0x38] sm:$0xff]  ;;  %v519_v39 = vld [vmem:[%s1804_s23 + $0x40] sm:$0xff]  ;;  %v521_v43 = vld [vmem:[%s1804_s23 + $0x50] sm:$0xff] }
  0xb4   : > { %v501_v47 = vadd.f32 %v485_v45, %v465_v21  ;;  %v502_v20 = vadd.f32 %v486_v33, %v466_v23  ;;  %v503_v40 = vadd.f32 %v487_v46, %v467_v24  ;;  %v504_v41 = vadd.f32 %v488_v59, %v468_v50  ;;  %v520_v23 = vld [vmem:[%s1804_s23 + $0x48] sm:$0xff]  ;;  %v522_v50 = vld [vmem:[%s1804_s23 + $0x58] sm:$0xff] }
  0xb5   : > { %v505_v27 = vadd.f32 %v489_v60, %v469_v51  ;;  %v506_v21 = vadd.f32 %v490_v61, %v470_v30  ;;  %v507_v26 = vadd.f32 %v491_v62, %v471_v53  ;;  %v508_v42 = vadd.f32 %v492_v63, %v472_v54  ;;  %v523_v51 = vld [vmem:[%s1804_s23 + $0x60] sm:$0xff]  ;;  %v524_v44 = vld [vmem:[%s1804_s23 + $0x68] sm:$0xff]  ;;  %v2048_v30 = vld [vmem:[%s1804_s23 + $0x70] sm:$0xff] }
  0xb6   : > { %v2035_v49 = vadd.f32 %v493_v8, %v473_v55  ;;  %v2040_v24 = vadd.f32 %v494_v18, %v474_v36  ;;  %v527_v45 = vsub.f32 %v495_v22, %v511_v19  ;;  %v528_v33 = vsub.f32 %v496_v52, %v512_v29  ;;  %2619 = vst [vmem:[#allocation65_spill] sm:$0xff] %v2048_v30  ;;  %v2053_v60 = vld [vmem:[%s1804_s23 + $0x78] sm:$0xff] }
  0xb7   : > { %v529_v46 = vsub.f32 %v497_v25, %v513_v17  ;;  %v530_v53 = vsub.f32 %v498_v32, %v514_v31  ;;  %v531_v54 = vsub.f32 %v499_v56, %v515_v28  ;;  %v532_v55 = vsub.f32 %v500_v48, %v516_v37  ;;  %2620 = vst [vmem:[#allocation66_spill] sm:$0xff] %v2053_v60  ;;  %v2636_v28 = vld [vmem:[#allocation36_spill] sm:$0xff]  ;;  %v2637_v60 = vld [vmem:[#allocation37_spill] sm:$0xff] }
  0xb8   : > { %2617 = vst [vmem:[#allocation63_spill] sm:$0xff] %v2035_v49  ;;  %2618 = vst [vmem:[#allocation64_spill] sm:$0xff] %v2040_v24  ;;  %v533_v59 = vsub.f32 %v501_v47, %v517_v38  ;;  %v534_v18 = vsub.f32 %v502_v20, %v518_v57  ;;  %v535_v36 = vsub.f32 %v503_v40, %v519_v39  ;;  %v577_v52 = vstv %s2023_s24  ;;  %v2639_v49 = vld [vmem:[#allocation39_spill] sm:$0xff] }
  0xb9   : > { %v536_v61 = vsub.f32 %v504_v41, %v520_v23  ;;  %v537_v62 = vsub.f32 %v505_v27, %v521_v43  ;;  %v538_v19 = vsub.f32 %v506_v21, %v522_v50  ;;  %v539_v22 = vsub.f32 %v507_v26, %v523_v51 }
  0xba   : > { %v540_v17 = vsub.f32 %v508_v42, %v524_v44  ;;  %v2062_v47 = vand.u32 2147483647, %v527_v45  ;;  %v2064_v48 = vand.u32 2147483647, %v528_v33  ;;  %v2066_v32 = vand.u32 2147483647, %v529_v46 }
  0xbb   : > { %v2070_v29 = vand.u32 2147483647, %v530_v53  ;;  %v2072_v56 = vand.u32 2147483647, %v531_v54  ;;  %v2074_v31 = vand.u32 2147483647, %v532_v55  ;;  %v578_v40 = vmul.f32 %v577_v52, %v1824_v0 }
  0xbc   : > { %2621 = vst [vmem:[#allocation67_spill] sm:$0xff] %v2066_v32  ;;  %v2076_v63 = vand.u32 2147483647, %v533_v59  ;;  %v2078_v8 = vand.u32 2147483647, %v534_v18  ;;  %v579_v38 = vmul.f32 %v577_v52, %v1827_v1  ;;  %v580_v26 = vmul.f32 %v577_v52, %v1830_v2  ;;  %v2633_v18 = vld [vmem:[#allocation33_spill] sm:$0xff] }
  0xbd   : > { %2622 = vst [vmem:[#allocation68_spill] sm:$0xff] %v2070_v29  ;;  %2623 = vst [vmem:[#allocation69_spill] sm:$0xff] %v2072_v56  ;;  %v2080_v20 = vand.u32 2147483647, %v535_v36  ;;  %v2083_v41 = vand.u32 2147483647, %v536_v61  ;;  %v581_v42 = vmul.f32 %v577_v52, %v1833_v3  ;;  %v582_v39 = vmul.f32 %v577_v52, %v1836_v4 }
  0xbe   : > { %2624 = vst [vmem:[#allocation70_spill] sm:$0xff] %v2074_v31  ;;  %2625 = vst [vmem:[#allocation71_spill] sm:$0xff] %v2076_v63  ;;  %v2085_v27 = vand.u32 2147483647, %v537_v62  ;;  %v2087_v37 = vand.u32 2147483647, %v538_v19  ;;  %v583_v23 = vmul.f32 %v577_v52, %v1839_v5  ;;  %v584_v43 = vmul.f32 %v577_v52, %v1842_v6 }
  0xbf   : > { %2626 = vst [vmem:[#allocation72_spill] sm:$0xff] %v2078_v8  ;;  %2627 = vst [vmem:[#allocation73_spill] sm:$0xff] %v2080_v20  ;;  %v2090_v57 = vand.u32 2147483647, %v539_v22  ;;  %v2092_v21 = vand.u32 2147483647, %v540_v17  ;;  %v596_v50 = vstv %s2050_s26  ;;  %v585_v51 = vmul.f32 %v577_v52, %v1845_v7 }
  0xc0   : > { %2628 = vst [vmem:[#allocation74_spill] sm:$0xff] %v2083_v41  ;;  %2629 = vst [vmem:[#allocation75_spill] sm:$0xff] %v2085_v27  ;;  %v586_v44 = vmul.f32 %v577_v52, %v1848_v9  ;;  %v587_v45 = vmul.f32 %v577_v52, %v1851_v10  ;;  %v588_v33 = vmul.f32 %v577_v52, %v1854_v11  ;;  %v631_v61 = vstv %s2056_s29  ;;  %v2634_v19 = vld [vmem:[#allocation34_spill] sm:$0xff]  ;;  %v2635_v17 = vld [vmem:[#allocation35_spill] sm:$0xff] }
  0xc1   : > { %2630 = vst [vmem:[#allocation76_spill] sm:$0xff] %v2087_v37  ;;  %2631 = vst [vmem:[#allocation77_spill] sm:$0xff] %v2090_v57  ;;  %v589_v46 = vmul.f32 %v577_v52, %v1857_v12  ;;  %v590_v53 = vmul.f32 %v577_v52, %v1860_v13  ;;  %v591_v54 = vmul.f32 %v577_v52, %v1863_v14  ;;  %v2112_v62 = vstv %s2058_s27  ;;  %v2638_v57 = vld [vmem:[#allocation38_spill] sm:$0xff]  ;;  %v2640_v27 = vld [vmem:[#allocation40_spill] sm:$0xff] }
  0xc2   : > { %2632 = vst [vmem:[#allocation78_spill] sm:$0xff] %v2092_v21  ;;  %v592_v55 = vmul.f32 %v577_v52, %v1869_v15  ;;  %v593_v59 = vmul.f32 %v577_v52, %v1872_v16  ;;  %v597_v36 = vmul.f32 %v2633_v18, %v596_v50  ;;  %v598_v22 = vmul.f32 %v2634_v19, %v596_v50  ;;  %v2641_v52 = vld [vmem:[#allocation41_spill] sm:$0xff]  ;;  %v2642_v14 = vld [vmem:[#allocation42_spill] sm:$0xff]  ;;  %v2643_v12 = vld [vmem:[#allocation43_spill] sm:$0xff] }
  0xc3   : > { %v599_v25 = vmul.f32 %v2635_v17, %v596_v50  ;;  %v600_v21 = vmul.f32 %v2636_v28, %v596_v50  ;;  %v601_v24 = vmul.f32 %v2637_v60, %v596_v50  ;;  %v602_v30 = vmul.f32 %v2638_v57, %v596_v50  ;;  %v2644_v10 = vld [vmem:[#allocation44_spill] sm:$0xff]  ;;  %v2645_v7 = vld [vmem:[#allocation45_spill] sm:$0xff]  ;;  %v2646_v41 = vld [vmem:[#allocation46_spill] sm:$0xff] }
  0xc4   : > { %v603_v37 = vmul.f32 %v2639_v49, %v596_v50  ;;  %v604_v15 = vmul.f32 %v2640_v27, %v596_v50  ;;  %v605_v16 = vmul.f32 %v2641_v52, %v596_v50  ;;  %v606_v13 = vmul.f32 %v2642_v14, %v596_v50  ;;  %v2647_v20 = vld [vmem:[#allocation47_spill] sm:$0xff]  ;;  %v2648_v60 = vld [vmem:[#allocation48_spill] sm:$0xff] }
  0xc5   : > { %v607_v11 = vmul.f32 %v2643_v12, %v596_v50  ;;  %v608_v9 = vmul.f32 %v2644_v10, %v596_v50  ;;  %v609_v6 = vmul.f32 %v2645_v7, %v596_v50  ;;  %v610_v5 = vmul.f32 %v2646_v41, %v596_v50 }
  0xc6   : > { %v611_v8 = vmul.f32 %v2647_v20, %v596_v50  ;;  %v612_v57 = vmul.f32 %v2648_v60, %v596_v50  ;;  %v613_v4 = vadd.f32 %v597_v36, %v578_v40  ;;  %v614_v49 = vadd.f32 %v598_v22, %v579_v38  ;;  %v2649_v38 = vld [vmem:[#allocation49_spill] sm:$0xff]  ;;  %v2659_v50 = vld [vmem:[#allocation59_spill] sm:$0xff] }
  0xc7   : > { %v615_v63 = vadd.f32 %v599_v25, %v580_v26  ;;  %v616_v27 = vadd.f32 %v600_v21, %v581_v42  ;;  %v617_v31 = vadd.f32 %v601_v24, %v582_v39  ;;  %v618_v52 = vadd.f32 %v602_v30, %v583_v23  ;;  %v2650_v21 = vld [vmem:[#allocation50_spill] sm:$0xff]  ;;  %v2651_v30 = vld [vmem:[#allocation51_spill] sm:$0xff]  ;;  %v2657_v42 = vld [vmem:[#allocation57_spill] sm:$0xff] }
  0xc8   : > { %v619_v14 = vadd.f32 %v603_v37, %v584_v43  ;;  %v620_v56 = vadd.f32 %v604_v15, %v585_v51  ;;  %v621_v12 = vadd.f32 %v605_v16, %v586_v44  ;;  %v622_v29 = vadd.f32 %v606_v13, %v587_v45  ;;  %v2652_v15 = vld [vmem:[#allocation52_spill] sm:$0xff]  ;;  %v2655_v16 = vld [vmem:[#allocation55_spill] sm:$0xff]  ;;  %v2658_v23 = vld [vmem:[#allocation58_spill] sm:$0xff] }
  0xc9   : > { %v623_v10 = vadd.f32 %v607_v11, %v588_v33  ;;  %v624_v28 = vadd.f32 %v608_v9, %v589_v46  ;;  %v625_v7 = vadd.f32 %v609_v6, %v590_v53  ;;  %v626_v3 = vadd.f32 %v610_v5, %v591_v54  ;;  %v2653_v11 = vld [vmem:[#allocation53_spill] sm:$0xff]  ;;  %v2654_v6 = vld [vmem:[#allocation54_spill] sm:$0xff]  ;;  %v2660_v44 = vld [vmem:[#allocation60_spill] sm:$0xff] }
  0xca   : > { %v627_v41 = vadd.f32 %v611_v8, %v592_v55  ;;  %v628_v32 = vadd.f32 %v612_v57, %v593_v59  ;;  %v632_v20 = vmul.f32 %v1959_v34, %v631_v61  ;;  %v633_v40 = vmul.f32 %v1962_v35, %v631_v61  ;;  %v2656_v57 = vld [vmem:[#allocation56_spill] sm:$0xff]  ;;  %v2661_v33 = vld [vmem:[#allocation61_spill] sm:$0xff] }
  0xcb   : > { %v634_v25 = vmul.f32 %v2649_v38, %v631_v61  ;;  %v635_v24 = vmul.f32 %v2650_v21, %v631_v61  ;;  %v636_v37 = vmul.f32 %v2651_v30, %v631_v61  ;;  %v637_v13 = vmul.f32 %v2652_v15, %v631_v61  ;;  %v1192_v55 = vld [vmem:[%s1804_s23 + $0x80] sm:$0xff] }
  0xcc   : > { %v638_v9 = vmul.f32 %v2653_v11, %v631_v61  ;;  %v639_v5 = vmul.f32 %v2654_v6, %v631_v61  ;;  %v640_v8 = vmul.f32 %v2655_v16, %v631_v61  ;;  %v641_v26 = vmul.f32 %v2656_v57, %v631_v61 }
  0xcd   : > { %v642_v39 = vmul.f32 %v2657_v42, %v631_v61  ;;  %v643_v43 = vmul.f32 %v2658_v23, %v631_v61  ;;  %v644_v51 = vmul.f32 %v2659_v50, %v631_v61  ;;  %v645_v45 = vmul.f32 %v2660_v44, %v631_v61  ;;  %v1193_v23 = vld [vmem:[%s1804_s23 + $0x88] sm:$0xff]  ;;  %v1194_v50 = vld [vmem:[%s1804_s23 + $0x90] sm:$0xff]  ;;  %v1195_v44 = vld [vmem:[%s1804_s23 + $0x98] sm:$0xff] }
  0xce   : > { %v646_v46 = vmul.f32 %v2661_v33, %v631_v61  ;;  %v647_v53 = vmul.f32 %v2009_v58, %v631_v61  ;;  %v648_v54 = vadd.f32 %v632_v20, %v613_v4  ;;  %v649_v59 = vadd.f32 %v633_v40, %v614_v49  ;;  %v1196_v58 = vld [vmem:[%s1804_s23 + $0xa0] sm:$0xff]  ;;  %v1197_v42 = vld [vmem:[%s1804_s23 + $0xa8] sm:$0xff]  ;;  %v1198_v49 = vld [vmem:[%s1804_s23 + $0xb0] sm:$0xff] }
  0xcf   : > { %v650_v36 = vadd.f32 %v634_v25, %v615_v63  ;;  %v651_v22 = vadd.f32 %v635_v24, %v616_v27  ;;  %v652_v60 = vadd.f32 %v636_v37, %v617_v31  ;;  %v653_v33 = vadd.f32 %v637_v13, %v618_v52  ;;  %v1199_v25 = vld [vmem:[%s1804_s23 + $0xb8] sm:$0xff]  ;;  %v1200_v24 = vld [vmem:[%s1804_s23 + $0xc0] sm:$0xff]  ;;  %v1201_v52 = vld [vmem:[%s1804_s23 + $0xc8] sm:$0xff] }
  0xd0   : > { %v654_v61 = vadd.f32 %v638_v9, %v619_v14  ;;  %v655_v4 = vadd.f32 %v639_v5, %v620_v56  ;;  %v656_v20 = vadd.f32 %v640_v8, %v621_v12  ;;  %v657_v63 = vadd.f32 %v641_v26, %v622_v29  ;;  %v1202_v37 = vld [vmem:[%s1804_s23 + $0xd0] sm:$0xff]  ;;  %v1203_v13 = vld [vmem:[%s1804_s23 + $0xd8] sm:$0xff]  ;;  %v2170_v9 = vld [vmem:[%s1804_s23 + $0xe0] sm:$0xff] }
  0xd1   : > { %v658_v31 = vadd.f32 %v642_v39, %v623_v10  ;;  %v659_v27 = vadd.f32 %v643_v43, %v624_v28  ;;  %v2156_v40 = vadd.f32 %v644_v51, %v625_v7  ;;  %v2161_v14 = vadd.f32 %v645_v45, %v626_v3  ;;  %v2175_v10 = vld [vmem:[%s1804_s23 + $0xe8] sm:$0xff]  ;;  %v2178_v7 = vld [vmem:[%s1804_s23 + $0xf0] sm:$0xff] }
  0xd2   : > { %v2163_v56 = vadd.f32 %v646_v46, %v627_v41  ;;  %v2165_v12 = vadd.f32 %v647_v53, %v628_v32  ;;  %v681_v29 = vsub.f32 %v648_v54, %v1192_v55  ;;  %v682_v28 = vsub.f32 %v649_v59, %v1193_v23  ;;  %v2181_v41 = vld [vmem:[%s1804_s23 + $0xf8] sm:$0xff] }
  0xd3   : > { %v683_v5 = vsub.f32 %v650_v36, %v1194_v50  ;;  %v684_v3 = vsub.f32 %v651_v22, %v1195_v44  ;;  %v685_v8 = vsub.f32 %v652_v60, %v1196_v58  ;;  %v686_v32 = vsub.f32 %v653_v33, %v1197_v42 }
  0xd4   : > { %v687_v26 = vsub.f32 %v654_v61, %v1198_v49  ;;  %v688_v39 = vsub.f32 %v655_v4, %v1199_v25  ;;  %v689_v43 = vsub.f32 %v656_v20, %v1200_v24  ;;  %v690_v51 = vsub.f32 %v657_v63, %v1201_v52 }
  0xd5   : > { %v691_v45 = vsub.f32 %v658_v31, %v1202_v37  ;;  %v692_v46 = vsub.f32 %v659_v27, %v1203_v13  ;;  %v693_v53 = vsub.f32 %v2156_v40, %v2170_v9  ;;  %v694_v54 = vsub.f32 %v2161_v14, %v2175_v10 }
  0xd6   : > { %v697_v50 = vand.u32 2147483647, %v681_v29  ;;  %v2190_v58 = vstv %s2147_s17  ;;  %v698_v42 = vand.u32 2147483647, %v682_v28  ;;  %v699_v44 = vand.u32 2147483647, %v683_v5 }
  0xd7   : > { %v732_v33 = vmul.f32 %v2112_v62, %v1824_v0  ;;  %v700_v55 = vand.u32 2147483647, %v684_v3  ;;  %v701_v59 = vand.u32 2147483647, %v685_v8  ;;  %v702_v36 = vand.u32 2147483647, %v686_v32 }
  0xd8   : > { %v733_v22 = vmul.f32 %v2112_v62, %v1827_v1  ;;  %v703_v61 = vand.u32 2147483647, %v687_v26  ;;  %v704_v4 = vand.u32 2147483647, %v688_v39  ;;  %v751_v20 = vmul.f32 %v2633_v18, %v2190_v58  ;;  %v2664_v29 = vld [vmem:[#allocation36_spill] sm:$0xff]  ;;  %v2666_v32 = vld [vmem:[#allocation69_spill] sm:$0xff] }
  0xd9   : > { %v752_v49 = vmul.f32 %v2634_v19, %v2190_v58  ;;  %v705_v63 = vand.u32 2147483647, %v689_v43  ;;  %v706_v31 = vand.u32 2147483647, %v690_v51  ;;  %v2203_v27 = vadd.f32 %v697_v50, %v2062_v47  ;;  %v2662_v19 = vld [vmem:[#allocation67_spill] sm:$0xff]  ;;  %v2663_v47 = vld [vmem:[#allocation20_spill] sm:$0xff] }
  0xda   : > { %v2206_v0 = vstv %s2172_s9  ;;  %v2208_v25 = vand.u32 2147483647, %v691_v45  ;;  %v2210_v24 = vand.u32 2147483647, %v692_v46  ;;  %v734_v1 = vmul.f32 %v2112_v62, %v1830_v2  ;;  %v2665_v8 = vld [vmem:[#allocation68_spill] sm:$0xff]  ;;  %v2667_v39 = vld [vmem:[#allocation70_spill] sm:$0xff] }
  0xdb   : > { %v753_v18 = vmul.f32 %v2635_v17, %v2190_v58  ;;  %v2217_v52 = vadd.f32 %v698_v42, %v2064_v48  ;;  %v2220_v37 = vadd.f32 %v699_v44, %v2662_v19  ;;  %v735_v13 = vmul.f32 %v2112_v62, %v2663_v47  ;;  %v2668_v51 = vld [vmem:[#allocation71_spill] sm:$0xff]  ;;  %v2669_v46 = vld [vmem:[#allocation21_spill] sm:$0xff] }
  0xdc   : > { %v754_v28 = vmul.f32 %v2664_v29, %v2190_v58  ;;  %v767_v5 = vadd.f32 %v751_v20, %v732_v33  ;;  %v768_v3 = vadd.f32 %v752_v49, %v733_v22  ;;  %v786_v2 = vmul.f32 %v1959_v34, %v2206_v0  ;;  %v2670_v34 = vld [vmem:[#allocation37_spill] sm:$0xff]  ;;  %v2671_v33 = vld [vmem:[#allocation72_spill] sm:$0xff]  ;;  %v2673_v22 = vld [vmem:[#allocation22_spill] sm:$0xff] }
  0xdd   : > { %v787_v17 = vmul.f32 %v1962_v35, %v2206_v0  ;;  %v2231_v48 = vadd.f32 %v700_v55, %v2665_v8  ;;  %v2234_v26 = vadd.f32 %v701_v59, %v2666_v32  ;;  %v2237_v43 = vadd.f32 %v702_v36, %v2667_v39  ;;  %v2672_v59 = vld [vmem:[#allocation73_spill] sm:$0xff]  ;;  %v2674_v20 = vld [vmem:[#allocation38_spill] sm:$0xff]  ;;  %v2677_v8 = vld [vmem:[#allocation24_spill] sm:$0xff] }
  0xde   : > { %v2240_v45 = vadd.f32 %v703_v61, %v2668_v51  ;;  %v736_v50 = vmul.f32 %v2112_v62, %v2669_v46  ;;  %v755_v42 = vmul.f32 %v2670_v34, %v2190_v58  ;;  %v769_v35 = vadd.f32 %v753_v18, %v734_v1  ;;  %v2678_v39 = vld [vmem:[#allocation25_spill] sm:$0xff]  ;;  %v1208_v46 = vld [vmem:[%s1804_s23 + $0x100] sm:$0xff] }
  0xdf   : > { %v788_v44 = vmul.f32 %v2649_v38, %v2206_v0  ;;  %v2249_v55 = vadd.f32 %v704_v4, %v2671_v33  ;;  %v2252_v36 = vadd.f32 %v705_v63, %v2672_v59  ;;  %v737_v61 = vmul.f32 %v2112_v62, %v2673_v22  ;;  %v2675_v38 = vld [vmem:[#allocation74_spill] sm:$0xff]  ;;  %v2676_v4 = vld [vmem:[#allocation23_spill] sm:$0xff]  ;;  %v2682_v59 = vld [vmem:[#allocation40_spill] sm:$0xff] }
  0xe0   : > { %v756_v49 = vmul.f32 %v2674_v20, %v2190_v58  ;;  %v770_v19 = vadd.f32 %v754_v28, %v735_v13  ;;  %v789_v47 = vmul.f32 %v2650_v21, %v2206_v0  ;;  %v802_v1 = vadd.f32 %v786_v2, %v767_v5  ;;  %v1209_v13 = vld [vmem:[%s1804_s23 + $0x108] sm:$0xff]  ;;  %v2679_v28 = vld [vmem:[#allocation39_spill] sm:$0xff]  ;;  %v2680_v2 = vld [vmem:[#allocation26_spill] sm:$0xff] }
  0xe1   : > { %v803_v18 = vadd.f32 %v787_v17, %v768_v3  ;;  %v2261_v29 = vadd.f32 %v706_v31, %v2675_v38  ;;  %v738_v63 = vmul.f32 %v2112_v62, %v2676_v4  ;;  %v739_v32 = vmul.f32 %v2112_v62, %v2677_v8  ;;  %v2681_v34 = vld [vmem:[#allocation27_spill] sm:$0xff]  ;;  %v1210_v38 = vld [vmem:[%s1804_s23 + $0x110] sm:$0xff] }
  0xe2   : > { %v740_v51 = vmul.f32 %v2112_v62, %v2678_v39  ;;  %v757_v21 = vmul.f32 %v2679_v28, %v2190_v58  ;;  %v771_v5 = vadd.f32 %v755_v42, %v736_v50  ;;  %v790_v31 = vmul.f32 %v2651_v30, %v2206_v0  ;;  %v2683_v30 = vld [vmem:[#allocation28_spill] sm:$0xff]  ;;  %v2685_v28 = vld [vmem:[#allocation30_spill] sm:$0xff] }
  0xe3   : > { %v804_v3 = vadd.f32 %v788_v44, %v769_v35  ;;  %v741_v17 = vmul.f32 %v2112_v62, %v2680_v2  ;;  %v742_v33 = vmul.f32 %v2112_v62, %v2681_v34  ;;  %v758_v22 = vmul.f32 %v2682_v59, %v2190_v58  ;;  %v2684_v44 = vld [vmem:[#allocation29_spill] sm:$0xff]  ;;  %v1211_v34 = vld [vmem:[%s1804_s23 + $0x118] sm:$0xff] }
  0xe4   : > { %v772_v20 = vadd.f32 %v756_v49, %v737_v61  ;;  %v791_v4 = vmul.f32 %v2652_v15, %v2206_v0  ;;  %v805_v50 = vadd.f32 %v789_v47, %v770_v19  ;;  %v835_v42 = vsub.f32 %v802_v1, %v1208_v46  ;;  %v2686_v61 = vld [vmem:[#allocation41_spill] sm:$0xff]  ;;  %v2687_v1 = vld [vmem:[#allocation31_spill] sm:$0xff]  ;;  %v2688_v46 = vld [vmem:[#allocation42_spill] sm:$0xff] }
  0xe5   : > { %v836_v8 = vsub.f32 %v803_v18, %v1209_v13  ;;  %v743_v35 = vmul.f32 %v2112_v62, %v2683_v30  ;;  %v744_v39 = vmul.f32 %v2112_v62, %v2684_v44  ;;  %v2290_v2 = vmul.f32 %v2112_v62, %v2685_v28  ;;  %v1212_v28 = vld [vmem:[%s1804_s23 + $0x120] sm:$0xff] }
  0xe6   : > { %v759_v49 = vmul.f32 %v2686_v61, %v2190_v58  ;;  %v773_v59 = vadd.f32 %v757_v21, %v738_v63  ;;  %v792_v15 = vmul.f32 %v2653_v11, %v2206_v0  ;;  %v806_v19 = vadd.f32 %v790_v31, %v771_v5  ;;  %v2689_v5 = vld [vmem:[#allocation32_spill] sm:$0xff] }
  0xe7   : > { %v837_v47 = vsub.f32 %v804_v3, %v1210_v38  ;;  %v2299_v18 = vmul.f32 %v2112_v62, %v2687_v1  ;;  %v760_v13 = vmul.f32 %v2688_v46, %v2190_v58  ;;  %v774_v30 = vadd.f32 %v758_v22, %v739_v32  ;;  %v2690_v3 = vld [vmem:[#allocation43_spill] sm:$0xff]  ;;  %v2691_v1 = vld [vmem:[#allocation44_spill] sm:$0xff] }
  0xe8   : > { %v793_v44 = vmul.f32 %v2654_v6, %v2206_v0  ;;  %v807_v61 = vadd.f32 %v791_v4, %v772_v20  ;;  %v838_v63 = vsub.f32 %v805_v50, %v1211_v34  ;;  %v851_v21 = vand.u32 2147483647, %v835_v42  ;;  %v1213_v6 = vld [vmem:[%s1804_s23 + $0x128] sm:$0xff] }
  0xe9   : > { %v852_v11 = vand.u32 2147483647, %v836_v8  ;;  %v2308_v31 = vmul.f32 %v2112_v62, %v2689_v5  ;;  %v761_v38 = vmul.f32 %v2690_v3, %v2190_v58  ;;  %v762_v32 = vmul.f32 %v2691_v1, %v2190_v58  ;;  %v2692_v8 = vld [vmem:[#allocation45_spill] sm:$0xff] }
  0xea   : > { %v775_v22 = vadd.f32 %v759_v49, %v740_v51  ;;  %v794_v20 = vmul.f32 %v2655_v16, %v2206_v0  ;;  %v808_v4 = vadd.f32 %v792_v15, %v773_v59  ;;  %v839_v50 = vsub.f32 %v806_v19, %v1212_v28  ;;  %v1214_v3 = vld [vmem:[%s1804_s23 + $0x130] sm:$0xff]  ;;  %v1215_v51 = vld [vmem:[%s1804_s23 + $0x138] sm:$0xff]  ;;  %v403_v59 = vld [vmem:[%s1811_s30] sm:$0xff] }
  0xeb   : > { %v853_v42 = vand.u32 2147483647, %v837_v47  ;;  %v763_v62 = vmul.f32 %v2692_v8, %v2190_v58  ;;  %v776_v34 = vadd.f32 %v760_v13, %v741_v17  ;;  %v795_v46 = vmul.f32 %v2656_v57, %v2206_v0  ;;  %v404_v15 = vld [vmem:[%s1811_s30 + $0x8] sm:$0xff]  ;;  %v2693_v19 = vld [vmem:[#allocation46_spill] sm:$0xff]  ;;  %v2694_v47 = vld [vmem:[#allocation47_spill] sm:$0xff] }
  0xec   : > { %v809_v5 = vadd.f32 %v793_v44, %v774_v30  ;;  %v840_v49 = vsub.f32 %v807_v61, %v1213_v6  ;;  %v854_v1 = vand.u32 2147483647, %v838_v63  ;;  %v867_v60 = vadd.f32 %v851_v21, %v2203_v27  ;;  %v2695_v30 = vld [vmem:[#allocation57_spill] sm:$0xff] }
  0xed   : > { %v868_v16 = vadd.f32 %v852_v11, %v2217_v52  ;;  %v764_v17 = vmul.f32 %v2693_v19, %v2190_v58  ;;  %v765_v57 = vmul.f32 %v2694_v47, %v2190_v58  ;;  %v777_v13 = vadd.f32 %v761_v38, %v742_v33  ;;  %v405_v52 = vld [vmem:[%s1811_s30 + $0x10] sm:$0xff]  ;;  %v1216_v19 = vld [vmem:[%s1804_s23 + $0x140] sm:$0xff]  ;;  %v1217_v33 = vld [vmem:[%s1804_s23 + $0x148] sm:$0xff] }
  0xee   : > { %v796_v44 = vmul.f32 %v2695_v30, %v2206_v0  ;;  %v810_v28 = vadd.f32 %v794_v20, %v775_v22  ;;  %v841_v61 = vsub.f32 %v808_v4, %v1214_v3  ;;  %v855_v27 = vand.u32 2147483647, %v839_v50  ;;  %v2696_v11 = vld [vmem:[#allocation58_spill] sm:$0xff] }
  0xef   : > { %v869_v63 = vadd.f32 %v853_v42, %v2220_v37  ;;  %v778_v21 = vadd.f32 %v762_v32, %v743_v35  ;;  %v797_v6 = vmul.f32 %v2696_v11, %v2206_v0  ;;  %v811_v8 = vadd.f32 %v795_v46, %v776_v34  ;;  %v406_v20 = vld [vmem:[%s1811_s30 + $0x18] sm:$0xff]  ;;  %v2697_v37 = vld [vmem:[#allocation48_spill] sm:$0xff]  ;;  %v1218_v34 = vld [vmem:[%s1804_s23 + $0x150] sm:$0xff] }
  0xf0   : > { %v842_v23 = vsub.f32 %v809_v5, %v1215_v51  ;;  %v856_v38 = vand.u32 2147483647, %v840_v49  ;;  %v870_v47 = vadd.f32 %v854_v1, %v2231_v48  ;;  %v899_v30 = vmul.f32 %v867_v60, %v403_v59  ;;  %v2698_v35 = vld [vmem:[#allocation59_spill] sm:$0xff]  ;;  %v2699_v49 = vld [vmem:[#allocation60_spill] sm:$0xff] }
  0xf1   : > { %v900_v22 = vmul.f32 %v868_v16, %v404_v15  ;;  %v766_v4 = vmul.f32 %v2697_v37, %v2190_v58  ;;  %v779_v50 = vadd.f32 %v763_v62, %v744_v39  ;;  %v798_v32 = vmul.f32 %v2698_v35, %v2206_v0  ;;  %v407_v60 = vld [vmem:[%s1811_s30 + $0x20] sm:$0xff]  ;;  %v1219_v62 = vld [vmem:[%s1804_s23 + $0x158] sm:$0xff] }
  0xf2   : > { %v812_v42 = vadd.f32 %v796_v44, %v777_v13  ;;  %v843_v46 = vsub.f32 %v810_v28, %v1216_v19  ;;  %v857_v5 = vand.u32 2147483647, %v841_v61  ;;  %v871_v3 = vadd.f32 %v855_v27, %v2234_v26  ;;  %v408_v44 = vld [vmem:[%s1811_s30 + $0x28] sm:$0xff]  ;;  %v1220_v27 = vld [vmem:[%s1804_s23 + $0x160] sm:$0xff] }
  0xf3   : > { %v901_v51 = vmul.f32 %v869_v63, %v405_v52  ;;  %v780_v48 = vadd.f32 %v764_v17, %v2290_v2  ;;  %v799_v1 = vmul.f32 %v2699_v49, %v2206_v0  ;;  %v813_v58 = vadd.f32 %v797_v6, %v778_v21  ;;  %v2700_v28 = vld [vmem:[#allocation61_spill] sm:$0xff]  ;;  %v2701_v6 = vld [vmem:[#allocation62_spill] sm:$0xff] }
  0xf4   : > { %v844_v39 = vsub.f32 %v811_v8, %v1217_v33  ;;  %v858_v16 = vand.u32 2147483647, %v842_v23  ;;  %v872_v59 = vadd.f32 %v856_v38, %v2237_v43  ;;  %v902_v15 = vmul.f32 %v870_v47, %v406_v20  ;;  %v409_v43 = vld [vmem:[%s1811_s30 + $0x30] sm:$0xff]  ;;  %v1221_v19 = vld [vmem:[%s1804_s23 + $0x168] sm:$0xff]  ;;  %v2702_v20 = vld [vmem:[#allocation75_spill] sm:$0xff] }
  0xf5   : > { %v966_v13 = vadd.f32 %v900_v22, %v899_v30  ;;  %v781_v26 = vadd.f32 %v765_v57, %v2299_v18  ;;  %v800_v61 = vmul.f32 %v2700_v28, %v2206_v0  ;;  %v814_v2 = vadd.f32 %v798_v32, %v779_v50  ;;  %v2705_v49 = vld [vmem:[#allocation65_spill] sm:$0xff] }
  0xf6   : > { %v845_v17 = vsub.f32 %v812_v42, %v1218_v34  ;;  %v859_v63 = vand.u32 2147483647, %v843_v46  ;;  %v873_v52 = vadd.f32 %v857_v5, %v2240_v45  ;;  %v903_v21 = vmul.f32 %v871_v3, %v407_v60  ;;  %v410_v45 = vld [vmem:[%s1811_s30 + $0x38] sm:$0xff]  ;;  %v411_v42 = vld [vmem:[%s1811_s30 + $0x40] sm:$0xff] }
  0xf7   : > { %v967_v23 = vadd.f32 %v966_v13, %v901_v51  ;;  %v782_v11 = vadd.f32 %v766_v4, %v2308_v31  ;;  %v801_v8 = vmul.f32 %v2701_v6, %v2206_v0  ;;  %v815_v18 = vadd.f32 %v799_v1, %v780_v48  ;;  %v1222_v4 = vld [vmem:[%s1804_s23 + $0x170] sm:$0xff]  ;;  %v2703_v46 = vld [vmem:[#allocation76_spill] sm:$0xff]  ;;  %v2704_v48 = vld [vmem:[#allocation63_spill] sm:$0xff] }
  0xf8   : > { %v846_v57 = vsub.f32 %v813_v58, %v1219_v62  ;;  %v860_v33 = vand.u32 2147483647, %v844_v39  ;;  %v874_v38 = vadd.f32 %v858_v16, %v2249_v55  ;;  %v904_v47 = vmul.f32 %v872_v59, %v408_v44  ;;  %v2709_v13 = vld [vmem:[#allocation64_spill] sm:$0xff]  ;;  %v2710_v44 = vld [vmem:[#allocation66_spill] sm:$0xff] }
  0xf9   : > { %v968_v30 = vadd.f32 %v967_v23, %v902_v15  ;;  %v709_v22 = vand.u32 2147483647, %v693_v53  ;;  %v723_v31 = vadd.f32 %v2208_v25, %v2702_v20  ;;  %v816_v37 = vadd.f32 %v800_v61, %v781_v26  ;;  %v1223_v25 = vld [vmem:[%s1804_s23 + $0x178] sm:$0xff]  ;;  %v417_v20 = vld [vmem:[%s1811_s30 + $0x70] sm:$0xff]  ;;  %s1224_s23 = sshll.u32 %s1514_s18, 4  ;;  %s1532_s18 = smov [#allocation11]  }
  0xfa   : > { %v847_v0 = vsub.f32 %v814_v2, %v1220_v27  ;;  %v861_v50 = vand.u32 2147483647, %v845_v17  ;;  %v875_v35 = vadd.f32 %v859_v63, %v2252_v36  ;;  %v905_v32 = vmul.f32 %v873_v52, %v409_v43  ;;  %v412_v36 = vld [vmem:[%s1811_s30 + $0x48] sm:$0xff]  ;;  %v414_v23 = vld [vmem:[%s1811_s30 + $0x58] sm:$0xff]  ;;  %s2407_s28 = scalar_lea.hbm %s2460_s4, %s1224_s23  ;;  %s1436_s1 = sshll.u32 %s1532_s18, 4  ;;  %s1437_s1 = int_to_ptr.vmem [resolvable:$false] %s1436_s1 }
  0xfb   : > { %v969_v55 = vadd.f32 %v968_v30, %v903_v21  ;;  %v710_v34 = vand.u32 2147483647, %v694_v54  ;;  %v724_v40 = vadd.f32 %v2210_v24, %v2703_v46  ;;  %v817_v9 = vadd.f32 %v801_v8, %v782_v11  ;;  %v2708_v54 = vld [vmem:[#allocation77_spill] sm:$0xff]  ;;  %s1438_s24 = scalar_lea.vmem %s1437_s1, 32 }
  0xfc   : > { %v848_v53 = vsub.f32 %v815_v18, %v1221_v19  ;;  %v862_v5 = vand.u32 2147483647, %v846_v57  ;;  %v876_v3 = vadd.f32 %v860_v33, %v2261_v29  ;;  %v906_v51 = vmul.f32 %v874_v38, %v410_v45  ;;  %v413_v29 = vld [vmem:[%s1811_s30 + $0x50] sm:$0xff]  ;;  %v415_v57 = vld [vmem:[%s1811_s30 + $0x60] sm:$0xff] }
  0xfd   : > { %v970_v60 = vadd.f32 %v969_v55, %v904_v47  ;;  %v2706_v1 = vsub.f32 %v2704_v48, %v2705_v49  ;;  %v2707_v14 = vsub.f32 %v2163_v56, %v2178_v7  ;;  %v725_v24 = vadd.f32 %v709_v22, %v2708_v54  ;;  %v2713_v56 = vld [vmem:[#allocation78_spill] sm:$0xff]  ;;  %v416_v47 = vld [vmem:[%s1811_s30 + $0x68] sm:$0xff] }
  0xfe   : > { %v849_v39 = vsub.f32 %v816_v37, %v1222_v4  ;;  %v863_v62 = vand.u32 2147483647, %v847_v0  ;;  %v877_v16 = vadd.f32 %v861_v50, %v723_v31  ;;  %v907_v59 = vmul.f32 %v875_v35, %v411_v42  ;;  %v418_v4 = vld [vmem:[%s1811_s30 + $0x78] sm:$0xff]  ;;  %s1005_s30 = sshll.u32 %s329_s2, 4  ;;  %s2409_s30 = int_to_ptr.vmem [resolvable:$true] %s1005_s30 }
  0xff   : > { %v557_v58 = vand.u32 2147483647, %v2706_v1  ;;  %v711_v10 = vand.u32 2147483647, %v2707_v14  ;;  %v971_v15 = vadd.f32 %v970_v60, %v905_v32  ;;  %v2711_v26 = vsub.f32 %v2709_v13, %v2710_v44  ;;  %s1432_s12 = scalar_lea.vmem %s2409_s30, 16  ;;  %p1439_p1 = scmp.lt.s32.totalorder %s2409_s30, %s1437_s1 }
 0x100   : > { %v2712_v61 = vsub.f32 %v2165_v12, %v2181_v41  ;;  %v726_v7 = vadd.f32 %v710_v34, %v2713_v56  ;;  %v850_v17 = vsub.f32 %v817_v9, %v1223_v25  ;;  %v864_v27 = vand.u32 2147483647, %v848_v53  ;;  %p1433_p4 = scmp.ne.s32.totalorder %s2409_s30, %s1432_s12  ;;  %p1440_p2 = scmp.lt.s32.totalorder %s1438_s24, %s1432_s12 }
 0x101   : > { %v558_v28 = vand.u32 2147483647, %v2711_v26  ;;  %v878_v63 = vadd.f32 %v862_v5, %v724_v40  ;;  %v908_v52 = vmul.f32 %v876_v3, %v412_v36  ;;  %v972_v21 = vadd.f32 %v971_v15, %v906_v51 }
 0x102   : > { %v712_v2 = vand.u32 2147483647, %v2712_v61  ;;  %v727_v43 = vadd.f32 %v711_v10, %v557_v58  ;;  %v865_v11 = vand.u32 2147483647, %v849_v39  ;;  %v879_v6 = vadd.f32 %v863_v62, %v725_v24  ;;  %p1434_p8 = pnand %p1433_p4, %p2714_p6  ;;  %p1441_p13 = por %p1440_p2, %p1439_p1 }
 0x103   : > { %v909_v8 = vmul.f32 %v877_v16, %v413_v29  ;;  %v973_v18 = vadd.f32 %v972_v21, %v907_v59  ;;  %v866_v12 = vand.u32 2147483647, %v850_v17  ;;  %v880_v41 = vadd.f32 %v864_v27, %v726_v7 }
 0x104   : > { %v728_v19 = vadd.f32 %v712_v2, %v558_v28  ;;  %v910_v33 = vmul.f32 %v878_v63, %v414_v23  ;;  %v881_v30 = vadd.f32 %v865_v11, %v727_v43  ;;  %v911_v45 = vmul.f32 %v879_v6, %v415_v57  ;;  %p1435_p12 = pneg %p1434_p8 }
 0x105   : > { %v974_v38 = vadd.f32 %v973_v18, %v908_v52  ;;  %v912_v37 = vmul.f32 %v880_v41, %v416_v47 }
 0x106   : > { %v882_v31 = vadd.f32 %v866_v12, %v728_v19  ;;  %v913_v50 = vmul.f32 %v881_v30, %v417_v20  ;;  %p1442_p11 = pnand %p1441_p13, %p1435_p12 }
 0x107   : > { %v975_v22 = vadd.f32 %v974_v38, %v909_v8 }
 0x108   : > { %v914_v32 = vmul.f32 %v882_v31, %v418_v4 }
 0x109   : > { %v976_v0 = vadd.f32 %v975_v22, %v910_v33 }
 0x10b   : > { %v977_v35 = vadd.f32 %v976_v0, %v911_v45 }
 0x10d   : > { %v978_v55 = vadd.f32 %v977_v35, %v912_v37 }
 0x10f   : > { %v979_v42 = vadd.f32 %v978_v55, %v913_v50 }
 0x111   : > { %v980_v34 = vadd.f32 %v979_v42, %v914_v32 }
 0x113   : > { %981 = vadd.xlane.f32.xlu0 %v980_v34 }
 0x1a0   : > { %v982_v46 = vpop.xlane.xlu0 %981 }
 0x1a1   : > { %v983_v40 = vrot.slane %v982_v46, 4 }
 0x1a3   : > { %v984_v9 = vadd.f32 %v983_v40, %v982_v46 }
 0x1a5   : > { %v985_v53 = vrot.slane %v984_v9, 2 }
 0x1a7   : > { %v986_v25 = vadd.f32 %v985_v53, %v984_v9 }
 0x1a9   : > { %v987_v5 = vrot.slane %v986_v25, 1 }
 0x1ab   : > { %v988_v3 = vadd.f32 %v987_v5, %v986_v25 }
 0x1ad   : > { %1240 = vpush %v988_v3 }
 0x1de   : > { %s1241_s7 = spop %1240 }
 0x1df   : > { %v990_v51 = vstv %s1241_s7 }
 0x1e0   : > { %991 = vst [vmem:[%s329_s2] sm:$0x1] %v990_v51 }
 0x1e1   : > { %1445 = shalt.err (!%p1442_p11)
}
 0x1e2   : > { %s1446_s11 = scalar_lea.hbm %s2407_s28, 16  ;;  %s1450_s14 = scalar_lea.hbm %s2460_s4, 32 }
 0x1e3   : > { %p1447_p5 = scmp.ne.s32.totalorder %s2407_s28, %s1446_s11  ;;  %p1451_p0 = scmp.lt.u32.totalorder %s2407_s28, %s2460_s4 }
 0x1e4   : > { %p1452_p3 = scmp.lt.u32.totalorder %s1450_s14, %s1446_s11  ;;  %p1454_p4 = scmp.lt.u32.totalorder %s1446_s11, %s2407_s28 }
 0x1e5   : > { %p1448_p10 = pnand %p1447_p5, %p2714_p6 }
 0x1e6   : > { %p1453_p7 = por %p1452_p3, %p1451_p0 }
 0x1e7   : > { %p1449_p9 = pneg %p1448_p10 }
 0x1e8   : > { %p1455_p8 = por %p1454_p4, %p1453_p7 }
 0x1ea   : > { %p1456_p12 = pnand %p1455_p8, %p1449_p9 }
 0x1ec   : > { %1459 = shalt.err (!%p1456_p12)
}
 0x1ed   : > { %1252 = dma.vmem_to_hbm [thread:$0]  (%p2714_p6), %s2409_s30, 16, %s2407_s28, %s993_s10  }
 0x1ee PF: > { %s2715_s27 = sld [smem:[#allocation17_spill]]  ;;  %s1017_s21 = sand.u32 1, %s1502_s15  }
 0x1ef   : > { %p2716_p1 = scmp.ne.s32.totalorder %s2563_s8, 0  ;;  %s1018_s17 = scalar_lea.sflag [#allocation5], %s1017_s21 }
 0x1f4   : > { %p2717_p2 = scmp.ge.s32.totalorder %s2715_s27, 2 }
 0x1f6   : > { %p1269_p13 = pnand %p2717_p2, %p2716_p1 }
 0x1f8   : > { %1497 = dma.done.wait (!%p1269_p13), %s1018_s17, 16  }
 0x1f9   : > { %1499 = vsyncadd (!%p1269_p13), %s1018_s17, 4294967280  ;;  %s24_s20 = sadd.s32 1, %s2715_s27   ;;  %s2718_s9 = sld [smem:[#allocation16_spill]] }
 0x1fa   : > { %p21_p11 = scmp.ge.s32.totalorder %s24_s20, 4   ;;  %s2719_s17 = sld [smem:[#allocation19_spill]] }
 0x1fb   : > { %s2720_s6 = sld [smem:[#allocation18_spill]]  ;;  %s2721_s15 = smov %s1506_s16 }
 0x1fc   : > { %s2723_s18 = smov %s1518_s19  ;;  %23 = sbr.rel (!%p21_p11) target bundleno = 12 (0xc), region = 122 }
 0x1ff   : > { %s2722_s16 = smov %s2718_s9 }
 0x201   : > { %s2724_s19 = smov %s2720_s6 }
 0x203   :  { %1022 = vsyncpa [#allocation4], 1 }
 0x204   :  { %1024 = vsyncpa [#allocation4 + $0x1], 1 }
 0x205   :  { %1025 = vsyncpa [#allocation9], 1 }
 0x206   :  { %1027 = vsyncpa [#allocation9 + $0x1], 1 }
 0x207   :  { %1028 = vsyncpa [#allocation5], 1 }
 0x208   :  { %1030 = vsyncpa [#allocation5 + $0x1], 1 }
 0x209   :  { %1031 = vsyncpa [#allocation6], 1 }
 0x20a   :  { %1033 = vsyncpa [#allocation6 + $0x1], 1 }

</bundles_post_ra>
